<compile_context>
chip_gen: v7x
topology: tpu7x:2x2x1
jax: 0.10.0
libtpu: 0.0.40
codegen_flags: <defaults>
</compile_context>

<pallas_src>
import jax
import jax.numpy as jnp
from jax.experimental import pallas as pl
from jax.experimental.pallas import tpu as pltpu


def qvaluenet_kernel(x_ref, w1_ref, b1_ref, w2_ref, b2_ref,
                     w3_ref, b3_ref, w4_ref, b4_ref, o_ref):
    # Feature-major layout: x_ref is (Din, batch_tile); activations are (H, batch_tile).
    # Dropout = identity (inference semantics).

    # Layer 1: h = relu(W1 @ x + b1)   -- bf16 MXU inputs, f32 accumulation, f32 epilogue.
    h = jnp.dot(w1_ref[...], x_ref[...],
                preferred_element_type=jnp.float32) + b1_ref[...]
    h = jnp.maximum(h, 0.0)

    # Layer 2: h = relu(W2 @ h + b2)
    h = jnp.dot(w2_ref[...], h.astype(w2_ref.dtype),
                preferred_element_type=jnp.float32) + b2_ref[...]
    h = jnp.maximum(h, 0.0)

    # Layer 3: h = relu(W3 @ h + b3)
    h = jnp.dot(w3_ref[...], h.astype(w3_ref.dtype),
                preferred_element_type=jnp.float32) + b3_ref[...]
    h = jnp.maximum(h, 0.0)

    # Layer 4: Linear(hidden, 1) on the VPU/XLU. w4 is an (H, 1) f32 column; the per-example
    # dot product is a sublane reduction, so the result (1, batch_tile) is already lane-dense
    # -- it is stored directly, 4 bytes per example, unmasked along lanes.
    q = jnp.sum(h * w4_ref[...], axis=0, keepdims=True) + b4_ref[0, 0]
    o_ref[...] = q.astype(o_ref.dtype)


def _pick_batch_tile(B):
    """Adaptive batch tile (multiple of 128).

    Big tiles amortize the ~0.35us per-grid-step pipeline overhead (v6e/v7x), but the tile is
    capped so that the grid has at least 2 (even) steps whenever B > 128, so the "parallel"
    batch axis can shard across both v7x TensorCores.
    """
    target = 1024 if B >= 4096 else 512
    n_steps = max(2, pl.cdiv(B, target))
    n_steps += n_steps % 2                      # even split across 2 TCs
    bt = 128 * pl.cdiv(pl.cdiv(B, n_steps), 128)
    return max(bt, 128)


def qvaluenet_forward(x, params, *, batch_tile=None, use_bf16=True):
    """x: (B, input_dim) float32.

    params (PyTorch nn.Linear layout): w1 (H, Din), w2/w3 (H, H), w4 (1, H),
                                       b1/b2/b3 (H,), b4 (1,).
    Returns (B, 1) float32.
    """
    B, Din = x.shape
    H = params["w1"].shape[0]
    assert params["w1"].shape[1] == Din

    bt = _pick_batch_tile(B) if batch_tile is None else int(batch_tile)
    assert bt % 128 == 0, "batch_tile must be a multiple of 128"
    B_pad = bt * pl.cdiv(B, bt)

    mxu_dtype = jnp.bfloat16 if use_bf16 else jnp.float32

    # Feature-major input: (Din, B_pad). Padded columns produce junk that the wrapper
    # slices off (no in-kernel batch reductions, so no masking needed).
    x_t = x.T.astype(mxu_dtype)
    if B_pad != B:
        x_t = jnp.pad(x_t, ((0, 0), (0, B_pad - B)))

    w1 = params["w1"].astype(mxu_dtype)                      # (H, Din)
    w2 = params["w2"].astype(mxu_dtype)                      # (H, H)
    w3 = params["w3"].astype(mxu_dtype)                      # (H, H)
    b1 = params["b1"].reshape(H, 1).astype(jnp.float32)
    b2 = params["b2"].reshape(H, 1).astype(jnp.float32)
    b3 = params["b3"].reshape(H, 1).astype(jnp.float32)
    w4 = params["w4"].reshape(H, 1).astype(jnp.float32)      # column for the VPU head
    b4 = params["b4"].reshape(1, 1).astype(jnp.float32)      # SMEM scalar

    grid = (B_pad // bt,)
    in_specs = [
        pl.BlockSpec((Din, bt), lambda i: (0, i)),            # x tile (bf16)
        pl.BlockSpec((H, Din), lambda i: (0, 0)),              # w1 (bf16), grid-invariant
        pl.BlockSpec((H, 1), lambda i: (0, 0)),                # b1 (f32)
        pl.BlockSpec((H, H), lambda i: (0, 0)),                # w2 (bf16)
        pl.BlockSpec((H, 1), lambda i: (0, 0)),                # b2 (f32)
        pl.BlockSpec((H, H), lambda i: (0, 0)),                # w3 (bf16)
        pl.BlockSpec((H, 1), lambda i: (0, 0)),                # b3 (f32)
        pl.BlockSpec((H, 1), lambda i: (0, 0)),                # w4 column (f32)
        pl.BlockSpec(memory_space=pltpu.MemorySpace.SMEM),     # b4 scalar
    ]
    # Lane-dense packed output: one (1, batch_tile) f32 row per grid step (4 B per example).
    out_spec = pl.BlockSpec((1, bt), lambda i: (0, i))

    q_t = pl.pallas_call(
        qvaluenet_kernel,
        out_shape=jax.ShapeDtypeStruct((1, B_pad), jnp.float32),
        grid_spec=pltpu.PrefetchScalarGridSpec(
            num_scalar_prefetch=0,
            grid=grid,
            in_specs=in_specs,
            out_specs=out_spec,
        ),
        compiler_params=pltpu.CompilerParams(
            dimension_semantics=("parallel",),   # grid >= 2 shards across v7x's 2 TCs
        ),
    )(x_t, w1, b1, w2, b2, w3, b3, w4, b4)

    return q_t[0, :B].reshape(B, 1)


def init_qvaluenet_params(key, input_dim, hidden_dim):
    """PyTorch nn.Linear default init U(-1/sqrt(fan_in), 1/sqrt(fan_in)), PyTorch layouts."""
    dims = [(hidden_dim, input_dim), (hidden_dim, hidden_dim),
            (hidden_dim, hidden_dim), (1, hidden_dim)]
    params = {}
    for idx, (fan_out, fan_in) in enumerate(dims, start=1):
        key, kw, kb = jax.random.split(key, 3)
        bound = 1.0 / jnp.sqrt(jnp.float32(fan_in))
        params[f"w{idx}"] = jax.random.uniform(
            kw, (fan_out, fan_in), jnp.float32, minval=-bound, maxval=bound)
        params[f"b{idx}"] = jax.random.uniform(
            kb, (fan_out,), jnp.float32, minval=-bound, maxval=bound)
    return params


def qvaluenet_ref(x, params, cast_dtype=jnp.float32):
    """Pure-JAX reference. cast_dtype=bfloat16 mirrors the kernel's MXU input precision."""
    def lin(h, w, b):
        return jnp.dot(h.astype(cast_dtype), w.T.astype(cast_dtype),
                       preferred_element_type=jnp.float32) + b
    h = jnp.maximum(lin(x, params["w1"], params["b1"]), 0.0)
    h = jnp.maximum(lin(h, params["w2"], params["b2"]), 0.0)
    h = jnp.maximum(lin(h, params["w3"], params["b3"]), 0.0)
    # Layer 4 stays f32 (matches kernel's VPU path).
    return jnp.dot(h, params["w4"].T, preferred_element_type=jnp.float32) + params["b4"]


if __name__ == "__main__":
    # Sanity-check the tile picker (pure Python, no TPU work).
    assert _pick_batch_tile(200) == 128 and pl.cdiv(200, 128) == 2    # grid=2 for megacore
    assert _pick_batch_tile(2048) == 512                              # big-batch tiles
    assert _pick_batch_tile(4096) == 1024

    batch = 200            # deliberately NOT a multiple of the tile -> exercises padding
    input_dim = 16
    hidden_dim = 512       # module default hidden_dim

    key = jax.random.PRNGKey(0)
    key, kx = jax.random.split(key)
    x = jax.random.normal(kx, (batch, input_dim), jnp.float32)
    params = init_qvaluenet_params(key, input_dim, hidden_dim)

    out = qvaluenet_forward(x, params)           # auto tile -> 128, grid=(2,)
    out = jax.block_until_ready(out)
    assert out.shape == (batch, 1)

    ref_bf16 = qvaluenet_ref(x, params, cast_dtype=jnp.bfloat16)   # matches MXU precision
    ref_f32 = qvaluenet_ref(x, params, cast_dtype=jnp.float32)     # full-precision sanity
    assert jnp.allclose(out, ref_bf16, atol=2e-3, rtol=2e-3), \
        "Pallas output mismatch vs bf16-matched JAX reference"
    assert jnp.allclose(out, ref_f32, atol=5e-2, rtol=5e-2), \
        "Pallas output too far from full-f32 reference"

    print("KERNEL_OK")
</pallas_src>

<mosaic_0001>
module attributes {stable_mosaic.version = 11 : i64} {
  func.func @qvaluenet_kernel(%arg0: i32, %arg1: memref<16x128xbf16, #tpu.memory_space<vmem>>, %arg2: memref<512x16xbf16, #tpu.memory_space<vmem>>, %arg3: memref<512x1xf32, #tpu.memory_space<vmem>>, %arg4: memref<512x512xbf16, #tpu.memory_space<vmem>>, %arg5: memref<512x1xf32, #tpu.memory_space<vmem>>, %arg6: memref<512x512xbf16, #tpu.memory_space<vmem>>, %arg7: memref<512x1xf32, #tpu.memory_space<vmem>>, %arg8: memref<512x1xf32, #tpu.memory_space<vmem>>, %arg9: memref<1x1xf32, #tpu.memory_space<smem>>, %arg10: memref<1x128xf32, #tpu.memory_space<vmem>>) attributes {dimension_semantics = [#tpu.dimension_semantics<parallel>], iteration_bounds = array<i64: 2>, scalar_prefetch = 0 : i64, scratch_operands = 0 : i64, tpu.core_type = #tpu.core_type<tc>, window_params = [{transform_indices = @transform_0, window_bounds = array<i64: 16, 128>}, {pipeline_mode = #tpu.pipeline_mode<synchronous>, transform_indices = @transform_1, window_bounds = array<i64: 512, 16>}, {pipeline_mode = #tpu.pipeline_mode<synchronous>, transform_indices = @transform_2, window_bounds = array<i64: 512, 1>}, {pipeline_mode = #tpu.pipeline_mode<synchronous>, transform_indices = @transform_3, window_bounds = array<i64: 512, 512>}, {pipeline_mode = #tpu.pipeline_mode<synchronous>, transform_indices = @transform_4, window_bounds = array<i64: 512, 1>}, {pipeline_mode = #tpu.pipeline_mode<synchronous>, transform_indices = @transform_5, window_bounds = array<i64: 512, 512>}, {pipeline_mode = #tpu.pipeline_mode<synchronous>, transform_indices = @transform_6, window_bounds = array<i64: 512, 1>}, {pipeline_mode = #tpu.pipeline_mode<synchronous>, transform_indices = @transform_7, window_bounds = array<i64: 512, 1>}, {transform_indices = @transform_8, window_bounds = array<i64: 1, 1>}, {transform_indices = @transform_9, window_bounds = array<i64: 1, 128>}]} {
    %c0 = arith.constant 0 : index
    %c0_0 = arith.constant 0 : index
    %0 = vector.load %arg2[%c0, %c0_0] : memref<512x16xbf16, #tpu.memory_space<vmem>>, vector<512x16xbf16>
    %c0_1 = arith.constant 0 : index
    %c0_2 = arith.constant 0 : index
    %1 = vector.load %arg1[%c0_1, %c0_2] : memref<16x128xbf16, #tpu.memory_space<vmem>>, vector<16x128xbf16>
    %cst = arith.constant dense<0.000000e+00> : vector<512x128xf32>
    %2 = tpu.matmul %0, %1, %cst {dimension_numbers = #tpu.dot_dimension_numbers<[1], [0], [0], [1], [0, 0, 1, 1], [], []>} : vector<512x16xbf16>, vector<16x128xbf16>, vector<512x128xf32> -> vector<512x128xf32>
    %c0_3 = arith.constant 0 : index
    %c0_4 = arith.constant 0 : index
    %3 = vector.load %arg3[%c0_3, %c0_4] : memref<512x1xf32, #tpu.memory_space<vmem>>, vector<512x1xf32>
    %4 = vector.broadcast %3 : vector<512x1xf32> to vector<512x128xf32>
    %5 = arith.addf %2, %4 : vector<512x128xf32>
    %cst_5 = arith.constant 0.000000e+00 : f32
    %6 = vector.broadcast %cst_5 : f32 to vector<512x128xf32>
    %7 = arith.maximumf %5, %6 : vector<512x128xf32>
    %c0_6 = arith.constant 0 : index
    %c0_7 = arith.constant 0 : index
    %8 = vector.load %arg4[%c0_6, %c0_7] : memref<512x512xbf16, #tpu.memory_space<vmem>>, vector<512x512xbf16>
    %9 = arith.truncf %7 : vector<512x128xf32> to vector<512x128xbf16>
    %cst_8 = arith.constant dense<0.000000e+00> : vector<512x128xf32>
    %10 = tpu.matmul %8, %9, %cst_8 {dimension_numbers = #tpu.dot_dimension_numbers<[1], [0], [0], [1], [0, 0, 1, 1], [], []>} : vector<512x512xbf16>, vector<512x128xbf16>, vector<512x128xf32> -> vector<512x128xf32>
    %c0_9 = arith.constant 0 : index
    %c0_10 = arith.constant 0 : index
    %11 = vector.load %arg5[%c0_9, %c0_10] : memref<512x1xf32, #tpu.memory_space<vmem>>, vector<512x1xf32>
    %12 = vector.broadcast %11 : vector<512x1xf32> to vector<512x128xf32>
    %13 = arith.addf %10, %12 : vector<512x128xf32>
    %cst_11 = arith.constant 0.000000e+00 : f32
    %14 = vector.broadcast %cst_11 : f32 to vector<512x128xf32>
    %15 = arith.maximumf %13, %14 : vector<512x128xf32>
    %c0_12 = arith.constant 0 : index
    %c0_13 = arith.constant 0 : index
    %16 = vector.load %arg6[%c0_12, %c0_13] : memref<512x512xbf16, #tpu.memory_space<vmem>>, vector<512x512xbf16>
    %17 = arith.truncf %15 : vector<512x128xf32> to vector<512x128xbf16>
    %cst_14 = arith.constant dense<0.000000e+00> : vector<512x128xf32>
    %18 = tpu.matmul %16, %17, %cst_14 {dimension_numbers = #tpu.dot_dimension_numbers<[1], [0], [0], [1], [0, 0, 1, 1], [], []>} : vector<512x512xbf16>, vector<512x128xbf16>, vector<512x128xf32> -> vector<512x128xf32>
    %c0_15 = arith.constant 0 : index
    %c0_16 = arith.constant 0 : index
    %19 = vector.load %arg7[%c0_15, %c0_16] : memref<512x1xf32, #tpu.memory_space<vmem>>, vector<512x1xf32>
    %20 = vector.broadcast %19 : vector<512x1xf32> to vector<512x128xf32>
    %21 = arith.addf %18, %20 : vector<512x128xf32>
    %cst_17 = arith.constant 0.000000e+00 : f32
    %22 = vector.broadcast %cst_17 : f32 to vector<512x128xf32>
    %23 = arith.maximumf %21, %22 : vector<512x128xf32>
    %c0_18 = arith.constant 0 : index
    %c0_19 = arith.constant 0 : index
    %24 = vector.load %arg8[%c0_18, %c0_19] : memref<512x1xf32, #tpu.memory_space<vmem>>, vector<512x1xf32>
    %25 = vector.broadcast %24 : vector<512x1xf32> to vector<512x128xf32>
    %26 = arith.mulf %23, %25 : vector<512x128xf32>
    %cst_20 = arith.constant dense<0.000000e+00> : vector<128xf32>
    %27 = vector.multi_reduction <add>, %26, %cst_20 [0] : vector<512x128xf32> to vector<128xf32>
    %28 = vector.shape_cast %27 : vector<128xf32> to vector<1x128xf32>
    %c0_21 = arith.constant 0 : index
    %c0_22 = arith.constant 0 : index
    %29 = memref.load %arg9[%c0_21, %c0_22] : memref<1x1xf32, #tpu.memory_space<smem>>
    %30 = vector.broadcast %29 : f32 to vector<1x128xf32>
    %31 = arith.addf %28, %30 : vector<1x128xf32>
    %c0_23 = arith.constant 0 : index
    %c0_24 = arith.constant 0 : index
    %32 = vector.load %arg10[%c0_23, %c0_24] : memref<1x128xf32, #tpu.memory_space<vmem>>, vector<1x128xf32>
    tpu.vector_store %arg10[%c0_23, %c0_24], %31 {strides = array<i32>} : memref<1x128xf32, #tpu.memory_space<vmem>>, vector<1x128xf32>,
    return
  }
  func.func @transform_0(%arg0: i32) -> (i32, i32) {
    %c0_i32 = arith.constant 0 : i32
    %c0_i32_0 = arith.constant 0 : i32
    return %c0_i32, %arg0 : i32, i32
  }
  func.func @transform_1(%arg0: i32) -> (i32, i32) {
    %c0_i32 = arith.constant 0 : i32
    %c0_i32_0 = arith.constant 0 : i32
    %c0_i32_1 = arith.constant 0 : i32
    return %c0_i32, %c0_i32_0 : i32, i32
  }
  func.func @transform_2(%arg0: i32) -> (i32, i32) {
    %c0_i32 = arith.constant 0 : i32
    %c0_i32_0 = arith.constant 0 : i32
    %c0_i32_1 = arith.constant 0 : i32
    return %c0_i32, %c0_i32_0 : i32, i32
  }
  func.func @transform_3(%arg0: i32) -> (i32, i32) {
    %c0_i32 = arith.constant 0 : i32
    %c0_i32_0 = arith.constant 0 : i32
    %c0_i32_1 = arith.constant 0 : i32
    return %c0_i32, %c0_i32_0 : i32, i32
  }
  func.func @transform_4(%arg0: i32) -> (i32, i32) {
    %c0_i32 = arith.constant 0 : i32
    %c0_i32_0 = arith.constant 0 : i32
    %c0_i32_1 = arith.constant 0 : i32
    return %c0_i32, %c0_i32_0 : i32, i32
  }
  func.func @transform_5(%arg0: i32) -> (i32, i32) {
    %c0_i32 = arith.constant 0 : i32
    %c0_i32_0 = arith.constant 0 : i32
    %c0_i32_1 = arith.constant 0 : i32
    return %c0_i32, %c0_i32_0 : i32, i32
  }
  func.func @transform_6(%arg0: i32) -> (i32, i32) {
    %c0_i32 = arith.constant 0 : i32
    %c0_i32_0 = arith.constant 0 : i32
    %c0_i32_1 = arith.constant 0 : i32
    return %c0_i32, %c0_i32_0 : i32, i32
  }
  func.func @transform_7(%arg0: i32) -> (i32, i32) {
    %c0_i32 = arith.constant 0 : i32
    %c0_i32_0 = arith.constant 0 : i32
    %c0_i32_1 = arith.constant 0 : i32
    return %c0_i32, %c0_i32_0 : i32, i32
  }
  func.func @transform_8(%arg0: i32) -> (i32, i32) {
    %c0_i32 = arith.constant 0 : i32
    %c0_i32_0 = arith.constant 0 : i32
    %c0_i32_1 = arith.constant 0 : i32
    return %c0_i32, %c0_i32_0 : i32, i32
  }
  func.func @transform_9(%arg0: i32) -> (i32, i32) {
    %c0_i32 = arith.constant 0 : i32
    %c0_i32_0 = arith.constant 0 : i32
    return %c0_i32, %arg0 : i32, i32
  }
}

</mosaic_0001>

<bundles_post_ra>
// kernel: tpu_custom_call.1
= control target key start
LH: loop header
LB: loop body
LE: loop exit
PB: predicated region body
PF: predicated region fallthrough
CT: control target
= control target key end

     0   :  { %s9539_s0 = inlined_call_operand.vmem [shape: bf16[16,256], index: 0, kind: input, shape index: {}]   ;;  %s9540_s1 = inlined_call_operand.vmem [shape: bf16[512,16], index: 1, kind: input, shape index: {}]   ;;  %s9541_s2 = inlined_call_operand.vmem [shape: f32[512,1], index: 2, kind: input, shape index: {}]   ;;  %s9542_s3 = inlined_call_operand.vmem [shape: bf16[512,512], index: 3, kind: input, shape index: {}]   ;;  %s9543_s4 = inlined_call_operand.vmem [shape: f32[512,1], index: 4, kind: input, shape index: {}]   ;;  %s9544_s5 = inlined_call_operand.vmem [shape: bf16[512,512], index: 5, kind: input, shape index: {}]   ;;  %s9545_s6 = inlined_call_operand.vmem [shape: f32[512,1], index: 6, kind: input, shape index: {}]   ;;  %s9546_s7 = inlined_call_operand.vmem [shape: f32[512,1], index: 7, kind: input, shape index: {}]   ;;  %s9547_s8 = inlined_call_operand.<no memory space> [shape: f32[1,1], index: 8, kind: input, shape index: {}]   ;;  %s9548_s9 = inlined_call_operand.hbm [shape: f32[1,256], index: 9, kind: output, shape index: {}]  }
   0x1   :  { %14 = sst [smem:[#allocation2]] %s9547_s8 }
   0x2   :  { %15 = vsyncpa [#allocation5], 0 }
   0x3   :  { %17 = vsyncpa [#allocation5 + $0x1], 0  ;;  %s7084_s11 = smov 0   ;;  %s7086_s12 = smov 0  }
   0x4   :  { %s7088_s13 = smov 0   ;;  %s7090_s14 = smov 0  }
   0x5 LB: > { %s5689_s8 = sadd.s32 4294967295, %s7027_s14   ;;  %s5690_s15 = sadd.s32 4294967294, %s7027_s14   ;;  %s7027_s14 = sphi %s7090_s14, %s9651_s14   ;;  %s7023_s13 = sphi %s7088_s13, %s9650_s13   ;;  %s7019_s12 = sphi %s7086_s12, %s9649_s12   ;;  %s7015_s11 = sphi %s7084_s11, %s9648_s11  }
   0x6   : > { %s7107_s16 = sadd.s32 1, %s7027_s14   ;;  %s30_s17 = sadd.s32 1, %s7023_s13 }
   0x7   : > { %s27_s18 = ssub.s32 %s7027_s14, %s7107_s16  ;;  %p37_p0 = scmp.ne.s32.totalorder %s7023_s13, %s7019_s12 }
   0x8   : > { %p28_p1 = scmp.eq.s32.totalorder %s27_s18, 0  ;;  %p38_p2 = scmp.eq.s32.totalorder %s7027_s14, 0 }
   0x9   : > { %p235_p3 = scmp.eq.s32.totalorder %s5689_s8, 1  ;;  %p240_p4 = scmp.ne.s32.totalorder %s7019_s12, %s7015_s11 }
   0xa   : > { %s7120_s19 = scalar_select %p28_p1, %s7023_s13, %s30_s17  }
   0xb   : > { %p39_p5 = por %p38_p2, %p37_p0  ;;  %p7122_p6 = por %p235_p3, %p37_p0 }
   0xc   : > { %p241_p7 = scmp.eq.s32.totalorder %s5690_s15, 1  ;;  %p5692_p9 = scmp.ge.s32.totalorder %s7027_s14, 2 }
   0xe   : > { %p7126_p8 = por %p241_p7, %p240_p4  ;;  %281 = sbr.rel (%p5692_p9) target bundleno = 28 (0x1c), region = 48 }
  0x15   : > { %284 = sbr.rel (!%p39_p5) target bundleno = 28 (0x1c), region = 52  ;;  %s286_s22 = sand.u32 (%p39_p5), 1, %s7023_s13  }
  0x16   : > { %s5694_s23 = sshll.u32 (%p39_p5), %s7027_s14, 2  ;;  %s5693_s24 = sshll.u32 (%p39_p5), %s286_s22, 3 }
  0x17   : > { %s290_s27 = scalar_lea.vmem (%p39_p5), %s9539_s0, %s5694_s23  ;;  %s288_s28 = scalar_lea.vmem (%p39_p5), [#allocation3], %s5693_s24 }
  0x18   : > { %v306_v0 = vld [vmem:[%s290_s27] sm:$0xf] (%p39_p5)  ;;  %v308_v1 = vld [vmem:[%s290_s27 + $0x8] sm:$0xf] (%p39_p5) }
  0x19   : > { %307 = vst [vmem:[%s288_s28] sm:$0xf] (%p39_p5), %v306_v0  ;;  %309 = vst [vmem:[%s288_s28 + $0x4] sm:$0xf] (%p39_p5), %v308_v1 }
  0x1c PF: > { %p5695_p10 = scmp.ge.s32.totalorder %s7027_s14, 1  ;;  %p335_p11 = scmp.lt.s32.totalorder %s7027_s14, 3 }
  0x1e   : > { %p336_p12 = pnand %p5695_p10, %p335_p11 }
  0x20   : > { %339 = sbr.rel (%p336_p12) target bundleno = 1687 (0x697), region = 93 }
  0x27   : > { %v445_v2 = vld [vmem:[%s9541_s2 + $0x10] sm:$0xff]  ;;  %v443_v3 = vld [vmem:[%s9541_s2] sm:$0xff]  ;;  %s7147_s17 = sand.u32 1, %s7019_s12   ;;  %vm993_vm0 = vcmask 130048   ;;  %v9549_v4 = vmov 0   ;;  %v446_v5 = vld [vmem:[%s9541_s2 + $0x18] sm:$0xff] }
  0x28   : > { %6547 = vset.pattern.permute.xlu1 %v9549_v4  ;;  %6546 = vset.pattern.permute.xlu0 %v9549_v4  ;;  %v444_v6 = vld [vmem:[%s9541_s2 + $0x8] sm:$0xff]  ;;  %s5696_s25 = sshll.u32 %s7147_s17, 3  ;;  %v6549_v7 = vld [vmem:[%s9540_s1] sm:$0xff]   ;;  %v6553_v14 = vld [vmem:[%s9540_s1 + $0x10] sm:$0xff]   ;;  %s5612_s27 = sld [smem:[#allocation2]] }
  0x29   : > { %519 = vperm.xlu1 %6547, %v445_v2   ;;  %509 = vperm.xlu0 %6546, %v443_v3   ;;  %s344_s28 = scalar_lea.vmem [#allocation3], %s5696_s25  ;;  %v6550_v9 = vld [vmem:[%s9540_s1 + $0x80] sm:$0xff]   ;;  %v448_v10 = vld [vmem:[%s9541_s2 + $0x28] sm:$0xff]  ;;  %v6554_v15 = vld [vmem:[%s9540_s1 + $0x90] sm:$0xff]   ;;  %s375_s29 = scalar_lea.vmem [#allocation4], %s7147_s17 }
  0x2a   : > { %v6548_v8 = vld [vmem:[%s344_s28] sm:$0xff]   ;;  %6056 = vmatprep.mubr.msk.bf16.mxu0 %vm993_vm0, %v6549_v7  ;;  %6088 = vmatprep.mubr.msk.bf16.mxu1 %vm993_vm0, %v6550_v9  ;;  %v450_v16 = vld [vmem:[%s9541_s2 + $0x38] sm:$0xff]  ;;  %v449_v17 = vld [vmem:[%s9541_s2 + $0x30] sm:$0xff]  ;;  %s6018_s28 = sshll.u32 %s5689_s8, 4  ;;  %s5629_s30 = sshll.u32 %s375_s29, 4  ;;  %s9497_s30 = int_to_ptr.vmem [resolvable:$true] %s5629_s30 }
  0x2b   : > { %6054 = vmatprep.subr.bf16.mxu0 %v6548_v8  ;;  %6120 = vmatprep.subr.bf16.mxu1 %v6548_v8  ;;  %v447_v11 = vld [vmem:[%s9541_s2 + $0x20] sm:$0xff]  ;;  %v6551_v12 = vld [vmem:[%s9540_s1 + $0x8] sm:$0xff]   ;;  %v6555_v20 = vld [vmem:[%s9540_s1 + $0x18] sm:$0xff]   ;;  %s9495_s18 = scalar_lea.hbm %s9548_s9, %s6018_s28  ;;  %s5617_s22 = scalar_lea.sflag [#allocation5], %s7147_s17 }
  0x2c   : > { %6055 = vmatpush3.bf16.msra.mxu0 %v6548_v8  ;;  %6121 = vmatpush3.bf16.msra.mxu1 %v6548_v8  ;;  %v6552_v13 = vld [vmem:[%s9540_s1 + $0x88] sm:$0xff]   ;;  %v451_v19 = vld [vmem:[%s9541_s2 + $0x40] sm:$0xff]  ;;  %v6556_v21 = vld [vmem:[%s9540_s1 + $0x98] sm:$0xff]   ;;  %s6965_s23 = scalar_lea.vmem %s9497_s30, 16  ;;  %s7030_s8 = smov [#allocation4]  }
  0x2d   : > { %524 = vperm.xlu1 %6547, %v446_v5   ;;  %514 = vperm.xlu0 %6546, %v444_v6   ;;  %v452_v18 = vld [vmem:[%s9541_s2 + $0x48] sm:$0xff]  ;;  %v6557_v22 = vld [vmem:[%s9540_s1 + $0x20] sm:$0xff]   ;;  %v454_v24 = vld [vmem:[%s9541_s2 + $0x58] sm:$0xff]  ;;  %p6966_p13 = scmp.ne.s32.totalorder %s9497_s30, %s6965_s23  ;;  %s6969_s24 = sshll.u32 %s7030_s8, 4  ;;  %s6970_s24 = int_to_ptr.vmem [resolvable:$false] %s6969_s24 }
  0x2e   : > { %2627 = vmatprep.subr.bf16.mxu1 %v9549_v4  ;;  %4453 = vmatprep.subr.bf16.mxu0 %v9549_v4  ;;  %v6558_v23 = vld [vmem:[%s9540_s1 + $0xa0] sm:$0xff]   ;;  %v453_v25 = vld [vmem:[%s9541_s2 + $0x50] sm:$0xff]  ;;  %v456_v26 = vld [vmem:[%s9541_s2 + $0x68] sm:$0xff]  ;;  %s6971_s25 = scalar_lea.vmem %s6970_s24, 32  ;;  %p6972_p2 = scmp.lt.s32.totalorder %s9497_s30, %s6970_s24 }
  0x2f   : > { %6057 = vmatmul.mubr.msk.bf16.vlgmr.msra.gmra.mrb[0].mxu0 %vm993_vm0, %v6551_v12  ;;  %6089 = vmatmul.mubr.msk.bf16.vlgmr.msra.gmra.mrb[0].mxu1 %vm993_vm0, %v6552_v13  ;;  %v455_v27 = vld [vmem:[%s9541_s2 + $0x60] sm:$0xff]  ;;  %v6559_v28 = vld [vmem:[%s9540_s1 + $0x28] sm:$0xff]   ;;  %v6561_v30 = vld [vmem:[%s9540_s1 + $0x30] sm:$0xff]   ;;  %p6967_p0 = pnand %p6966_p13, %p7122_p6  ;;  %p6973_p3 = scmp.lt.s32.totalorder %s6971_s25, %s6965_s23 }
  0x30   : > { %6060 = vmatprep.mubr.msk.bf16.mxu0 %vm993_vm0, %v6553_v14  ;;  %6092 = vmatprep.mubr.msk.bf16.mxu1 %vm993_vm0, %v6554_v15  ;;  %v6560_v29 = vld [vmem:[%s9540_s1 + $0xa8] sm:$0xff]   ;;  %v6562_v31 = vld [vmem:[%s9540_s1 + $0xb0] sm:$0xff]   ;;  %v458_v32 = vld [vmem:[%s9541_s2 + $0x78] sm:$0xff] }
  0x31   : > { %534 = vperm.xlu1 %6547, %v448_v10   ;;  %529 = vperm.xlu0 %6546, %v447_v11   ;;  %v457_v33 = vld [vmem:[%s9541_s2 + $0x70] sm:$0xff]  ;;  %v460_v34 = vld [vmem:[%s9541_s2 + $0x88] sm:$0xff]  ;;  %v459_v35 = vld [vmem:[%s9541_s2 + $0x80] sm:$0xff]  ;;  %p6968_p1 = pneg %p6967_p0  ;;  %p6974_p4 = por %p6973_p3, %p6972_p2 }
  0x32   : > { %v6563_v36 = vld [vmem:[%s9540_s1 + $0x38] sm:$0xff]   ;;  %v6565_v38 = vld [vmem:[%s9540_s1 + $0x40] sm:$0xff]   ;;  %v461_v41 = vld [vmem:[%s9541_s2 + $0x90] sm:$0xff] }
  0x33   : > { %v6564_v37 = vld [vmem:[%s9540_s1 + $0xb8] sm:$0xff]   ;;  %v6566_v39 = vld [vmem:[%s9540_s1 + $0xc0] sm:$0xff]   ;;  %v464_v42 = vld [vmem:[%s9541_s2 + $0xa8] sm:$0xff]  ;;  %p6975_p5 = pnand %p6974_p4, %p6968_p1 }
  0x34   : > { %v462_v40 = vld [vmem:[%s9541_s2 + $0x98] sm:$0xff]  ;;  %v463_v43 = vld [vmem:[%s9541_s2 + $0xa0] sm:$0xff]  ;;  %v6567_v44 = vld [vmem:[%s9540_s1 + $0x48] sm:$0xff]  }
  0x35   : > { %544 = vperm.xlu1 %6547, %v450_v16   ;;  %539 = vperm.xlu0 %6546, %v449_v17   ;;  %v6568_v45 = vld [vmem:[%s9540_s1 + $0xc8] sm:$0xff]   ;;  %v6569_v46 = vld [vmem:[%s9540_s1 + $0x50] sm:$0xff]   ;;  %v466_v48 = vld [vmem:[%s9541_s2 + $0xb8] sm:$0xff] }
  0x36   : > { %v6570_v47 = vld [vmem:[%s9540_s1 + $0xd0] sm:$0xff]   ;;  %v468_v50 = vld [vmem:[%s9541_s2 + $0xc8] sm:$0xff]  ;;  %v467_v51 = vld [vmem:[%s9541_s2 + $0xc0] sm:$0xff] }
  0x37   : > { %6061 = vmatmul.mubr.msk.bf16.gmra.mrb[4].mxu0 %vm993_vm0, %v6555_v20  ;;  %6093 = vmatmul.mubr.msk.bf16.gmra.mrb[4].mxu1 %vm993_vm0, %v6556_v21  ;;  %v465_v49 = vld [vmem:[%s9541_s2 + $0xb0] sm:$0xff]  ;;  %v6571_v52 = vld [vmem:[%s9540_s1 + $0x58] sm:$0xff]   ;;  %v6573_v54 = vld [vmem:[%s9540_s1 + $0x60] sm:$0xff]  }
  0x38   : > { %6064 = vmatprep.mubr.msk.bf16.mxu0 %vm993_vm0, %v6557_v22  ;;  %6096 = vmatprep.mubr.msk.bf16.mxu1 %vm993_vm0, %v6558_v23  ;;  %v6572_v53 = vld [vmem:[%s9540_s1 + $0xd8] sm:$0xff]   ;;  %v6574_v55 = vld [vmem:[%s9540_s1 + $0xe0] sm:$0xff]   ;;  %v469_v57 = vld [vmem:[%s9541_s2 + $0xd0] sm:$0xff] }
  0x39   : > { %554 = vperm.xlu1 %6547, %v452_v18   ;;  %549 = vperm.xlu0 %6546, %v451_v19   ;;  %v470_v56 = vld [vmem:[%s9541_s2 + $0xd8] sm:$0xff]  ;;  %v472_v58 = vld [vmem:[%s9541_s2 + $0xe8] sm:$0xff]  ;;  %v471_v59 = vld [vmem:[%s9541_s2 + $0xe0] sm:$0xff] }
  0x3a   : > { %v6575_v60 = vld [vmem:[%s9540_s1 + $0x68] sm:$0xff]   ;;  %v6577_v62 = vld [vmem:[%s9540_s1 + $0x70] sm:$0xff]   ;;  %v474_v0 = vld [vmem:[%s9541_s2 + $0xf8] sm:$0xff] }
  0x3b   : > { %v6576_v61 = vld [vmem:[%s9540_s1 + $0xe8] sm:$0xff]   ;;  %v6578_v63 = vld [vmem:[%s9540_s1 + $0xf0] sm:$0xff]   ;;  %v475_v3 = vld [vmem:[%s9541_s2 + $0x100] sm:$0xff] }
  0x3c   : > { %v473_v1 = vld [vmem:[%s9541_s2 + $0xf0] sm:$0xff]  ;;  %v476_v2 = vld [vmem:[%s9541_s2 + $0x108] sm:$0xff]  ;;  %v6579_v5 = vld [vmem:[%s9540_s1 + $0x78] sm:$0xff]  }
  0x3d   : > { %564 = vperm.xlu1 %6547, %v454_v24   ;;  %559 = vperm.xlu0 %6546, %v453_v25   ;;  %v6580_v6 = vld [vmem:[%s9540_s1 + $0xf8] sm:$0xff]   ;;  %v477_v8 = vld [vmem:[%s9541_s2 + $0x110] sm:$0xff]  ;;  %v480_v9 = vld [vmem:[%s9541_s2 + $0x128] sm:$0xff] }
  0x3e   : > { %v478_v7 = vld [vmem:[%s9541_s2 + $0x118] sm:$0xff]  ;;  %v479_v10 = vld [vmem:[%s9541_s2 + $0x120] sm:$0xff]  ;;  %v481_v12 = vld [vmem:[%s9541_s2 + $0x130] sm:$0xff] }
  0x3f   : > { %6065 = vmatmul.mubr.msk.bf16.gmra.mrb[8].mxu0 %vm993_vm0, %v6559_v28  ;;  %6097 = vmatmul.mubr.msk.bf16.gmra.mrb[8].mxu1 %vm993_vm0, %v6560_v29  ;;  %v482_v11 = vld [vmem:[%s9541_s2 + $0x138] sm:$0xff]  ;;  %v484_v13 = vld [vmem:[%s9541_s2 + $0x148] sm:$0xff]  ;;  %v483_v14 = vld [vmem:[%s9541_s2 + $0x140] sm:$0xff] }
  0x40   : > { %6068 = vmatprep.mubr.msk.bf16.mxu0 %vm993_vm0, %v6561_v30  ;;  %6100 = vmatprep.mubr.msk.bf16.mxu1 %vm993_vm0, %v6562_v31  ;;  %v486_v15 = vld [vmem:[%s9541_s2 + $0x158] sm:$0xff]  ;;  %v485_v16 = vld [vmem:[%s9541_s2 + $0x150] sm:$0xff]  ;;  %v488_v17 = vld [vmem:[%s9541_s2 + $0x168] sm:$0xff] }
  0x41   : > { %574 = vperm.xlu1 %6547, %v456_v26   ;;  %569 = vperm.xlu0 %6546, %v455_v27   ;;  %v487_v18 = vld [vmem:[%s9541_s2 + $0x160] sm:$0xff]  ;;  %v490_v19 = vld [vmem:[%s9541_s2 + $0x178] sm:$0xff]  ;;  %v489_v20 = vld [vmem:[%s9541_s2 + $0x170] sm:$0xff] }
  0x42   : > { %v492_v21 = vld [vmem:[%s9541_s2 + $0x188] sm:$0xff]  ;;  %v491_v22 = vld [vmem:[%s9541_s2 + $0x180] sm:$0xff]  ;;  %v494_v23 = vld [vmem:[%s9541_s2 + $0x198] sm:$0xff] }
  0x43   : > { %v493_v24 = vld [vmem:[%s9541_s2 + $0x190] sm:$0xff]  ;;  %v496_v25 = vld [vmem:[%s9541_s2 + $0x1a8] sm:$0xff]  ;;  %v495_v26 = vld [vmem:[%s9541_s2 + $0x1a0] sm:$0xff] }
  0x44   : > { %v498_v27 = vld [vmem:[%s9541_s2 + $0x1b8] sm:$0xff]  ;;  %v497_v28 = vld [vmem:[%s9541_s2 + $0x1b0] sm:$0xff]  ;;  %v500_v29 = vld [vmem:[%s9541_s2 + $0x1c8] sm:$0xff] }
  0x45   : > { %584 = vperm.xlu1 %6547, %v458_v32   ;;  %579 = vperm.xlu0 %6546, %v457_v33   ;;  %v499_v30 = vld [vmem:[%s9541_s2 + $0x1c0] sm:$0xff]  ;;  %v502_v31 = vld [vmem:[%s9541_s2 + $0x1d8] sm:$0xff]  ;;  %v501_v32 = vld [vmem:[%s9541_s2 + $0x1d0] sm:$0xff] }
  0x46   : > { %v504_v33 = vld [vmem:[%s9541_s2 + $0x1e8] sm:$0xff] }
  0x47   : > { %6069 = vmatmul.mubr.msk.bf16.gmra.mrb[12].mxu0 %vm993_vm0, %v6563_v36  ;;  %6101 = vmatmul.mubr.msk.bf16.gmra.mrb[12].mxu1 %vm993_vm0, %v6564_v37  ;;  %v505_v36 = vld [vmem:[%s9541_s2 + $0x1f0] sm:$0xff]  ;;  %v1604_v37 = vld [vmem:[%s9543_s4 + $0x8] sm:$0xff] }
  0x48   : > { %6072 = vmatprep.mubr.msk.bf16.mxu0 %vm993_vm0, %v6565_v38  ;;  %6104 = vmatprep.mubr.msk.bf16.mxu1 %vm993_vm0, %v6566_v39  ;;  %v1603_v38 = vld [vmem:[%s9543_s4] sm:$0xff] }
  0x49   : > { %594 = vperm.xlu1 %6547, %v460_v34   ;;  %589 = vperm.xlu0 %6546, %v459_v35   ;;  %v503_v34 = vld [vmem:[%s9541_s2 + $0x1e0] sm:$0xff]  ;;  %v506_v35 = vld [vmem:[%s9541_s2 + $0x1f8] sm:$0xff] }
  0x4d   : > { %604 = vperm.xlu1 %6547, %v462_v40   ;;  %599 = vperm.xlu0 %6546, %v461_v41   ;;  %v1606_v41 = vld [vmem:[%s9543_s4 + $0x18] sm:$0xff] }
  0x4f   : > { %6073 = vmatmul.mubr.msk.bf16.gmra.mrb[16].mxu0 %vm993_vm0, %v6567_v44  ;;  %6105 = vmatmul.mubr.msk.bf16.gmra.mrb[16].mxu1 %vm993_vm0, %v6568_v45  ;;  %v1608_v45 = vld [vmem:[%s9543_s4 + $0x28] sm:$0xff] }
  0x50   : > { %6076 = vmatprep.mubr.msk.bf16.mxu0 %vm993_vm0, %v6569_v46  ;;  %6108 = vmatprep.mubr.msk.bf16.mxu1 %vm993_vm0, %v6570_v47  ;;  %v1607_v46 = vld [vmem:[%s9543_s4 + $0x20] sm:$0xff] }
  0x51   : > { %614 = vperm.xlu1 %6547, %v464_v42   ;;  %609 = vperm.xlu0 %6546, %v463_v43   ;;  %v1605_v42 = vld [vmem:[%s9543_s4 + $0x10] sm:$0xff] }
  0x55   : > { %624 = vperm.xlu1 %6547, %v466_v48   ;;  %619 = vperm.xlu0 %6546, %v465_v49   ;;  %v1610_v49 = vld [vmem:[%s9543_s4 + $0x38] sm:$0xff] }
  0x57   : > { %6077 = vmatmul.mubr.msk.bf16.gmra.mrb[20].mxu0 %vm993_vm0, %v6571_v52  ;;  %6109 = vmatmul.mubr.msk.bf16.gmra.mrb[20].mxu1 %vm993_vm0, %v6572_v53  ;;  %v1612_v53 = vld [vmem:[%s9543_s4 + $0x48] sm:$0xff] }
  0x58   : > { %6080 = vmatprep.mubr.msk.bf16.mxu0 %vm993_vm0, %v6573_v54  ;;  %6112 = vmatprep.mubr.msk.bf16.mxu1 %vm993_vm0, %v6574_v55  ;;  %v1611_v54 = vld [vmem:[%s9543_s4 + $0x40] sm:$0xff] }
  0x59   : > { %634 = vperm.xlu1 %6547, %v468_v50   ;;  %629 = vperm.xlu0 %6546, %v467_v51   ;;  %v1609_v50 = vld [vmem:[%s9543_s4 + $0x30] sm:$0xff] }
  0x5d   : > { %644 = vperm.xlu1 %6547, %v470_v56   ;;  %639 = vperm.xlu0 %6546, %v469_v57   ;;  %v1614_v57 = vld [vmem:[%s9543_s4 + $0x58] sm:$0xff] }
  0x5f   : > { %6081 = vmatmul.mubr.msk.bf16.gmra.mrb[24].mxu0 %vm993_vm0, %v6575_v60  ;;  %6113 = vmatmul.mubr.msk.bf16.gmra.mrb[24].mxu1 %vm993_vm0, %v6576_v61  ;;  %v1616_v61 = vld [vmem:[%s9543_s4 + $0x68] sm:$0xff] }
  0x60   : > { %6084 = vmatprep.mubr.msk.bf16.mxu0 %vm993_vm0, %v6577_v62  ;;  %6116 = vmatprep.mubr.msk.bf16.mxu1 %vm993_vm0, %v6578_v63  ;;  %v1615_v62 = vld [vmem:[%s9543_s4 + $0x60] sm:$0xff] }
  0x61   : > { %654 = vperm.xlu1 %6547, %v472_v58   ;;  %649 = vperm.xlu0 %6546, %v471_v59   ;;  %v1613_v58 = vld [vmem:[%s9543_s4 + $0x50] sm:$0xff] }
  0x65   : > { %664 = vperm.xlu1 %6547, %v474_v0   ;;  %659 = vperm.xlu0 %6546, %v473_v1   ;;  %v1618_v1 = vld [vmem:[%s9543_s4 + $0x78] sm:$0xff] }
  0x67   : > { %6085 = vmatmul.mubr.msk.bf16.gmra.mrb[28].mxu0 %vm993_vm0, %v6579_v5  ;;  %6117 = vmatmul.mubr.msk.bf16.gmra.mrb[28].mxu1 %vm993_vm0, %v6580_v6  ;;  %v1620_v6 = vld [vmem:[%s9543_s4 + $0x88] sm:$0xff] }
  0x69   : > { %674 = vperm.xlu1 %6547, %v476_v2   ;;  %669 = vperm.xlu0 %6546, %v475_v3   ;;  %v1617_v2 = vld [vmem:[%s9543_s4 + $0x70] sm:$0xff] }
  0x6d   : > { %684 = vperm.xlu1 %6547, %v478_v7   ;;  %679 = vperm.xlu0 %6546, %v477_v8   ;;  %v1619_v7 = vld [vmem:[%s9543_s4 + $0x80] sm:$0xff] }
  0x71   : > { %694 = vperm.xlu1 %6547, %v480_v9   ;;  %689 = vperm.xlu0 %6546, %v479_v10   ;;  %v1622_v10 = vld [vmem:[%s9543_s4 + $0x98] sm:$0xff] }
  0x75   : > { %704 = vperm.xlu1 %6547, %v482_v11   ;;  %699 = vperm.xlu0 %6546, %v481_v12   ;;  %v1621_v11 = vld [vmem:[%s9543_s4 + $0x90] sm:$0xff] }
  0x79   : > { %714 = vperm.xlu1 %6547, %v484_v13   ;;  %709 = vperm.xlu0 %6546, %v483_v14   ;;  %v6583_v14 = vld [vmem:[%s9542_s3 + $0x4] ss:$16 sps:$4 sm:$0xff]  }
  0x7a   : > { %2659 = vmatprep.mubr.bf16.mxu1 %v6583_v14 }
  0x7d   : > { %724 = vperm.xlu1 %6547, %v486_v15   ;;  %719 = vperm.xlu0 %6546, %v485_v16   ;;  %v1624_v15 = vld [vmem:[%s9543_s4 + $0xa8] sm:$0xff]  ;;  %v1623_v16 = vld [vmem:[%s9543_s4 + $0xa0] sm:$0xff] }
  0x81   : > { %734 = vperm.xlu1 %6547, %v488_v17   ;;  %729 = vperm.xlu0 %6546, %v487_v18  }
  0x85   : > { %744 = vperm.xlu1 %6547, %v490_v19   ;;  %739 = vperm.xlu0 %6546, %v489_v20   ;;  %v1626_v19 = vld [vmem:[%s9543_s4 + $0xb8] sm:$0xff]  ;;  %v1625_v20 = vld [vmem:[%s9543_s4 + $0xb0] sm:$0xff] }
  0x89   : > { %754 = vperm.xlu1 %6547, %v492_v21   ;;  %749 = vperm.xlu0 %6546, %v491_v22  }
  0x8d   : > { %764 = vperm.xlu1 %6547, %v494_v23   ;;  %759 = vperm.xlu0 %6546, %v493_v24   ;;  %v1628_v23 = vld [vmem:[%s9543_s4 + $0xc8] sm:$0xff]  ;;  %v1627_v24 = vld [vmem:[%s9543_s4 + $0xc0] sm:$0xff] }
  0x91   : > { %774 = vperm.xlu1 %6547, %v496_v25   ;;  %769 = vperm.xlu0 %6546, %v495_v26  }
  0x95   : > { %784 = vperm.xlu1 %6547, %v498_v27   ;;  %779 = vperm.xlu0 %6546, %v497_v28   ;;  %v1630_v27 = vld [vmem:[%s9543_s4 + $0xd8] sm:$0xff]  ;;  %v1629_v28 = vld [vmem:[%s9543_s4 + $0xd0] sm:$0xff] }
  0x99   : > { %794 = vperm.xlu1 %6547, %v500_v29   ;;  %789 = vperm.xlu0 %6546, %v499_v30  }
  0x9d   : > { %804 = vperm.xlu1 %6547, %v502_v31   ;;  %799 = vperm.xlu0 %6546, %v501_v32   ;;  %v1632_v31 = vld [vmem:[%s9543_s4 + $0xe8] sm:$0xff]  ;;  %v1631_v32 = vld [vmem:[%s9543_s4 + $0xe0] sm:$0xff] }
  0xa1   : > { %814 = vperm.xlu1 %6547, %v504_v33   ;;  %809 = vperm.xlu0 %6546, %v503_v34  }
  0xa5   : > { %824 = vperm.xlu1 %6547, %v506_v35   ;;  %819 = vperm.xlu0 %6546, %v505_v36   ;;  %v1634_v35 = vld [vmem:[%s9543_s4 + $0xf8] sm:$0xff]  ;;  %v1633_v36 = vld [vmem:[%s9543_s4 + $0xf0] sm:$0xff] }
  0xa8   : > { %v7474_v39 = vpop.permute.xlu1 %519  ;;  %v7476_v40 = vpop.permute.xlu0 %509 }
  0xa9   : > { %1674 = vperm.xlu1 %6547, %v1604_v37   ;;  %1669 = vperm.xlu0 %6546, %v1603_v38  }
  0xac   : > { %v7484_v43 = vpop.permute.xlu1 %524  ;;  %v7486_v44 = vpop.permute.xlu0 %514 }
  0xad   : > { %1684 = vperm.xlu1 %6547, %v1606_v41   ;;  %1679 = vperm.xlu0 %6546, %v1605_v42   ;;  %v1636_v41 = vld [vmem:[%s9543_s4 + $0x108] sm:$0xff]  ;;  %v1635_v42 = vld [vmem:[%s9543_s4 + $0x100] sm:$0xff] }
  0xb0   : > { %v7494_v47 = vpop.permute.xlu1 %534  ;;  %v7496_v48 = vpop.permute.xlu0 %529 }
  0xb1   : > { %1694 = vperm.xlu1 %6547, %v1608_v45   ;;  %1689 = vperm.xlu0 %6546, %v1607_v46  }
  0xb4   : > { %v7504_v51 = vpop.permute.xlu1 %544  ;;  %v7506_v52 = vpop.permute.xlu0 %539 }
  0xb5   : > { %1704 = vperm.xlu1 %6547, %v1610_v49   ;;  %1699 = vperm.xlu0 %6546, %v1609_v50   ;;  %v1638_v49 = vld [vmem:[%s9543_s4 + $0x118] sm:$0xff]  ;;  %v1637_v50 = vld [vmem:[%s9543_s4 + $0x110] sm:$0xff] }
  0xb8   : > { %v7514_v55 = vpop.permute.xlu1 %554  ;;  %v7516_v56 = vpop.permute.xlu0 %549 }
  0xb9   : > { %1714 = vperm.xlu1 %6547, %v1612_v53   ;;  %1709 = vperm.xlu0 %6546, %v1611_v54  }
  0xbc   : > { %v7524_v59 = vpop.permute.xlu1 %564  ;;  %v7526_v60 = vpop.permute.xlu0 %559 }
  0xbd   : > { %1724 = vperm.xlu1 %6547, %v1614_v57   ;;  %1719 = vperm.xlu0 %6546, %v1613_v58   ;;  %v1640_v57 = vld [vmem:[%s9543_s4 + $0x128] sm:$0xff]  ;;  %v1639_v58 = vld [vmem:[%s9543_s4 + $0x120] sm:$0xff] }
  0xc0   : > { %v7534_v63 = vpop.permute.xlu1 %574  ;;  %v7536_v0 = vpop.permute.xlu0 %569 }
  0xc1   : > { %1734 = vperm.xlu1 %6547, %v1616_v61   ;;  %1729 = vperm.xlu0 %6546, %v1615_v62  }
  0xc4   : > { %v7544_v3 = vpop.permute.xlu1 %584  ;;  %v7546_v5 = vpop.permute.xlu0 %579 }
  0xc5   : > { %1744 = vperm.xlu1 %6547, %v1618_v1   ;;  %1739 = vperm.xlu0 %6546, %v1617_v2   ;;  %v1642_v1 = vld [vmem:[%s9543_s4 + $0x138] sm:$0xff]  ;;  %v1641_v2 = vld [vmem:[%s9543_s4 + $0x130] sm:$0xff] }
  0xc8   : > { %v7554_v8 = vpop.permute.xlu1 %594  ;;  %v7556_v9 = vpop.permute.xlu0 %589 }
  0xc9   : > { %1754 = vperm.xlu1 %6547, %v1620_v6   ;;  %1749 = vperm.xlu0 %6546, %v1619_v7  }
  0xcc   : > { %v7564_v12 = vpop.permute.xlu1 %604  ;;  %v7566_v13 = vpop.permute.xlu0 %599 }
  0xcd   : > { %1764 = vperm.xlu1 %6547, %v1622_v10   ;;  %1759 = vperm.xlu0 %6546, %v1621_v11   ;;  %v1644_v10 = vld [vmem:[%s9543_s4 + $0x148] sm:$0xff]  ;;  %v1643_v11 = vld [vmem:[%s9543_s4 + $0x140] sm:$0xff] }
  0xd0   : > { %v7577_v17 = vpop.permute.xlu1 %614  ;;  %v7579_v18 = vpop.permute.xlu0 %609 }
  0xd1   : > { %1774 = vperm.xlu1 %6547, %v1624_v15   ;;  %1769 = vperm.xlu0 %6546, %v1623_v16   ;;  %v1646_v16 = vld [vmem:[%s9543_s4 + $0x158] sm:$0xff] }
  0xd4   : > { %v7587_v21 = vpop.permute.xlu1 %624  ;;  %v7589_v22 = vpop.permute.xlu0 %619 }
  0xd5   : > { %1784 = vperm.xlu1 %6547, %v1626_v19   ;;  %1779 = vperm.xlu0 %6546, %v1625_v20   ;;  %v1645_v19 = vld [vmem:[%s9543_s4 + $0x150] sm:$0xff] }
  0xd8   : > { %v7597_v25 = vpop.permute.xlu1 %634  ;;  %v7599_v26 = vpop.permute.xlu0 %629 }
  0xd9   : > { %1794 = vperm.xlu1 %6547, %v1628_v23   ;;  %1789 = vperm.xlu0 %6546, %v1627_v24   ;;  %v1648_v24 = vld [vmem:[%s9543_s4 + $0x168] sm:$0xff] }
  0xdc   : > { %v7607_v29 = vpop.permute.xlu1 %644  ;;  %v7609_v30 = vpop.permute.xlu0 %639 }
  0xdd   : > { %1804 = vperm.xlu1 %6547, %v1630_v27   ;;  %1799 = vperm.xlu0 %6546, %v1629_v28   ;;  %v1647_v27 = vld [vmem:[%s9543_s4 + $0x160] sm:$0xff] }
  0xe0   : > { %v7617_v33 = vpop.permute.xlu1 %654  ;;  %v7619_v34 = vpop.permute.xlu0 %649 }
  0xe1   : > { %9553 = vst [vmem:[#allocation7_spill] sm:$0xff] %v7617_v33  ;;  %1814 = vperm.xlu1 %6547, %v1632_v31   ;;  %1809 = vperm.xlu0 %6546, %v1631_v32   ;;  %v1650_v32 = vld [vmem:[%s9543_s4 + $0x178] sm:$0xff] }
  0xe4   : > { %v7627_v37 = vpop.permute.xlu1 %664  ;;  %v7629_v38 = vpop.permute.xlu0 %659 }
  0xe5   : > { %1824 = vperm.xlu1 %6547, %v1634_v35   ;;  %1819 = vperm.xlu0 %6546, %v1633_v36   ;;  %v1649_v35 = vld [vmem:[%s9543_s4 + $0x170] sm:$0xff] }
  0xe8   : > { %v7637_v45 = vpop.permute.xlu1 %674  ;;  %v670_v46 = vpop.permute.xlu0 %669 }
  0xe9   : > { %1834 = vperm.xlu1 %6547, %v1636_v41   ;;  %1829 = vperm.xlu0 %6546, %v1635_v42  }
  0xec   : > { %v685_v53 = vpop.permute.xlu1 %684  ;;  %v680_v54 = vpop.permute.xlu0 %679 }
  0xed   : > { %1844 = vperm.xlu1 %6547, %v1638_v49   ;;  %1839 = vperm.xlu0 %6546, %v1637_v50  }
  0xf0   : > { %v7651_v61 = vpop.permute.xlu1 %694  ;;  %v7653_v62 = vpop.permute.xlu0 %689 }
  0xf1   : > { %1854 = vperm.xlu1 %6547, %v1640_v57   ;;  %1849 = vperm.xlu0 %6546, %v1639_v58  }
  0xf4   : > { %v7661_v6 = vpop.permute.xlu1 %704  ;;  %v7663_v7 = vpop.permute.xlu0 %699 }
  0xf5   : > { %1864 = vperm.xlu1 %6547, %v1642_v1   ;;  %1859 = vperm.xlu0 %6546, %v1641_v2   ;;  %v1652_v2 = vld [vmem:[%s9543_s4 + $0x188] sm:$0xff] }
  0xf8   : > { %v7671_v14 = vpop.permute.xlu1 %714  ;;  %v7673_v15 = vpop.permute.xlu0 %709 }
  0xf9   : > { %1874 = vperm.xlu1 %6547, %v1644_v10   ;;  %1869 = vperm.xlu0 %6546, %v1643_v11   ;;  %v1651_v10 = vld [vmem:[%s9543_s4 + $0x180] sm:$0xff] }
  0xfc   : > { %v7681_v20 = vpop.permute.xlu1 %724  ;;  %v7683_v23 = vpop.permute.xlu0 %719 }
  0xfd   : > { %1884 = vperm.xlu1 %6547, %v1646_v16   ;;  %1879 = vperm.xlu0 %6546, %v1645_v19  }
 0x100   : > { %v7691_v28 = vpop.permute.xlu1 %734  ;;  %v7693_v31 = vpop.permute.xlu0 %729 }
 0x101   : > { %1894 = vperm.xlu1 %6547, %v1648_v24   ;;  %1889 = vperm.xlu0 %6546, %v1647_v27  }
 0x102   : > { %v6058_v42 = vpop.f32.mrb[0].mxu0  ;;  %v6090_v49 = vpop.f32.mrb[0].mxu1 }
 0x103   : > { %v1133_v50 = vadd.f32 %v6058_v42, %v7474_v39  ;;  %v1261_v57 = vadd.f32 %v6090_v49, %v680_v54  ;;  %v1124_v58 = vpop.f32.mrb[1].mxu0  ;;  %v1252_v1 = vpop.f32.mrb[1].mxu1 }
 0x104   : > { %v7701_v36 = vpop.permute.xlu1 %744  ;;  %v7703_v41 = vpop.permute.xlu0 %739  ;;  %v1125_v11 = vadd.f32 %v1124_v58, %v7476_v40  ;;  %v1253_v16 = vadd.f32 %v1252_v1, %v670_v46 }
 0x105   : > { %1904 = vperm.xlu1 %6547, %v1650_v32   ;;  %1899 = vperm.xlu0 %6546, %v1649_v35   ;;  %v6059_v19 = vpop.f32.mrb[2].mxu0  ;;  %v6091_v24 = vpop.f32.mrb[2].mxu1  ;;  %v1381_v33 = vmax.f32 %v1133_v50, 0.0  ;;  %v1413_v40 = vmax.f32 %v1261_v57, 0.0 }
 0x106   : > { %v1136_v27 = vadd.f32 %v6059_v19, %v7484_v43  ;;  %v1264_v32 = vadd.f32 %v6091_v24, %v685_v53  ;;  %v1127_v39 = vpop.f32.mrb[3].mxu0  ;;  %v1255_v54 = vpop.f32.mrb[3].mxu1  ;;  %v1654_v43 = vld [vmem:[%s9543_s4 + $0x198] sm:$0xff]  ;;  %v1379_v53 = vmax.f32 %v1125_v11, 0.0  ;;  %v1656_v11 = vld [vmem:[%s9543_s4 + $0x1a8] sm:$0xff] }
 0x107   : > { %v1128_v35 = vadd.f32 %v1127_v39, %v7486_v44  ;;  %v1256_v42 = vadd.f32 %v1255_v54, %v7637_v45  ;;  %v1653_v44 = vld [vmem:[%s9543_s4 + $0x190] sm:$0xff]  ;;  %v1411_v45 = vmax.f32 %v1253_v16, 0.0 }
 0x108   : > { %v7716_v49 = vpop.permute.xlu1 %754  ;;  %v7718_v4 = vpop.permute.xlu0 %749  ;;  %v1382_v46 = vmax.f32 %v1136_v27, 0.0  ;;  %v1414_v58 = vmax.f32 %v1264_v32, 0.0 }
 0x109   : > { %1914 = vperm.xlu1 %6547, %v1652_v2   ;;  %1909 = vperm.xlu0 %6546, %v1651_v10   ;;  %v1380_v1 = vmax.f32 %v1128_v35, 0.0  ;;  %v1412_v19 = vmax.f32 %v1256_v42, 0.0 }
 0x10a   : > { %v1572_v24 = vpack.c.bf16 %v1382_v46, %v1381_v33  ;;  %v7726_v39 = vpack.c.bf16 %v1414_v58, %v1413_v40  ;;  %v6062_v27 = vpop.f32.mrb[4].mxu0  ;;  %v6094_v32 = vpop.f32.mrb[4].mxu1  ;;  %v1655_v33 = vld [vmem:[%s9543_s4 + $0x1a0] sm:$0xff] }
 0x10b   : > { %v1571_v2 = vpack.c.bf16 %v1380_v1, %v1379_v53  ;;  %v7728_v50 = vpack.c.bf16 %v1412_v19, %v1411_v45  ;;  %v1149_v16 = vadd.f32 %v6062_v27, %v7506_v52  ;;  %v1277_v54 = vadd.f32 %v6094_v32, %v7663_v7  ;;  %v1140_v35 = vpop.f32.mrb[5].mxu0  ;;  %v1268_v42 = vpop.f32.mrb[5].mxu1 }
 0x10c   : > { %9554 = vst [vmem:[#allocation8_spill] sm:$0xff] %v7726_v39  ;;  %v7730_v57 = vpop.permute.xlu1 %764  ;;  %v7732_v10 = vpop.permute.xlu0 %759  ;;  %v1141_v40 = vadd.f32 %v1140_v35, %v7496_v48  ;;  %v1269_v46 = vadd.f32 %v1268_v42, %v7653_v62  ;;  %v1658_v62 = vld [vmem:[%s9543_s4 + $0x1b8] sm:$0xff] }
 0x10d   : > { %1924 = vperm.xlu1 %6547, %v1654_v43   ;;  %1919 = vperm.xlu0 %6546, %v1653_v44   ;;  %v6063_v58 = vpop.f32.mrb[6].mxu0  ;;  %v6095_v43 = vpop.f32.mrb[6].mxu1  ;;  %v9555_v44 = vmov 0   ;;  %v1417_v27 = vmax.f32 %v1277_v54, 0.0 }
 0x10e   : > { %2628 = vmatpush1.bf16.msra.mxu1 %v1571_v2  ;;  %v1152_v53 = vadd.f32 %v6063_v58, %v7504_v51  ;;  %v1280_v45 = vadd.f32 %v6095_v43, %v7661_v6  ;;  %v1143_v1 = vpop.f32.mrb[7].mxu0  ;;  %v1271_v19 = vpop.f32.mrb[7].mxu1  ;;  %v1657_v51 = vld [vmem:[%s9543_s4 + $0x1b0] sm:$0xff]  ;;  %v1385_v6 = vmax.f32 %v1149_v16, 0.0 }
 0x10f   : > { %2629 = vmatprep.subr.bf16.mxu1 %v9555_v44  ;;  %v1144_v52 = vadd.f32 %v1143_v1, %v7494_v47  ;;  %v1272_v7 = vadd.f32 %v1271_v19, %v7651_v61  ;;  %v1383_v47 = vmax.f32 %v1141_v40, 0.0  ;;  %v1659_v40 = vld [vmem:[%s9543_s4 + $0x1c0] sm:$0xff] }
 0x110   : > { %v7749_v2 = vpop.permute.xlu1 %774  ;;  %v7751_v48 = vpop.permute.xlu0 %769  ;;  %v1386_v32 = vmax.f32 %v1152_v53, 0.0 }
 0x111   : > { %1934 = vperm.xlu1 %6547, %v1656_v11   ;;  %1929 = vperm.xlu0 %6546, %v1655_v33   ;;  %v1418_v11 = vmax.f32 %v1280_v45, 0.0  ;;  %v1415_v33 = vmax.f32 %v1269_v46, 0.0  ;;  %v1384_v61 = vmax.f32 %v1144_v52, 0.0  ;;  %v1416_v35 = vmax.f32 %v1272_v7, 0.0 }
 0x112   : > { %2630 = vmatpush1.bf16.msra.mxu1 %v1572_v24  ;;  %v1574_v42 = vpack.c.bf16 %v1386_v32, %v1385_v6  ;;  %v6066_v43 = vpop.f32.mrb[8].mxu0  ;;  %v6098_v1 = vpop.f32.mrb[8].mxu1  ;;  %v1660_v24 = vld [vmem:[%s9543_s4 + $0x1c8] sm:$0xff] }
 0x113   : > { %2631 = vmatprep.subr.bf16.mxu1 %v9555_v44  ;;  %v7760_v58 = vpack.c.bf16 %v1418_v11, %v1417_v27  ;;  %v1573_v19 = vpack.c.bf16 %v1384_v61, %v1383_v47  ;;  %v7762_v39 = vpack.c.bf16 %v1416_v35, %v1415_v33  ;;  %v1165_v46 = vadd.f32 %v6066_v43, %v7526_v60  ;;  %v1156_v45 = vpop.f32.mrb[9].mxu0  ;;  %v1284_v52 = vpop.f32.mrb[9].mxu1 }
 0x114   : > { %v7764_v16 = vpop.permute.xlu1 %784  ;;  %v7766_v54 = vpop.permute.xlu0 %779  ;;  %v1293_v53 = vadd.f32 %v6098_v1, %v7683_v23  ;;  %v1157_v7 = vadd.f32 %v1156_v45, %v7516_v56 }
 0x115   : > { %1944 = vperm.xlu1 %6547, %v1658_v62   ;;  %1939 = vperm.xlu0 %6546, %v1657_v51   ;;  %v1285_v62 = vadd.f32 %v1284_v52, %v7673_v15  ;;  %v6067_v51 = vpop.f32.mrb[10].mxu0  ;;  %v6099_v6 = vpop.f32.mrb[10].mxu1  ;;  %v1661_v15 = vld [vmem:[%s9543_s4 + $0x1d0] sm:$0xff] }
 0x116   : > { %2632 = vmatpush1.bf16.msra.mxu1 %v1573_v19  ;;  %v1168_v27 = vadd.f32 %v6067_v51, %v7524_v59  ;;  %v1296_v32 = vadd.f32 %v6099_v6, %v7681_v20  ;;  %v1159_v11 = vpop.f32.mrb[11].mxu0  ;;  %v1287_v47 = vpop.f32.mrb[11].mxu1  ;;  %v1662_v59 = vld [vmem:[%s9543_s4 + $0x1d8] sm:$0xff]  ;;  %v1389_v20 = vmax.f32 %v1165_v46, 0.0  ;;  %v1421_v61 = vmax.f32 %v1293_v53, 0.0  ;;  %v1663_v53 = vld [vmem:[%s9543_s4 + $0x1e0] sm:$0xff] }
 0x117   : > { %v1160_v60 = vadd.f32 %v1159_v11, %v7514_v55  ;;  %v1288_v23 = vadd.f32 %v1287_v47, %v7671_v14  ;;  %2633 = vmatprep.subr.bf16.mxu1 %v9555_v44  ;;  %v1387_v43 = vmax.f32 %v1157_v7, 0.0  ;;  %v1419_v14 = vmax.f32 %v1285_v62, 0.0 }
 0x118   : > { %v7782_v33 = vpop.permute.xlu1 %794  ;;  %v7784_v56 = vpop.permute.xlu0 %789  ;;  %v1390_v35 = vmax.f32 %v1168_v27, 0.0  ;;  %v1422_v55 = vmax.f32 %v1296_v32, 0.0 }
 0x119   : > { %1954 = vperm.xlu1 %6547, %v1660_v24   ;;  %1949 = vperm.xlu0 %6546, %v1659_v40   ;;  %v1388_v1 = vmax.f32 %v1160_v60, 0.0  ;;  %v1420_v19 = vmax.f32 %v1288_v23, 0.0 }
 0x11a   : > { %2634 = vmatpush1.bf16.msra.mxu1 %v1574_v42  ;;  %v1576_v24 = vpack.c.bf16 %v1390_v35, %v1389_v20  ;;  %v7793_v40 = vpack.c.bf16 %v1422_v55, %v1421_v61  ;;  %v6070_v45 = vpop.f32.mrb[12].mxu0  ;;  %v6102_v52 = vpop.f32.mrb[12].mxu1  ;;  %v1664_v42 = vld [vmem:[%s9543_s4 + $0x1e8] sm:$0xff] }
 0x11b   : > { %v1575_v51 = vpack.c.bf16 %v1388_v1, %v1387_v43  ;;  %v7795_v6 = vpack.c.bf16 %v1420_v19, %v1419_v14  ;;  %2635 = vmatprep.subr.bf16.mxu1 %v9555_v44  ;;  %v1181_v7 = vadd.f32 %v6070_v45, %v7546_v5  ;;  %v1309_v62 = vadd.f32 %v6102_v52, %v7703_v41  ;;  %v1172_v27 = vpop.f32.mrb[13].mxu0  ;;  %v1300_v32 = vpop.f32.mrb[13].mxu1 }
 0x11c   : > { %v7797_v11 = vpop.permute.xlu1 %804  ;;  %v7799_v46 = vpop.permute.xlu0 %799  ;;  %v1173_v47 = vadd.f32 %v1172_v27, %v7536_v0  ;;  %v1301_v60 = vadd.f32 %v1300_v32, %v7693_v31  ;;  %v1665_v31 = vld [vmem:[%s9543_s4 + $0x1f0] sm:$0xff] }
 0x11d   : > { %1964 = vperm.xlu1 %6547, %v1662_v59   ;;  %1959 = vperm.xlu0 %6546, %v1661_v15   ;;  %v6071_v23 = vpop.f32.mrb[14].mxu0  ;;  %v6103_v59 = vpop.f32.mrb[14].mxu1  ;;  %v1425_v43 = vmax.f32 %v1309_v62, 0.0  ;;  %v3429_v62 = vld [vmem:[%s9545_s6] sm:$0xff] }
 0x11e   : > { %2636 = vmatpush1.bf16.msra.mxu1 %v1575_v51  ;;  %v1184_v15 = vadd.f32 %v6071_v23, %v7544_v3  ;;  %v1312_v20 = vadd.f32 %v6103_v59, %v7701_v36  ;;  %v1175_v61 = vpop.f32.mrb[15].mxu0  ;;  %v1303_v35 = vpop.f32.mrb[15].mxu1  ;;  %v1666_v3 = vld [vmem:[%s9543_s4 + $0x1f8] sm:$0xff]  ;;  %v1393_v36 = vmax.f32 %v1181_v7, 0.0  ;;  %v1391_v1 = vmax.f32 %v1173_v47, 0.0 }
 0x11f   : > { %v1176_v5 = vadd.f32 %v1175_v61, %v7534_v63  ;;  %v1304_v41 = vadd.f32 %v1303_v35, %v7691_v28  ;;  %2637 = vmatprep.subr.bf16.mxu1 %v9555_v44  ;;  %v1423_v28 = vmax.f32 %v1301_v60, 0.0 }
 0x120   : > { %v7816_v55 = vpop.permute.xlu1 %814  ;;  %v7818_v0 = vpop.permute.xlu0 %809  ;;  %v1394_v14 = vmax.f32 %v1184_v15, 0.0  ;;  %v1426_v63 = vmax.f32 %v1312_v20, 0.0 }
 0x121   : > { %1974 = vperm.xlu1 %6547, %v1664_v42   ;;  %1969 = vperm.xlu0 %6546, %v1663_v53   ;;  %v1392_v19 = vmax.f32 %v1176_v5, 0.0  ;;  %v1424_v45 = vmax.f32 %v1304_v41, 0.0 }
 0x122   : > { %2638 = vmatpush1.bf16.msra.mxu1 %v1576_v24  ;;  %v1578_v52 = vpack.c.bf16 %v1394_v14, %v1393_v36  ;;  %v7827_v51 = vpack.c.bf16 %v1426_v63, %v1425_v43  ;;  %v6074_v42 = vpop.f32.mrb[16].mxu0  ;;  %v6106_v53 = vpop.f32.mrb[16].mxu1  ;;  %v3430_v24 = vld [vmem:[%s9545_s6 + $0x8] sm:$0xff] }
 0x123   : > { %v1577_v27 = vpack.c.bf16 %v1392_v19, %v1391_v1  ;;  %v7829_v32 = vpack.c.bf16 %v1424_v45, %v1423_v28  ;;  %2639 = vmatprep.subr.bf16.mxu1 %v9555_v44  ;;  %v1197_v47 = vadd.f32 %v6074_v42, %v7566_v13  ;;  %v1325_v60 = vadd.f32 %v6106_v53, %v7732_v10  ;;  %v1188_v59 = vpop.f32.mrb[17].mxu0  ;;  %v1316_v15 = vpop.f32.mrb[17].mxu1 }
 0x124   : > { %v7831_v23 = vpop.permute.xlu1 %824  ;;  %v7833_v7 = vpop.permute.xlu0 %819  ;;  %v1189_v20 = vadd.f32 %v1188_v59, %v7556_v9  ;;  %v1317_v61 = vadd.f32 %v1316_v15, %v7718_v4  ;;  %v3432_v4 = vld [vmem:[%s9545_s6 + $0x18] sm:$0xff] }
 0x125   : > { %1984 = vperm.xlu1 %6547, %v1666_v3   ;;  %1979 = vperm.xlu0 %6546, %v1665_v31   ;;  %v6075_v35 = vpop.f32.mrb[18].mxu0  ;;  %v6107_v5 = vpop.f32.mrb[18].mxu1  ;;  %v1429_v14 = vmax.f32 %v1325_v60, 0.0  ;;  %v3433_v60 = vld [vmem:[%s9545_s6 + $0x20] sm:$0xff] }
 0x126   : > { %2640 = vmatpush1.bf16.msra.mxu1 %v1577_v27  ;;  %v1200_v41 = vadd.f32 %v6075_v35, %v7564_v12  ;;  %v1328_v3 = vadd.f32 %v6107_v5, %v7730_v57  ;;  %v1191_v31 = vpop.f32.mrb[19].mxu0  ;;  %v1319_v36 = vpop.f32.mrb[19].mxu1  ;;  %v3431_v12 = vld [vmem:[%s9545_s6 + $0x10] sm:$0xff]  ;;  %v1397_v57 = vmax.f32 %v1197_v47, 0.0  ;;  %v1395_v1 = vmax.f32 %v1189_v20, 0.0 }
 0x127   : > { %v1192_v13 = vadd.f32 %v1191_v31, %v7554_v8  ;;  %v1320_v10 = vadd.f32 %v1319_v36, %v7716_v49  ;;  %2641 = vmatprep.subr.bf16.mxu1 %v9555_v44  ;;  %v1427_v49 = vmax.f32 %v1317_v61, 0.0 }
 0x128   : > { %v7850_v43 = vpop.permute.xlu1 %1674  ;;  %v7852_v9 = vpop.permute.xlu0 %1669  ;;  %v1398_v63 = vmax.f32 %v1200_v41, 0.0  ;;  %v1430_v8 = vmax.f32 %v1328_v3, 0.0 }
 0x129   : > { %3500 = vperm.xlu1 %6547, %v3430_v24   ;;  %3495 = vperm.xlu0 %6546, %v3429_v62   ;;  %v1396_v28 = vmax.f32 %v1192_v13, 0.0  ;;  %v1428_v19 = vmax.f32 %v1320_v10, 0.0 }
 0x12a   : > { %2642 = vmatpush1.bf16.msra.mxu1 %v1578_v52  ;;  %v1580_v45 = vpack.c.bf16 %v1398_v63, %v1397_v57  ;;  %v7861_v42 = vpack.c.bf16 %v1430_v8, %v1429_v14  ;;  %v6078_v53 = vpop.f32.mrb[20].mxu0  ;;  %v6110_v27 = vpop.f32.mrb[20].mxu1  ;;  %v3434_v52 = vld [vmem:[%s9545_s6 + $0x28] sm:$0xff] }
 0x12b   : > { %v1579_v24 = vpack.c.bf16 %v1396_v28, %v1395_v1  ;;  %v7863_v62 = vpack.c.bf16 %v1428_v19, %v1427_v49  ;;  %2643 = vmatprep.subr.bf16.mxu1 %v9555_v44  ;;  %v1213_v15 = vadd.f32 %v6078_v53, %v7589_v22  ;;  %v1341_v20 = vadd.f32 %v6110_v27, %v7766_v54  ;;  %v1204_v61 = vpop.f32.mrb[21].mxu0  ;;  %v1332_v35 = vpop.f32.mrb[21].mxu1 }
 0x12c   : > { %v7865_v59 = vpop.permute.xlu1 %1684  ;;  %v7867_v47 = vpop.permute.xlu0 %1679  ;;  %v1205_v5 = vadd.f32 %v1204_v61, %v7579_v18  ;;  %v1333_v41 = vadd.f32 %v1332_v35, %v7751_v48  ;;  %v3435_v48 = vld [vmem:[%s9545_s6 + $0x30] sm:$0xff] }
 0x12d   : > { %3510 = vperm.xlu1 %6547, %v3432_v4   ;;  %3505 = vperm.xlu0 %6546, %v3431_v12   ;;  %v6079_v3 = vpop.f32.mrb[22].mxu0  ;;  %v6111_v31 = vpop.f32.mrb[22].mxu1  ;;  %v1433_v57 = vmax.f32 %v1341_v20, 0.0 }
 0x12e   : > { %2644 = vmatpush1.bf16.msra.mxu1 %v1579_v24  ;;  %v1216_v36 = vadd.f32 %v6079_v3, %v7587_v21  ;;  %v1344_v13 = vadd.f32 %v6111_v31, %v7764_v16  ;;  %v1207_v10 = vpop.f32.mrb[23].mxu0  ;;  %v1335_v4 = vpop.f32.mrb[23].mxu1  ;;  %v3436_v21 = vld [vmem:[%s9545_s6 + $0x38] sm:$0xff]  ;;  %v1401_v16 = vmax.f32 %v1213_v15, 0.0  ;;  %v1399_v63 = vmax.f32 %v1205_v5, 0.0  ;;  %v3437_v15 = vld [vmem:[%s9545_s6 + $0x40] sm:$0xff] }
 0x12f   : > { %v1208_v22 = vadd.f32 %v1207_v10, %v7577_v17  ;;  %v1336_v54 = vadd.f32 %v1335_v4, %v7749_v2  ;;  %2645 = vmatprep.subr.bf16.mxu1 %v9555_v44  ;;  %v1431_v2 = vmax.f32 %v1333_v41, 0.0 }
 0x130   : > { %v7884_v12 = vpop.permute.xlu1 %1694  ;;  %v7886_v18 = vpop.permute.xlu0 %1689  ;;  %v1402_v14 = vmax.f32 %v1216_v36, 0.0  ;;  %v1434_v17 = vmax.f32 %v1344_v13, 0.0 }
 0x131   : > { %3520 = vperm.xlu1 %6547, %v3434_v52   ;;  %3515 = vperm.xlu0 %6546, %v3433_v60   ;;  %v1400_v8 = vmax.f32 %v1208_v22, 0.0  ;;  %v1432_v1 = vmax.f32 %v1336_v54, 0.0 }
 0x132   : > { %2646 = vmatpush1.bf16.msra.mxu1 %v1580_v45  ;;  %v1582_v49 = vpack.c.bf16 %v1402_v14, %v1401_v16  ;;  %v7895_v28 = vpack.c.bf16 %v1434_v17, %v1433_v57  ;;  %v6082_v19 = vpop.f32.mrb[24].mxu0  ;;  %v6114_v53 = vpop.f32.mrb[24].mxu1  ;;  %v3438_v45 = vld [vmem:[%s9545_s6 + $0x48] sm:$0xff] }
 0x133   : > { %v1581_v27 = vpack.c.bf16 %v1400_v8, %v1399_v63  ;;  %v7897_v24 = vpack.c.bf16 %v1432_v1, %v1431_v2  ;;  %2647 = vmatprep.subr.bf16.mxu1 %v9555_v44  ;;  %v1229_v20 = vadd.f32 %v6082_v19, %v7609_v30  ;;  %v1357_v61 = vadd.f32 %v6114_v53, %v7799_v46  ;;  %v1220_v35 = vpop.f32.mrb[25].mxu0  ;;  %v1348_v5 = vpop.f32.mrb[25].mxu1 }
 0x134   : > { %v7899_v52 = vpop.permute.xlu1 %1704  ;;  %v7901_v60 = vpop.permute.xlu0 %1699  ;;  %v1221_v41 = vadd.f32 %v1220_v35, %v7599_v26  ;;  %v1349_v3 = vadd.f32 %v1348_v5, %v7784_v56  ;;  %v3439_v56 = vld [vmem:[%s9545_s6 + $0x50] sm:$0xff] }
 0x135   : > { %3530 = vperm.xlu1 %6547, %v3436_v21   ;;  %3525 = vperm.xlu0 %6546, %v3435_v48   ;;  %v6083_v31 = vpop.f32.mrb[26].mxu0  ;;  %v6115_v36 = vpop.f32.mrb[26].mxu1  ;;  %v1437_v21 = vmax.f32 %v1357_v61, 0.0 }
 0x136   : > { %2648 = vmatpush1.bf16.msra.mxu1 %v1581_v27  ;;  %v1232_v13 = vadd.f32 %v6083_v31, %v7607_v29  ;;  %v1360_v10 = vadd.f32 %v6115_v36, %v7797_v11  ;;  %v1223_v4 = vpop.f32.mrb[27].mxu0  ;;  %v1351_v22 = vpop.f32.mrb[27].mxu1  ;;  %v3440_v29 = vld [vmem:[%s9545_s6 + $0x58] sm:$0xff]  ;;  %v1405_v11 = vmax.f32 %v1229_v20, 0.0  ;;  %v1403_v16 = vmax.f32 %v1221_v41, 0.0 }
 0x137   : > { %v1224_v30 = vadd.f32 %v1223_v4, %v7597_v25  ;;  %v1352_v46 = vadd.f32 %v1351_v22, %v7782_v33  ;;  %2649 = vmatprep.subr.bf16.mxu1 %v9555_v44  ;;  %v1435_v33 = vmax.f32 %v1349_v3, 0.0 }
 0x138   : > { %v7918_v54 = vpop.permute.xlu1 %1714  ;;  %v7920_v26 = vpop.permute.xlu0 %1709  ;;  %v1406_v48 = vmax.f32 %v1232_v13, 0.0  ;;  %v1438_v25 = vmax.f32 %v1360_v10, 0.0 }
 0x139   : > { %3540 = vperm.xlu1 %6547, %v3438_v45   ;;  %3535 = vperm.xlu0 %6546, %v3437_v15   ;;  %v1404_v57 = vmax.f32 %v1224_v30, 0.0  ;;  %v1436_v14 = vmax.f32 %v1352_v46, 0.0  ;;  %v3441_v45 = vld [vmem:[%s9545_s6 + $0x60] sm:$0xff] }
 0x13a   : > { %2650 = vmatpush1.bf16.msra.mxu1 %v1582_v49  ;;  %v1584_v17 = vpack.c.bf16 %v1406_v48, %v1405_v11  ;;  %v7929_v63 = vpack.c.bf16 %v1438_v25, %v1437_v21  ;;  %v6086_v2 = vpop.f32.mrb[28].mxu0  ;;  %v6118_v8 = vpop.f32.mrb[28].mxu1  ;;  %v3442_v49 = vld [vmem:[%s9545_s6 + $0x68] sm:$0xff] }
 0x13b   : > { %v1583_v1 = vpack.c.bf16 %v1404_v57, %v1403_v16  ;;  %v7931_v19 = vpack.c.bf16 %v1436_v14, %v1435_v33  ;;  %2651 = vmatprep.subr.bf16.mxu1 %v9555_v44  ;;  %v1245_v15 = vadd.f32 %v6086_v2, %v7629_v38  ;;  %v1373_v20 = vadd.f32 %v6118_v8, %v7833_v7  ;;  %v1236_v61 = vpop.f32.mrb[29].mxu0  ;;  %v1364_v35 = vpop.f32.mrb[29].mxu1  ;;  %v9556_v38 = vld [vmem:[#allocation7_spill] sm:$0xff]  ;;  %v3446_v8 = vld [vmem:[%s9545_s6 + $0x88] sm:$0xff] }
 0x13c   : > { %v7933_v53 = vpop.permute.xlu1 %1724  ;;  %v7935_v27 = vpop.permute.xlu0 %1719  ;;  %v1237_v5 = vadd.f32 %v1236_v61, %v7619_v34  ;;  %v1365_v41 = vadd.f32 %v1364_v35, %v7818_v0  ;;  %v3443_v0 = vld [vmem:[%s9545_s6 + $0x70] sm:$0xff] }
 0x13d   : > { %3550 = vperm.xlu1 %6547, %v3440_v29   ;;  %3545 = vperm.xlu0 %6546, %v3439_v56   ;;  %v6087_v3 = vpop.f32.mrb[30].mxu0  ;;  %v6119_v31 = vpop.f32.mrb[30].mxu1  ;;  %v1441_v46 = vmax.f32 %v1373_v20, 0.0  ;;  %v6581_v20 = vld [vmem:[%s9542_s3] ss:$16 sps:$4 sm:$0xff]  }
 0x13e   : > { %2652 = vmatpush1.bf16.msra.mxu1 %v1583_v1  ;;  %v1248_v36 = vadd.f32 %v6087_v3, %v7627_v37  ;;  %v1376_v13 = vadd.f32 %v6119_v31, %v7831_v23  ;;  %v1239_v10 = vpop.f32.mrb[31].mxu0  ;;  %v1367_v4 = vpop.f32.mrb[31].mxu1  ;;  %v3444_v37 = vld [vmem:[%s9545_s6 + $0x78] sm:$0xff]  ;;  %v1409_v23 = vmax.f32 %v1245_v15, 0.0  ;;  %v1407_v11 = vmax.f32 %v1237_v5, 0.0  ;;  %v3447_v15 = vld [vmem:[%s9545_s6 + $0x90] sm:$0xff] }
 0x13f   : > { %v1240_v22 = vadd.f32 %v1239_v10, %v9556_v38  ;;  %v1368_v7 = vadd.f32 %v1367_v4, %v7816_v55  ;;  %2653 = vmatprep.subr.bf16.mxu1 %v9555_v44  ;;  %v1439_v55 = vmax.f32 %v1365_v41, 0.0  ;;  %v6584_v61 = vld [vmem:[%s9542_s3 + $0x24] ss:$16 sps:$4 sm:$0xff]   ;;  %v3450_v41 = vld [vmem:[%s9545_s6 + $0xa8] sm:$0xff]  ;;  %v9557_v4 = vld [vmem:[#allocation8_spill] sm:$0xff] }
 0x140   : > { %v7952_v30 = vpop.permute.xlu1 %1734  ;;  %v7954_v34 = vpop.permute.xlu0 %1729  ;;  %v1410_v29 = vmax.f32 %v1248_v36, 0.0  ;;  %v1442_v56 = vmax.f32 %v1376_v13, 0.0  ;;  %v3449_v3 = vld [vmem:[%s9545_s6 + $0xa0] sm:$0xff]  ;;  %v3452_v13 = vld [vmem:[%s9545_s6 + $0xb8] sm:$0xff]  ;;  %v3451_v10 = vld [vmem:[%s9545_s6 + $0xb0] sm:$0xff] }
 0x141   : > { %3560 = vperm.xlu1 %6547, %v3442_v49   ;;  %3555 = vperm.xlu0 %6546, %v3441_v45   ;;  %v1408_v21 = vmax.f32 %v1240_v22, 0.0  ;;  %v1440_v48 = vmax.f32 %v1368_v7, 0.0  ;;  %v3448_v45 = vld [vmem:[%s9545_s6 + $0x98] sm:$0xff]  ;;  %v6587_v38 = vld [vmem:[%s9542_s3 + $0x44] ss:$16 sps:$4 sm:$0xff]  }
 0x142   : > { %2654 = vmatpush1.bf16.msra.mxu1 %v1584_v17  ;;  %v1586_v25 = vpack.c.bf16 %v1410_v29, %v1409_v23  ;;  %v7963_v16 = vpack.c.bf16 %v1442_v56, %v1441_v46  ;;  %v3445_v17 = vld [vmem:[%s9545_s6 + $0x80] sm:$0xff]  ;;  %v3456_v29 = vld [vmem:[%s9545_s6 + $0xd8] sm:$0xff]  ;;  %v3455_v56 = vld [vmem:[%s9545_s6 + $0xd0] sm:$0xff] }
 0x143   : > { %v1585_v33 = vpack.c.bf16 %v1408_v21, %v1407_v11  ;;  %v7965_v57 = vpack.c.bf16 %v1440_v48, %v1439_v55  ;;  %2655 = vmatprep.subr.bf16.mxu1 %v9555_v44  ;;  %v6590_v11 = vld [vmem:[%s9542_s3 + $0x64] ss:$16 sps:$4 sm:$0xff]   ;;  %v3458_v55 = vld [vmem:[%s9545_s6 + $0xe8] sm:$0xff] }
 0x144   : > { %v7967_v14 = vpop.permute.xlu1 %1744  ;;  %v7969_v2 = vpop.permute.xlu0 %1739  ;;  %v3457_v21 = vld [vmem:[%s9545_s6 + $0xe0] sm:$0xff] }
 0x145   : > { %3570 = vperm.xlu1 %6547, %v3444_v37   ;;  %3565 = vperm.xlu0 %6546, %v3443_v0   ;;  %v3454_v37 = vld [vmem:[%s9545_s6 + $0xc8] sm:$0xff]  ;;  %v3453_v0 = vld [vmem:[%s9545_s6 + $0xc0] sm:$0xff] }
 0x146   : > { %2656 = vmatpush1.bf16.msra.mxu1 %v1585_v33  ;;  %v3459_v33 = vld [vmem:[%s9545_s6 + $0xf0] sm:$0xff] }
 0x147   : > { %2657 = vmatprep.subr.bf16.mxu1 %v9555_v44 }
 0x148   : > { %v7978_v1 = vpop.permute.xlu1 %1754  ;;  %v7980_v49 = vpop.permute.xlu0 %1749 }
 0x149   : > { %3580 = vperm.xlu1 %6547, %v3446_v8   ;;  %3575 = vperm.xlu0 %6546, %v3445_v17   ;;  %v6592_v8 = vld [vmem:[%s9542_s3 + $0x60] ss:$16 sps:$4 sm:$0xff]  }
 0x14a   : > { %2658 = vmatpush1.bf16.msra.mxu1 %v1586_v25 }
 0x14b   : > { %2916 = vmatprep.subr.bf16.mxu1 %v9555_v44 }
 0x14c   : > { %v7995_v35 = vpop.permute.xlu1 %1764  ;;  %v7997_v5 = vpop.permute.xlu0 %1759 }
 0x14d   : > { %3590 = vperm.xlu1 %6547, %v3448_v45   ;;  %3585 = vperm.xlu0 %6546, %v3447_v15   ;;  %v3462_v15 = vld [vmem:[%s9545_s6 + $0x108] sm:$0xff] }
 0x14e   : > { %2660 = vmatmul.mubr.bf16.vlgmr.msra.gmra.mrb[32].mxu1 %v6581_v20  ;;  %v3464_v20 = vld [vmem:[%s9545_s6 + $0x118] sm:$0xff] }
 0x14f   : > { %2917 = vmatpush1.bf16.msra.mxu1 %v7728_v50  ;;  %2667 = vmatprep.mubr.bf16.mxu1 %v6584_v61  ;;  %v6586_v50 = vld [vmem:[%s9542_s3 + $0x20] ss:$16 sps:$4 sm:$0xff]  }
 0x150   : > { %v8007_v31 = vpop.permute.xlu1 %1774  ;;  %v8009_v36 = vpop.permute.xlu0 %1769  ;;  %2918 = vmatprep.subr.bf16.mxu1 %v9555_v44  ;;  %v3463_v61 = vld [vmem:[%s9545_s6 + $0x110] sm:$0xff] }
 0x151   : > { %3600 = vperm.xlu1 %6547, %v3450_v41   ;;  %3595 = vperm.xlu0 %6546, %v3449_v3  }
 0x153   : > { %2919 = vmatpush1.bf16.msra.mxu1 %v9557_v4 }
 0x154   : > { %v8025_v22 = vpop.permute.xlu1 %1784  ;;  %v8027_v7 = vpop.permute.xlu0 %1779  ;;  %2920 = vmatprep.subr.bf16.mxu1 %v9555_v44 }
 0x155   : > { %3610 = vperm.xlu1 %6547, %v3452_v13   ;;  %3605 = vperm.xlu0 %6546, %v3451_v10   ;;  %v6596_v13 = vld [vmem:[%s9542_s3 + $0xa4] ss:$16 sps:$4 sm:$0xff]   ;;  %v3466_v10 = vld [vmem:[%s9545_s6 + $0x128] sm:$0xff] }
 0x156   : > { %2668 = vmatmul.mubr.bf16.gmra.mrb[36].mxu1 %v6586_v50  ;;  %v3465_v50 = vld [vmem:[%s9545_s6 + $0x120] sm:$0xff] }
 0x157   : > { %2921 = vmatpush1.bf16.msra.mxu1 %v7762_v39  ;;  %2675 = vmatprep.mubr.bf16.mxu1 %v6587_v38  ;;  %v6589_v39 = vld [vmem:[%s9542_s3 + $0x40] ss:$16 sps:$4 sm:$0xff]   ;;  %v3468_v38 = vld [vmem:[%s9545_s6 + $0x138] sm:$0xff] }
 0x158   : > { %v8037_v23 = vpop.permute.xlu1 %1794  ;;  %v8039_v46 = vpop.permute.xlu0 %1789  ;;  %2922 = vmatprep.subr.bf16.mxu1 %v9555_v44 }
 0x159   : > { %3620 = vperm.xlu1 %6547, %v3454_v37   ;;  %3615 = vperm.xlu0 %6546, %v3453_v0   ;;  %v3467_v37 = vld [vmem:[%s9545_s6 + $0x130] sm:$0xff] }
 0x15a   : > { %v6599_v0 = vld [vmem:[%s9542_s3 + $0xc4] ss:$16 sps:$4 sm:$0xff]  }
 0x15b   : > { %2923 = vmatpush1.bf16.msra.mxu1 %v7760_v58  ;;  %v3460_v58 = vld [vmem:[%s9545_s6 + $0xf8] sm:$0xff] }
 0x15c   : > { %2924 = vmatprep.subr.bf16.mxu1 %v9555_v44  ;;  %v8062_v48 = vpop.permute.xlu1 %1804  ;;  %v8064_v25 = vpop.permute.xlu0 %1799 }
 0x15d   : > { %3630 = vperm.xlu1 %6547, %v3456_v29   ;;  %3625 = vperm.xlu0 %6546, %v3455_v56   ;;  %v3470_v29 = vld [vmem:[%s9545_s6 + $0x148] sm:$0xff]  ;;  %v3469_v56 = vld [vmem:[%s9545_s6 + $0x140] sm:$0xff] }
 0x15e   : > { %2676 = vmatmul.mubr.bf16.gmra.mrb[40].mxu1 %v6589_v39 }
 0x15f   : > { %2925 = vmatpush1.bf16.msra.mxu1 %v7795_v6  ;;  %2683 = vmatprep.mubr.bf16.mxu1 %v6590_v11  ;;  %v6593_v6 = vld [vmem:[%s9542_s3 + $0x84] ss:$16 sps:$4 sm:$0xff]  }
 0x160   : > { %2926 = vmatprep.subr.bf16.mxu1 %v9555_v44  ;;  %v8081_v17 = vpop.permute.xlu1 %1814  ;;  %v8083_v45 = vpop.permute.xlu0 %1809 }
 0x161   : > { %3640 = vperm.xlu1 %6547, %v3458_v55   ;;  %3635 = vperm.xlu0 %6546, %v3457_v21   ;;  %v3471_v55 = vld [vmem:[%s9545_s6 + $0x150] sm:$0xff] }
 0x162   : > { %v6601_v21 = vld [vmem:[%s9542_s3 + $0xc0] ss:$16 sps:$4 sm:$0xff]  }
 0x163   : > { %2927 = vmatpush1.bf16.msra.mxu1 %v7793_v40  ;;  %v3461_v40 = vld [vmem:[%s9545_s6 + $0x100] sm:$0xff] }
 0x164   : > { %2928 = vmatprep.subr.bf16.mxu1 %v9555_v44  ;;  %v8100_v41 = vpop.permute.xlu1 %1824  ;;  %v8102_v3 = vpop.permute.xlu0 %1819 }
 0x165   : > { %3650 = vperm.xlu1 %6547, %v3460_v58   ;;  %3645 = vperm.xlu0 %6546, %v3459_v33  }
 0x166   : > { %2684 = vmatmul.mubr.bf16.gmra.mrb[44].mxu1 %v6592_v8  ;;  %v3474_v8 = vld [vmem:[%s9545_s6 + $0x168] sm:$0xff] }
 0x167   : > { %2929 = vmatpush1.bf16.msra.mxu1 %v7829_v32  ;;  %2691 = vmatprep.mubr.bf16.mxu1 %v6593_v6  ;;  %v6595_v32 = vld [vmem:[%s9542_s3 + $0x80] ss:$16 sps:$4 sm:$0xff]   ;;  %v3476_v6 = vld [vmem:[%s9545_s6 + $0x178] sm:$0xff] }
 0x168   : > { %2930 = vmatprep.subr.bf16.mxu1 %v9555_v44  ;;  %v8121_v4 = vpop.permute.xlu0 %1829 }
 0x169   : > { %3660 = vperm.xlu1 %6547, %v3462_v15   ;;  %3655 = vperm.xlu0 %6546, %v3461_v40   ;;  %v3475_v15 = vld [vmem:[%s9545_s6 + $0x170] sm:$0xff] }
 0x16b   : > { %2931 = vmatpush1.bf16.msra.mxu1 %v7827_v51  ;;  %v8119_v51 = vpop.permute.xlu1 %1834 }
 0x16c   : > { %2932 = vmatprep.subr.bf16.mxu1 %v9555_v44  ;;  %v8146_v11 = vpop.permute.xlu0 %1839 }
 0x16d   : > { %3670 = vperm.xlu1 %6547, %v3464_v20   ;;  %3665 = vperm.xlu0 %6546, %v3463_v61   ;;  %v6605_v61 = vld [vmem:[%s9542_s3 + $0x104] ss:$16 sps:$4 sm:$0xff]  }
 0x16e   : > { %2692 = vmatmul.mubr.bf16.gmra.mrb[48].mxu1 %v6595_v32  ;;  %v3478_v32 = vld [vmem:[%s9545_s6 + $0x188] sm:$0xff] }
 0x16f   : > { %2933 = vmatpush1.bf16.msra.mxu1 %v7863_v62  ;;  %2699 = vmatprep.mubr.bf16.mxu1 %v6596_v13  ;;  %v6598_v62 = vld [vmem:[%s9542_s3 + $0xa0] ss:$16 sps:$4 sm:$0xff]   ;;  %v8144_v39 = vpop.permute.xlu1 %1844 }
 0x170   : > { %2934 = vmatprep.subr.bf16.mxu1 %v9555_v44  ;;  %v8165_v33 = vpop.permute.xlu0 %1849  ;;  %v3477_v13 = vld [vmem:[%s9545_s6 + $0x180] sm:$0xff] }
 0x171   : > { %3680 = vperm.xlu1 %6547, %v3466_v10   ;;  %3675 = vperm.xlu0 %6546, %v3465_v50   ;;  %v3480_v50 = vld [vmem:[%s9545_s6 + $0x198] sm:$0xff] }
 0x173   : > { %2935 = vmatpush1.bf16.msra.mxu1 %v7861_v42  ;;  %v3472_v42 = vld [vmem:[%s9545_s6 + $0x158] sm:$0xff]  ;;  %v8163_v58 = vpop.permute.xlu1 %1854 }
 0x174   : > { %2936 = vmatprep.subr.bf16.mxu1 %v9555_v44  ;;  %v8184_v20 = vpop.permute.xlu0 %1859 }
 0x175   : > { %3690 = vperm.xlu1 %6547, %v3468_v38   ;;  %3685 = vperm.xlu0 %6546, %v3467_v37   ;;  %v3479_v38 = vld [vmem:[%s9545_s6 + $0x190] sm:$0xff] }
 0x176   : > { %2700 = vmatmul.mubr.bf16.gmra.mrb[52].mxu1 %v6598_v62  ;;  %v6608_v37 = vld [vmem:[%s9542_s3 + $0x124] ss:$16 sps:$4 sm:$0xff]   ;;  %v3482_v62 = vld [vmem:[%s9545_s6 + $0x1a8] sm:$0xff] }
 0x177   : > { %2937 = vmatpush1.bf16.msra.mxu1 %v7897_v24  ;;  %2707 = vmatprep.mubr.bf16.mxu1 %v6599_v0  ;;  %v6602_v24 = vld [vmem:[%s9542_s3 + $0xe4] ss:$16 sps:$4 sm:$0xff]   ;;  %v8182_v40 = vpop.permute.xlu1 %1864 }
 0x178   : > { %2938 = vmatprep.subr.bf16.mxu1 %v9555_v44  ;;  %v8203_v10 = vpop.permute.xlu0 %1869  ;;  %v3481_v0 = vld [vmem:[%s9545_s6 + $0x1a0] sm:$0xff] }
 0x179   : > { %3700 = vperm.xlu1 %6547, %v3470_v29   ;;  %3695 = vperm.xlu0 %6546, %v3469_v56  }
 0x17b   : > { %2939 = vmatpush1.bf16.msra.mxu1 %v7895_v28  ;;  %v3473_v28 = vld [vmem:[%s9545_s6 + $0x160] sm:$0xff] }
 0x17c   : > { %2940 = vmatprep.subr.bf16.mxu1 %v9555_v44  ;;  %v8227_v56 = vpop.permute.xlu0 %1879 }
 0x17d   : > { %3710 = vperm.xlu1 %6547, %v3472_v42   ;;  %3705 = vperm.xlu0 %6546, %v3471_v55   ;;  %v3483_v42 = vld [vmem:[%s9545_s6 + $0x1b0] sm:$0xff] }
 0x17e   : > { %2708 = vmatmul.mubr.bf16.gmra.mrb[56].mxu1 %v6601_v21  ;;  %v6610_v55 = vld [vmem:[%s9542_s3 + $0x120] ss:$16 sps:$4 sm:$0xff]   ;;  %v6611_v21 = vld [vmem:[%s9542_s3 + $0x144] ss:$16 sps:$4 sm:$0xff]  }
 0x17f   : > { %2941 = vmatpush1.bf16.msra.mxu1 %v7931_v19  ;;  %2715 = vmatprep.mubr.bf16.mxu1 %v6602_v24  ;;  %v6604_v19 = vld [vmem:[%s9542_s3 + $0xe0] ss:$16 sps:$4 sm:$0xff]  }
 0x180   : > { %2942 = vmatprep.subr.bf16.mxu1 %v9555_v44 }
 0x181   : > { %3720 = vperm.xlu1 %6547, %v3474_v8   ;;  %3715 = vperm.xlu0 %6546, %v3473_v28   ;;  %v8243_v8 = vpop.permute.xlu0 %1889  ;;  %v3486_v28 = vld [vmem:[%s9545_s6 + $0x1c8] sm:$0xff] }
 0x183   : > { %2943 = vmatpush1.bf16.msra.mxu1 %v7929_v63  ;;  %v8201_v63 = vpop.permute.xlu1 %1874 }
 0x184   : > { %2944 = vmatprep.subr.bf16.mxu1 %v9555_v44 }
 0x185   : > { %3730 = vperm.xlu1 %6547, %v3476_v6   ;;  %3725 = vperm.xlu0 %6546, %v3475_v15   ;;  %v3485_v6 = vld [vmem:[%s9545_s6 + $0x1c0] sm:$0xff]  ;;  %v3488_v15 = vld [vmem:[%s9545_s6 + $0x1d8] sm:$0xff] }
 0x186   : > { %2716 = vmatmul.mubr.bf16.gmra.mrb[60].mxu1 %v6604_v19  ;;  %v3487_v19 = vld [vmem:[%s9545_s6 + $0x1d0] sm:$0xff] }
 0x187   : > { %2945 = vmatpush1.bf16.msra.mxu1 %v7965_v57  ;;  %2723 = vmatprep.mubr.bf16.mxu1 %v6605_v61  ;;  %v6607_v57 = vld [vmem:[%s9542_s3 + $0x100] ss:$16 sps:$4 sm:$0xff]   ;;  %v8225_v29 = vpop.permute.xlu1 %1884 }
 0x188   : > { %2946 = vmatprep.subr.bf16.mxu1 %v9555_v44 }
 0x189   : > { %3740 = vperm.xlu1 %6547, %v3478_v32   ;;  %3735 = vperm.xlu0 %6546, %v3477_v13   ;;  %v8259_v32 = vpop.permute.xlu0 %1899  ;;  %v6613_v13 = vld [vmem:[%s9542_s3 + $0x140] ss:$16 sps:$4 sm:$0xff]  }
 0x18b   : > { %2947 = vmatpush1.bf16.msra.mxu1 %v7963_v16  ;;  %v3484_v16 = vld [vmem:[%s9545_s6 + $0x1b8] sm:$0xff]  ;;  %v8241_v24 = vpop.permute.xlu1 %1894 }
 0x18d   : > { %3750 = vperm.xlu1 %6547, %v3480_v50   ;;  %3745 = vperm.xlu0 %6546, %v3479_v38   ;;  %v6614_v50 = vld [vmem:[%s9542_s3 + $0x164] ss:$16 sps:$4 sm:$0xff]   ;;  %v3490_v38 = vld [vmem:[%s9545_s6 + $0x1e8] sm:$0xff] }
 0x18e   : > { %2724 = vmatmul.mubr.bf16.gmra.mrb[64].mxu1 %v6607_v57  ;;  %v3489_v57 = vld [vmem:[%s9545_s6 + $0x1e0] sm:$0xff] }
 0x18f   : > { %2731 = vmatprep.mubr.bf16.mxu1 %v6608_v37  ;;  %v8257_v61 = vpop.permute.xlu1 %1904 }
 0x191   : > { %3760 = vperm.xlu1 %6547, %v3482_v62   ;;  %3755 = vperm.xlu0 %6546, %v3481_v0   ;;  %v8275_v62 = vpop.permute.xlu0 %1909  ;;  %v3492_v0 = vld [vmem:[%s9545_s6 + $0x1f8] sm:$0xff] }
 0x193   : > { %v8273_v37 = vpop.permute.xlu1 %1914 }
 0x194   : > { %9558 = vst [vmem:[#allocation7_spill] sm:$0xff] %v8273_v37 }
 0x195   : > { %3770 = vperm.xlu1 %6547, %v3484_v16   ;;  %3765 = vperm.xlu0 %6546, %v3483_v42   ;;  %v3491_v16 = vld [vmem:[%s9545_s6 + $0x1f0] sm:$0xff] }
 0x196   : > { %2732 = vmatmul.mubr.bf16.gmra.mrb[68].mxu1 %v6610_v55  ;;  %v6616_v42 = vld [vmem:[%s9542_s3 + $0x160] ss:$16 sps:$4 sm:$0xff]   ;;  %v6617_v55 = vld [vmem:[%s9542_s3 + $0x184] ss:$16 sps:$4 sm:$0xff]  }
 0x197   : > { %2739 = vmatprep.mubr.bf16.mxu1 %v6611_v21  ;;  %v5096_v21 = vld [vmem:[%s9546_s7 + $0x8] sm:$0xff] }
 0x199   : > { %3780 = vperm.xlu1 %6547, %v3486_v28   ;;  %3775 = vperm.xlu0 %6546, %v3485_v6   ;;  %v5095_v28 = vld [vmem:[%s9546_s7] sm:$0xff]  ;;  %v8295_v6 = vpop.permute.xlu1 %1924 }
 0x19a   : > { %9559 = vst [vmem:[#allocation8_spill] sm:$0xff] %v8295_v6 }
 0x19d   : > { %3790 = vperm.xlu1 %6547, %v3488_v15   ;;  %3785 = vperm.xlu0 %6546, %v3487_v19   ;;  %v8297_v15 = vpop.permute.xlu0 %1919  ;;  %v5098_v19 = vld [vmem:[%s9546_s7 + $0x18] sm:$0xff] }
 0x19e   : > { %2740 = vmatmul.mubr.bf16.gmra.mrb[72].mxu1 %v6613_v13  ;;  %9560 = vst [vmem:[#allocation9_spill] sm:$0xff] %v8297_v15  ;;  %v5097_v13 = vld [vmem:[%s9546_s7 + $0x10] sm:$0xff]  ;;  %v6763_v15 = vld [vmem:[%s9542_s3 + $0x388] ss:$16 sps:$4 sm:$0xff]  }
 0x19f   : > { %2747 = vmatprep.mubr.bf16.mxu1 %v6614_v50  ;;  %v6619_v50 = vld [vmem:[%s9542_s3 + $0x180] ss:$16 sps:$4 sm:$0xff]  }
 0x1a1   : > { %3800 = vperm.xlu1 %6547, %v3490_v38   ;;  %3795 = vperm.xlu0 %6546, %v3489_v57   ;;  %v6620_v38 = vld [vmem:[%s9542_s3 + $0x1a4] ss:$16 sps:$4 sm:$0xff]   ;;  %v8311_v57 = vpop.permute.xlu1 %1934 }
 0x1a2   : > { %9561 = vst [vmem:[#allocation10_spill] sm:$0xff] %v8311_v57 }
 0x1a5   : > { %3810 = vperm.xlu1 %6547, %v3492_v0   ;;  %3805 = vperm.xlu0 %6546, %v3491_v16   ;;  %v8313_v0 = vpop.permute.xlu0 %1929  ;;  %v5100_v16 = vld [vmem:[%s9546_s7 + $0x28] sm:$0xff] }
 0x1a6   : > { %2748 = vmatmul.mubr.bf16.gmra.mrb[76].mxu1 %v6616_v42  ;;  %9562 = vst [vmem:[#allocation11_spill] sm:$0xff] %v8313_v0  ;;  %v5099_v42 = vld [vmem:[%s9546_s7 + $0x20] sm:$0xff] }
 0x1a7   : > { %2755 = vmatprep.mubr.bf16.mxu1 %v6617_v55  ;;  %v5102_v55 = vld [vmem:[%s9546_s7 + $0x38] sm:$0xff] }
 0x1a9   : > { %5166 = vperm.xlu1 %6547, %v5096_v21   ;;  %5161 = vperm.xlu0 %6546, %v5095_v28   ;;  %v5101_v21 = vld [vmem:[%s9546_s7 + $0x30] sm:$0xff]  ;;  %v8327_v28 = vpop.permute.xlu1 %1944 }
 0x1aa   : > { %9563 = vst [vmem:[#allocation12_spill] sm:$0xff] %v8327_v28 }
 0x1ad   : > { %5176 = vperm.xlu1 %6547, %v5098_v19   ;;  %5171 = vperm.xlu0 %6546, %v5097_v13   ;;  %v8329_v19 = vpop.permute.xlu0 %1939  ;;  %v6622_v13 = vld [vmem:[%s9542_s3 + $0x1a0] ss:$16 sps:$4 sm:$0xff]  }
 0x1ae   : > { %2756 = vmatmul.mubr.bf16.gmra.mrb[80].mxu1 %v6619_v50  ;;  %9564 = vst [vmem:[#allocation13_spill] sm:$0xff] %v8329_v19  ;;  %v6623_v50 = vld [vmem:[%s9542_s3 + $0x1c4] ss:$16 sps:$4 sm:$0xff]   ;;  %v6625_v19 = vld [vmem:[%s9542_s3 + $0x1c0] ss:$16 sps:$4 sm:$0xff]  }
 0x1af   : > { %2763 = vmatprep.mubr.bf16.mxu1 %v6620_v38  ;;  %v5104_v38 = vld [vmem:[%s9546_s7 + $0x48] sm:$0xff] }
 0x1b1   : > { %5186 = vperm.xlu1 %6547, %v5100_v16   ;;  %5181 = vperm.xlu0 %6546, %v5099_v42   ;;  %v5103_v16 = vld [vmem:[%s9546_s7 + $0x40] sm:$0xff]  ;;  %v8343_v42 = vpop.permute.xlu1 %1954  ;;  %v8345_v28 = vpop.permute.xlu0 %1949 }
 0x1b2   : > { %9565 = vst [vmem:[#allocation14_spill] sm:$0xff] %v8343_v42  ;;  %9566 = vst [vmem:[#allocation15_spill] sm:$0xff] %v8345_v28  ;;  %v6628_v28 = vld [vmem:[%s9542_s3 + $0x1e0] ss:$16 sps:$4 sm:$0xff]  }
 0x1b5   : > { %5196 = vperm.xlu1 %6547, %v5102_v55   ;;  %5191 = vperm.xlu0 %6546, %v5101_v21   ;;  %v5106_v55 = vld [vmem:[%s9546_s7 + $0x58] sm:$0xff]  ;;  %v5105_v21 = vld [vmem:[%s9546_s7 + $0x50] sm:$0xff]  ;;  %v8367_v42 = vpop.permute.xlu0 %1959 }
 0x1b6   : > { %2764 = vmatmul.mubr.bf16.gmra.mrb[84].mxu1 %v6622_v13  ;;  %v6626_v13 = vld [vmem:[%s9542_s3 + $0x1e4] ss:$16 sps:$4 sm:$0xff]   ;;  %9568 = vst [vmem:[#allocation17_spill] sm:$0xff] %v8367_v42  ;;  %v6631_v42 = vld [vmem:[%s9542_s3 + $0x200] ss:$16 sps:$4 sm:$0xff]  }
 0x1b7   : > { %2771 = vmatprep.mubr.bf16.mxu1 %v6623_v50  ;;  %v5108_v50 = vld [vmem:[%s9546_s7 + $0x68] sm:$0xff] }
 0x1b9   : > { %5206 = vperm.xlu1 %6547, %v5104_v38   ;;  %5201 = vperm.xlu0 %6546, %v5103_v16   ;;  %v5107_v38 = vld [vmem:[%s9546_s7 + $0x60] sm:$0xff]  ;;  %v8365_v16 = vpop.permute.xlu1 %1964 }
 0x1ba   : > { %9567 = vst [vmem:[#allocation16_spill] sm:$0xff] %v8365_v16  ;;  %v6629_v16 = vld [vmem:[%s9542_s3 + $0x204] ss:$16 sps:$4 sm:$0xff]  }
 0x1bd   : > { %5216 = vperm.xlu1 %6547, %v5106_v55   ;;  %5211 = vperm.xlu0 %6546, %v5105_v21   ;;  %v5110_v55 = vld [vmem:[%s9546_s7 + $0x78] sm:$0xff]  ;;  %v5109_v21 = vld [vmem:[%s9546_s7 + $0x70] sm:$0xff] }
 0x1be   : > { %2772 = vmatmul.mubr.bf16.gmra.mrb[88].mxu1 %v6625_v19  ;;  %v8381_v19 = vpop.permute.xlu1 %1974 }
 0x1bf   : > { %2779 = vmatprep.mubr.bf16.mxu1 %v6626_v13  ;;  %9569 = vst [vmem:[#allocation18_spill] sm:$0xff] %v8381_v19  ;;  %v8383_v13 = vpop.permute.xlu0 %1969  ;;  %v5114_v19 = vld [vmem:[%s9546_s7 + $0x98] sm:$0xff] }
 0x1c0   : > { %9570 = vst [vmem:[#allocation19_spill] sm:$0xff] %v8383_v13 }
 0x1c1   : > { %5226 = vperm.xlu1 %6547, %v5108_v50   ;;  %5221 = vperm.xlu0 %6546, %v5107_v38   ;;  %v5112_v50 = vld [vmem:[%s9546_s7 + $0x88] sm:$0xff]  ;;  %v5111_v38 = vld [vmem:[%s9546_s7 + $0x80] sm:$0xff] }
 0x1c3   : > { %v8399_v13 = vpop.permute.xlu0 %1979 }
 0x1c4   : > { %9572 = vst [vmem:[#allocation21_spill] sm:$0xff] %v8399_v13  ;;  %v6634_v13 = vld [vmem:[%s9542_s3 + $0x220] ss:$16 sps:$4 sm:$0xff]  }
 0x1c5   : > { %5236 = vperm.xlu1 %6547, %v5110_v55   ;;  %5231 = vperm.xlu0 %6546, %v5109_v21   ;;  %v5113_v55 = vld [vmem:[%s9546_s7 + $0x90] sm:$0xff]  ;;  %v8397_v21 = vpop.permute.xlu1 %1984 }
 0x1c6   : > { %2780 = vmatmul.mubr.bf16.gmra.mrb[92].mxu1 %v6628_v28  ;;  %9571 = vst [vmem:[#allocation20_spill] sm:$0xff] %v8397_v21  ;;  %v6632_v28 = vld [vmem:[%s9542_s3 + $0x224] ss:$16 sps:$4 sm:$0xff]  }
 0x1c7   : > { %2787 = vmatprep.mubr.bf16.mxu1 %v6629_v16  ;;  %v5116_v16 = vld [vmem:[%s9546_s7 + $0xa8] sm:$0xff]  ;;  %v8415_v21 = vpop.permute.xlu0 %3495 }
 0x1c8   : > { %9574 = vst [vmem:[#allocation23_spill] sm:$0xff] %v8415_v21  ;;  %v6637_v21 = vld [vmem:[%s9542_s3 + $0x240] ss:$16 sps:$4 sm:$0xff]  }
 0x1c9   : > { %5246 = vperm.xlu1 %6547, %v5112_v50   ;;  %5241 = vperm.xlu0 %6546, %v5111_v38   ;;  %v5115_v50 = vld [vmem:[%s9546_s7 + $0xa0] sm:$0xff]  ;;  %v8413_v38 = vpop.permute.xlu1 %3500 }
 0x1ca   : > { %9573 = vst [vmem:[#allocation22_spill] sm:$0xff] %v8413_v38 }
 0x1cb   : > { %v8437_v38 = vpop.permute.xlu0 %3505 }
 0x1cc   : > { %9576 = vst [vmem:[#allocation25_spill] sm:$0xff] %v8437_v38  ;;  %v6640_v38 = vld [vmem:[%s9542_s3 + $0x260] ss:$16 sps:$4 sm:$0xff]  }
 0x1cd   : > { %5256 = vperm.xlu1 %6547, %v5114_v19   ;;  %5251 = vperm.xlu0 %6546, %v5113_v55   ;;  %v5118_v19 = vld [vmem:[%s9546_s7 + $0xb8] sm:$0xff]  ;;  %v5117_v55 = vld [vmem:[%s9546_s7 + $0xb0] sm:$0xff] }
 0x1ce   : > { %2788 = vmatmul.mubr.bf16.gmra.mrb[96].mxu1 %v6631_v42  ;;  %v6635_v42 = vld [vmem:[%s9542_s3 + $0x244] ss:$16 sps:$4 sm:$0xff]  }
 0x1cf   : > { %2795 = vmatprep.mubr.bf16.mxu1 %v6632_v28  ;;  %v5120_v28 = vld [vmem:[%s9546_s7 + $0xc8] sm:$0xff] }
 0x1d1   : > { %5266 = vperm.xlu1 %6547, %v5116_v16   ;;  %5261 = vperm.xlu0 %6546, %v5115_v50   ;;  %v5119_v16 = vld [vmem:[%s9546_s7 + $0xc0] sm:$0xff]  ;;  %v8435_v50 = vpop.permute.xlu1 %3510 }
 0x1d2   : > { %9575 = vst [vmem:[#allocation24_spill] sm:$0xff] %v8435_v50  ;;  %v6638_v50 = vld [vmem:[%s9542_s3 + $0x264] ss:$16 sps:$4 sm:$0xff]  }
 0x1d5   : > { %5276 = vperm.xlu1 %6547, %v5118_v19   ;;  %5271 = vperm.xlu0 %6546, %v5117_v55   ;;  %v5122_v19 = vld [vmem:[%s9546_s7 + $0xd8] sm:$0xff]  ;;  %v5121_v55 = vld [vmem:[%s9546_s7 + $0xd0] sm:$0xff] }
 0x1d6   : > { %2796 = vmatmul.mubr.bf16.gmra.mrb[100].mxu1 %v6634_v13  ;;  %v8451_v13 = vpop.permute.xlu1 %3520 }
 0x1d7   : > { %2803 = vmatprep.mubr.bf16.mxu1 %v6635_v42  ;;  %9577 = vst [vmem:[#allocation26_spill] sm:$0xff] %v8451_v13  ;;  %v8453_v42 = vpop.permute.xlu0 %3515  ;;  %v5126_v13 = vld [vmem:[%s9546_s7 + $0xf8] sm:$0xff] }
 0x1d8   : > { %9578 = vst [vmem:[#allocation27_spill] sm:$0xff] %v8453_v42 }
 0x1d9   : > { %5286 = vperm.xlu1 %6547, %v5120_v28   ;;  %5281 = vperm.xlu0 %6546, %v5119_v16   ;;  %v5124_v28 = vld [vmem:[%s9546_s7 + $0xe8] sm:$0xff]  ;;  %v5123_v16 = vld [vmem:[%s9546_s7 + $0xe0] sm:$0xff] }
 0x1db   : > { %v8469_v42 = vpop.permute.xlu0 %3525 }
 0x1dc   : > { %9580 = vst [vmem:[#allocation29_spill] sm:$0xff] %v8469_v42  ;;  %v6643_v42 = vld [vmem:[%s9542_s3 + $0x280] ss:$16 sps:$4 sm:$0xff]  }
 0x1dd   : > { %5296 = vperm.xlu1 %6547, %v5122_v19   ;;  %5291 = vperm.xlu0 %6546, %v5121_v55   ;;  %v5125_v19 = vld [vmem:[%s9546_s7 + $0xf0] sm:$0xff]  ;;  %v8467_v55 = vpop.permute.xlu1 %3530 }
 0x1de   : > { %2804 = vmatmul.mubr.bf16.gmra.mrb[104].mxu1 %v6637_v21  ;;  %9579 = vst [vmem:[#allocation28_spill] sm:$0xff] %v8467_v55  ;;  %v6641_v21 = vld [vmem:[%s9542_s3 + $0x284] ss:$16 sps:$4 sm:$0xff]  }
 0x1df   : > { %2811 = vmatprep.mubr.bf16.mxu1 %v6638_v50  ;;  %v5128_v50 = vld [vmem:[%s9546_s7 + $0x108] sm:$0xff]  ;;  %v8485_v55 = vpop.permute.xlu0 %3535 }
 0x1e0   : > { %9582 = vst [vmem:[#allocation31_spill] sm:$0xff] %v8485_v55  ;;  %v6646_v55 = vld [vmem:[%s9542_s3 + $0x2a0] ss:$16 sps:$4 sm:$0xff]  }
 0x1e1   : > { %5306 = vperm.xlu1 %6547, %v5124_v28   ;;  %5301 = vperm.xlu0 %6546, %v5123_v16   ;;  %v5127_v28 = vld [vmem:[%s9546_s7 + $0x100] sm:$0xff]  ;;  %v8483_v16 = vpop.permute.xlu1 %3540 }
 0x1e2   : > { %9581 = vst [vmem:[#allocation30_spill] sm:$0xff] %v8483_v16 }
 0x1e3   : > { %v8507_v16 = vpop.permute.xlu0 %3545 }
 0x1e4   : > { %9584 = vst [vmem:[#allocation33_spill] sm:$0xff] %v8507_v16  ;;  %v6649_v16 = vld [vmem:[%s9542_s3 + $0x2c0] ss:$16 sps:$4 sm:$0xff]  }
 0x1e5   : > { %5316 = vperm.xlu1 %6547, %v5126_v13   ;;  %5311 = vperm.xlu0 %6546, %v5125_v19   ;;  %v5130_v13 = vld [vmem:[%s9546_s7 + $0x118] sm:$0xff]  ;;  %v5129_v19 = vld [vmem:[%s9546_s7 + $0x110] sm:$0xff] }
 0x1e6   : > { %2812 = vmatmul.mubr.bf16.gmra.mrb[108].mxu1 %v6640_v38  ;;  %v6644_v38 = vld [vmem:[%s9542_s3 + $0x2a4] ss:$16 sps:$4 sm:$0xff]  }
 0x1e7   : > { %2819 = vmatprep.mubr.bf16.mxu1 %v6641_v21  ;;  %v5132_v21 = vld [vmem:[%s9546_s7 + $0x128] sm:$0xff] }
 0x1e9   : > { %5326 = vperm.xlu1 %6547, %v5128_v50   ;;  %5321 = vperm.xlu0 %6546, %v5127_v28   ;;  %v5131_v50 = vld [vmem:[%s9546_s7 + $0x120] sm:$0xff]  ;;  %v8505_v28 = vpop.permute.xlu1 %3550 }
 0x1ea   : > { %9583 = vst [vmem:[#allocation32_spill] sm:$0xff] %v8505_v28  ;;  %v6647_v28 = vld [vmem:[%s9542_s3 + $0x2c4] ss:$16 sps:$4 sm:$0xff]  }
 0x1ed   : > { %5336 = vperm.xlu1 %6547, %v5130_v13   ;;  %5331 = vperm.xlu0 %6546, %v5129_v19   ;;  %v5134_v13 = vld [vmem:[%s9546_s7 + $0x138] sm:$0xff]  ;;  %v5133_v19 = vld [vmem:[%s9546_s7 + $0x130] sm:$0xff] }
 0x1ee   : > { %2820 = vmatmul.mubr.bf16.gmra.mrb[112].mxu1 %v6643_v42  ;;  %v8521_v42 = vpop.permute.xlu1 %3560 }
 0x1ef   : > { %2827 = vmatprep.mubr.bf16.mxu1 %v6644_v38  ;;  %9585 = vst [vmem:[#allocation34_spill] sm:$0xff] %v8521_v42  ;;  %v8523_v38 = vpop.permute.xlu0 %3555  ;;  %v5138_v42 = vld [vmem:[%s9546_s7 + $0x158] sm:$0xff] }
 0x1f0   : > { %9586 = vst [vmem:[#allocation35_spill] sm:$0xff] %v8523_v38 }
 0x1f1   : > { %5346 = vperm.xlu1 %6547, %v5132_v21   ;;  %5341 = vperm.xlu0 %6546, %v5131_v50   ;;  %v5136_v21 = vld [vmem:[%s9546_s7 + $0x148] sm:$0xff]  ;;  %v5135_v50 = vld [vmem:[%s9546_s7 + $0x140] sm:$0xff] }
 0x1f3   : > { %v8539_v38 = vpop.permute.xlu0 %3565 }
 0x1f4   : > { %9588 = vst [vmem:[#allocation37_spill] sm:$0xff] %v8539_v38  ;;  %v6652_v38 = vld [vmem:[%s9542_s3 + $0x2e0] ss:$16 sps:$4 sm:$0xff]  }
 0x1f5   : > { %5356 = vperm.xlu1 %6547, %v5134_v13   ;;  %5351 = vperm.xlu0 %6546, %v5133_v19   ;;  %v5137_v13 = vld [vmem:[%s9546_s7 + $0x150] sm:$0xff]  ;;  %v8537_v19 = vpop.permute.xlu1 %3570 }
 0x1f6   : > { %2828 = vmatmul.mubr.bf16.gmra.mrb[116].mxu1 %v6646_v55  ;;  %9587 = vst [vmem:[#allocation36_spill] sm:$0xff] %v8537_v19  ;;  %v6650_v55 = vld [vmem:[%s9542_s3 + $0x2e4] ss:$16 sps:$4 sm:$0xff]  }
 0x1f7   : > { %2835 = vmatprep.mubr.bf16.mxu1 %v6647_v28  ;;  %v5140_v28 = vld [vmem:[%s9546_s7 + $0x168] sm:$0xff]  ;;  %v8555_v19 = vpop.permute.xlu0 %3575 }
 0x1f8   : > { %9590 = vst [vmem:[#allocation39_spill] sm:$0xff] %v8555_v19  ;;  %v6655_v19 = vld [vmem:[%s9542_s3 + $0x300] ss:$16 sps:$4 sm:$0xff]  }
 0x1f9   : > { %5366 = vperm.xlu1 %6547, %v5136_v21   ;;  %5361 = vperm.xlu0 %6546, %v5135_v50   ;;  %v5139_v21 = vld [vmem:[%s9546_s7 + $0x160] sm:$0xff]  ;;  %v8553_v50 = vpop.permute.xlu1 %3580 }
 0x1fa   : > { %9589 = vst [vmem:[#allocation38_spill] sm:$0xff] %v8553_v50 }
 0x1fb   : > { %v8577_v50 = vpop.permute.xlu0 %3585 }
 0x1fc   : > { %9592 = vst [vmem:[#allocation41_spill] sm:$0xff] %v8577_v50  ;;  %v6658_v50 = vld [vmem:[%s9542_s3 + $0x320] ss:$16 sps:$4 sm:$0xff]  }
 0x1fd   : > { %5376 = vperm.xlu1 %6547, %v5138_v42   ;;  %5371 = vperm.xlu0 %6546, %v5137_v13   ;;  %v5142_v42 = vld [vmem:[%s9546_s7 + $0x178] sm:$0xff]  ;;  %v5141_v13 = vld [vmem:[%s9546_s7 + $0x170] sm:$0xff] }
 0x1fe   : > { %2836 = vmatmul.mubr.bf16.gmra.mrb[120].mxu1 %v6649_v16  ;;  %v6653_v16 = vld [vmem:[%s9542_s3 + $0x304] ss:$16 sps:$4 sm:$0xff]  }
 0x1ff   : > { %2843 = vmatprep.mubr.bf16.mxu1 %v6650_v55  ;;  %v5144_v55 = vld [vmem:[%s9546_s7 + $0x188] sm:$0xff] }
 0x201   : > { %5386 = vperm.xlu1 %6547, %v5140_v28   ;;  %5381 = vperm.xlu0 %6546, %v5139_v21   ;;  %v5143_v28 = vld [vmem:[%s9546_s7 + $0x180] sm:$0xff]  ;;  %v8575_v21 = vpop.permute.xlu1 %3590 }
 0x202   : > { %9591 = vst [vmem:[#allocation40_spill] sm:$0xff] %v8575_v21  ;;  %v6656_v21 = vld [vmem:[%s9542_s3 + $0x324] ss:$16 sps:$4 sm:$0xff]  }
 0x205   : > { %5396 = vperm.xlu1 %6547, %v5142_v42   ;;  %5391 = vperm.xlu0 %6546, %v5141_v13   ;;  %v5146_v42 = vld [vmem:[%s9546_s7 + $0x198] sm:$0xff]  ;;  %v5145_v13 = vld [vmem:[%s9546_s7 + $0x190] sm:$0xff] }
 0x206   : > { %2844 = vmatmul.mubr.bf16.gmra.mrb[124].mxu1 %v6652_v38  ;;  %v8591_v38 = vpop.permute.xlu1 %3600 }
 0x207   : > { %2851 = vmatprep.mubr.bf16.mxu1 %v6653_v16  ;;  %9593 = vst [vmem:[#allocation42_spill] sm:$0xff] %v8591_v38  ;;  %v8593_v16 = vpop.permute.xlu0 %3595  ;;  %v5150_v38 = vld [vmem:[%s9546_s7 + $0x1b8] sm:$0xff] }
 0x208   : > { %9594 = vst [vmem:[#allocation43_spill] sm:$0xff] %v8593_v16 }
 0x209   : > { %5406 = vperm.xlu1 %6547, %v5144_v55   ;;  %5401 = vperm.xlu0 %6546, %v5143_v28   ;;  %v5148_v55 = vld [vmem:[%s9546_s7 + $0x1a8] sm:$0xff]  ;;  %v5147_v28 = vld [vmem:[%s9546_s7 + $0x1a0] sm:$0xff] }
 0x20b   : > { %v8609_v16 = vpop.permute.xlu0 %3605 }
 0x20c   : > { %9596 = vst [vmem:[#allocation45_spill] sm:$0xff] %v8609_v16  ;;  %v6661_v16 = vld [vmem:[%s9542_s3 + $0x340] ss:$16 sps:$4 sm:$0xff]  }
 0x20d   : > { %5416 = vperm.xlu1 %6547, %v5146_v42   ;;  %5411 = vperm.xlu0 %6546, %v5145_v13   ;;  %v5149_v42 = vld [vmem:[%s9546_s7 + $0x1b0] sm:$0xff]  ;;  %v8607_v13 = vpop.permute.xlu1 %3610 }
 0x20e   : > { %2852 = vmatmul.mubr.bf16.gmra.mrb[128].mxu1 %v6655_v19  ;;  %9595 = vst [vmem:[#allocation44_spill] sm:$0xff] %v8607_v13  ;;  %v6659_v19 = vld [vmem:[%s9542_s3 + $0x344] ss:$16 sps:$4 sm:$0xff]  }
 0x20f   : > { %2859 = vmatprep.mubr.bf16.mxu1 %v6656_v21  ;;  %v5152_v21 = vld [vmem:[%s9546_s7 + $0x1c8] sm:$0xff]  ;;  %v8625_v13 = vpop.permute.xlu0 %3615 }
 0x210   : > { %9598 = vst [vmem:[#allocation47_spill] sm:$0xff] %v8625_v13  ;;  %v6664_v13 = vld [vmem:[%s9542_s3 + $0x360] ss:$16 sps:$4 sm:$0xff]  }
 0x211   : > { %5426 = vperm.xlu1 %6547, %v5148_v55   ;;  %5421 = vperm.xlu0 %6546, %v5147_v28   ;;  %v5151_v55 = vld [vmem:[%s9546_s7 + $0x1c0] sm:$0xff]  ;;  %v8623_v28 = vpop.permute.xlu1 %3620 }
 0x212   : > { %9597 = vst [vmem:[#allocation46_spill] sm:$0xff] %v8623_v28 }
 0x213   : > { %v8647_v28 = vpop.permute.xlu0 %3625 }
 0x214   : > { %9600 = vst [vmem:[#allocation49_spill] sm:$0xff] %v8647_v28  ;;  %v6761_v28 = vld [vmem:[%s9542_s3 + $0x38c] ss:$16 sps:$4 sm:$0xff]  }
 0x215   : > { %5436 = vperm.xlu1 %6547, %v5150_v38   ;;  %5431 = vperm.xlu0 %6546, %v5149_v42   ;;  %v5154_v38 = vld [vmem:[%s9546_s7 + $0x1d8] sm:$0xff]  ;;  %v5153_v42 = vld [vmem:[%s9546_s7 + $0x1d0] sm:$0xff] }
 0x216   : > { %2860 = vmatmul.mubr.bf16.gmra.mrb[132].mxu1 %v6658_v50  ;;  %v6662_v50 = vld [vmem:[%s9542_s3 + $0x364] ss:$16 sps:$4 sm:$0xff]  }
 0x217   : > { %2867 = vmatprep.mubr.bf16.mxu1 %v6659_v19  ;;  %v5156_v19 = vld [vmem:[%s9546_s7 + $0x1e8] sm:$0xff] }
 0x219   : > { %5446 = vperm.xlu1 %6547, %v5152_v21   ;;  %5441 = vperm.xlu0 %6546, %v5151_v55   ;;  %v5155_v21 = vld [vmem:[%s9546_s7 + $0x1e0] sm:$0xff]  ;;  %v8645_v55 = vpop.permute.xlu1 %3630 }
 0x21a   : > { %9599 = vst [vmem:[#allocation48_spill] sm:$0xff] %v8645_v55  ;;  %v6665_v55 = vld [vmem:[%s9542_s3 + $0x384] ss:$16 sps:$4 sm:$0xff]  }
 0x21d   : > { %5456 = vperm.xlu1 %6547, %v5154_v38   ;;  %5451 = vperm.xlu0 %6546, %v5153_v42   ;;  %v5158_v38 = vld [vmem:[%s9546_s7 + $0x1f8] sm:$0xff]  ;;  %v5157_v42 = vld [vmem:[%s9546_s7 + $0x1f0] sm:$0xff] }
 0x21e   : > { %2868 = vmatmul.mubr.bf16.gmra.mrb[136].mxu1 %v6661_v16  ;;  %v8661_v16 = vpop.permute.xlu1 %3640 }
 0x21f   : > { %2875 = vmatprep.mubr.bf16.mxu1 %v6662_v50  ;;  %9601 = vst [vmem:[#allocation50_spill] sm:$0xff] %v8661_v16  ;;  %v8663_v50 = vpop.permute.xlu0 %3635  ;;  %v6670_v16 = vld [vmem:[%s9542_s3 + $0x3a0] ss:$16 sps:$4 sm:$0xff]  }
 0x220   : > { %9602 = vst [vmem:[#allocation51_spill] sm:$0xff] %v8663_v50  ;;  %v6760_v50 = vld [vmem:[%s9542_s3 + $0x368] ss:$16 sps:$4 sm:$0xff]  }
 0x221   : > { %5466 = vperm.xlu1 %6547, %v5156_v19   ;;  %5461 = vperm.xlu0 %6546, %v5155_v21   ;;  %v6667_v19 = vld [vmem:[%s9542_s3 + $0x380] ss:$16 sps:$4 sm:$0xff]   ;;  %v6668_v21 = vld [vmem:[%s9542_s3 + $0x3a4] ss:$16 sps:$4 sm:$0xff]  }
 0x225   : > { %5476 = vperm.xlu1 %6547, %v5158_v38   ;;  %5471 = vperm.xlu0 %6546, %v5157_v42   ;;  %v6671_v38 = vld [vmem:[%s9542_s3 + $0x3c4] ss:$16 sps:$4 sm:$0xff]   ;;  %v6676_v42 = vld [vmem:[%s9542_s3 + $0x3e0] ss:$16 sps:$4 sm:$0xff]  }
 0x226   : > { %2876 = vmatmul.mubr.bf16.gmra.mrb[140].mxu1 %v6664_v13  ;;  %v6673_v13 = vld [vmem:[%s9542_s3 + $0x3c0] ss:$16 sps:$4 sm:$0xff]  }
 0x227   : > { %2883 = vmatprep.mubr.bf16.mxu1 %v6665_v55  ;;  %v6674_v55 = vld [vmem:[%s9542_s3 + $0x3e4] ss:$16 sps:$4 sm:$0xff]  }
 0x22e   : > { %2884 = vmatmul.mubr.bf16.gmra.mrb[144].mxu1 %v6667_v19  ;;  %v6679_v19 = vld [vmem:[%s9542_s3 + $0xc] ss:$16 sps:$4 sm:$0xff]  }
 0x22f   : > { %2891 = vmatprep.mubr.bf16.mxu1 %v6668_v21  ;;  %v6680_v21 = vld [vmem:[%s9542_s3 + $0x2c] ss:$16 sps:$4 sm:$0xff]  }
 0x236   : > { %2892 = vmatmul.mubr.bf16.gmra.mrb[148].mxu1 %v6670_v16  ;;  %v6677_v16 = vld [vmem:[%s9542_s3 + $0x8] ss:$16 sps:$4 sm:$0xff]  }
 0x237   : > { %2899 = vmatprep.mubr.bf16.mxu1 %v6671_v38  ;;  %v6682_v38 = vld [vmem:[%s9542_s3 + $0x28] ss:$16 sps:$4 sm:$0xff]  }
 0x23e   : > { %2900 = vmatmul.mubr.bf16.gmra.mrb[152].mxu1 %v6673_v13  ;;  %v6683_v13 = vld [vmem:[%s9542_s3 + $0x4c] ss:$16 sps:$4 sm:$0xff]  }
 0x23f   : > { %2907 = vmatprep.mubr.bf16.mxu1 %v6674_v55  ;;  %v6685_v55 = vld [vmem:[%s9542_s3 + $0x48] ss:$16 sps:$4 sm:$0xff]  }
 0x246   : > { %2908 = vmatmul.mubr.bf16.gmra.mrb[156].mxu1 %v6676_v42  ;;  %v6686_v42 = vld [vmem:[%s9542_s3 + $0x6c] ss:$16 sps:$4 sm:$0xff]  }
 0x247   : > { %2948 = vmatprep.mubr.bf16.mxu1 %v6679_v19  ;;  %v6688_v19 = vld [vmem:[%s9542_s3 + $0x68] ss:$16 sps:$4 sm:$0xff]  }
 0x24e   : > { %2949 = vmatmul.mubr.bf16.vlgmr.msra.gmra.mrb[32].mxu1 %v6677_v16  ;;  %v6689_v16 = vld [vmem:[%s9542_s3 + $0x8c] ss:$16 sps:$4 sm:$0xff]  }
 0x24f   : > { %2956 = vmatprep.mubr.bf16.mxu1 %v6680_v21  ;;  %v6691_v21 = vld [vmem:[%s9542_s3 + $0x88] ss:$16 sps:$4 sm:$0xff]  }
 0x256   : > { %2957 = vmatmul.mubr.bf16.gmra.mrb[36].mxu1 %v6682_v38  ;;  %v6692_v38 = vld [vmem:[%s9542_s3 + $0xac] ss:$16 sps:$4 sm:$0xff]  }
 0x257   : > { %2964 = vmatprep.mubr.bf16.mxu1 %v6683_v13  ;;  %v6694_v13 = vld [vmem:[%s9542_s3 + $0xa8] ss:$16 sps:$4 sm:$0xff]  }
 0x25e   : > { %2965 = vmatmul.mubr.bf16.gmra.mrb[40].mxu1 %v6685_v55  ;;  %v6695_v55 = vld [vmem:[%s9542_s3 + $0xcc] ss:$16 sps:$4 sm:$0xff]  }
 0x25f   : > { %2972 = vmatprep.mubr.bf16.mxu1 %v6686_v42  ;;  %v6697_v42 = vld [vmem:[%s9542_s3 + $0xc8] ss:$16 sps:$4 sm:$0xff]  }
 0x266   : > { %2973 = vmatmul.mubr.bf16.gmra.mrb[44].mxu1 %v6688_v19  ;;  %v6698_v19 = vld [vmem:[%s9542_s3 + $0xec] ss:$16 sps:$4 sm:$0xff]  }
 0x267   : > { %2980 = vmatprep.mubr.bf16.mxu1 %v6689_v16  ;;  %v6700_v16 = vld [vmem:[%s9542_s3 + $0xe8] ss:$16 sps:$4 sm:$0xff]  }
 0x26e   : > { %2981 = vmatmul.mubr.bf16.gmra.mrb[48].mxu1 %v6691_v21  ;;  %v6701_v21 = vld [vmem:[%s9542_s3 + $0x10c] ss:$16 sps:$4 sm:$0xff]  }
 0x26f   : > { %2988 = vmatprep.mubr.bf16.mxu1 %v6692_v38  ;;  %v6703_v38 = vld [vmem:[%s9542_s3 + $0x108] ss:$16 sps:$4 sm:$0xff]  }
 0x276   : > { %2989 = vmatmul.mubr.bf16.gmra.mrb[52].mxu1 %v6694_v13  ;;  %v6704_v13 = vld [vmem:[%s9542_s3 + $0x12c] ss:$16 sps:$4 sm:$0xff]  }
 0x277   : > { %2996 = vmatprep.mubr.bf16.mxu1 %v6695_v55  ;;  %v6706_v55 = vld [vmem:[%s9542_s3 + $0x128] ss:$16 sps:$4 sm:$0xff]  }
 0x27e   : > { %2997 = vmatmul.mubr.bf16.gmra.mrb[56].mxu1 %v6697_v42  ;;  %v6707_v42 = vld [vmem:[%s9542_s3 + $0x14c] ss:$16 sps:$4 sm:$0xff]  }
 0x27f   : > { %3004 = vmatprep.mubr.bf16.mxu1 %v6698_v19  ;;  %v6709_v19 = vld [vmem:[%s9542_s3 + $0x148] ss:$16 sps:$4 sm:$0xff]  }
 0x286   : > { %3005 = vmatmul.mubr.bf16.gmra.mrb[60].mxu1 %v6700_v16  ;;  %v6710_v16 = vld [vmem:[%s9542_s3 + $0x16c] ss:$16 sps:$4 sm:$0xff]  }
 0x287   : > { %3012 = vmatprep.mubr.bf16.mxu1 %v6701_v21  ;;  %v6712_v21 = vld [vmem:[%s9542_s3 + $0x168] ss:$16 sps:$4 sm:$0xff]  }
 0x28e   : > { %3013 = vmatmul.mubr.bf16.gmra.mrb[64].mxu1 %v6703_v38  ;;  %v6713_v38 = vld [vmem:[%s9542_s3 + $0x18c] ss:$16 sps:$4 sm:$0xff]  }
 0x28f   : > { %3020 = vmatprep.mubr.bf16.mxu1 %v6704_v13  ;;  %v6715_v13 = vld [vmem:[%s9542_s3 + $0x188] ss:$16 sps:$4 sm:$0xff]  }
 0x296   : > { %3021 = vmatmul.mubr.bf16.gmra.mrb[68].mxu1 %v6706_v55  ;;  %v6716_v55 = vld [vmem:[%s9542_s3 + $0x1ac] ss:$16 sps:$4 sm:$0xff]  }
 0x297   : > { %3028 = vmatprep.mubr.bf16.mxu1 %v6707_v42  ;;  %v6718_v42 = vld [vmem:[%s9542_s3 + $0x1a8] ss:$16 sps:$4 sm:$0xff]  }
 0x29e   : > { %3029 = vmatmul.mubr.bf16.gmra.mrb[72].mxu1 %v6709_v19  ;;  %v6719_v19 = vld [vmem:[%s9542_s3 + $0x1cc] ss:$16 sps:$4 sm:$0xff]  }
 0x29f   : > { %3036 = vmatprep.mubr.bf16.mxu1 %v6710_v16  ;;  %v6721_v16 = vld [vmem:[%s9542_s3 + $0x1c8] ss:$16 sps:$4 sm:$0xff]  }
 0x2a6   : > { %3037 = vmatmul.mubr.bf16.gmra.mrb[76].mxu1 %v6712_v21  ;;  %v6722_v21 = vld [vmem:[%s9542_s3 + $0x1ec] ss:$16 sps:$4 sm:$0xff]  }
 0x2a7   : > { %3044 = vmatprep.mubr.bf16.mxu1 %v6713_v38  ;;  %v6724_v38 = vld [vmem:[%s9542_s3 + $0x1e8] ss:$16 sps:$4 sm:$0xff]  }
 0x2ae   : > { %3045 = vmatmul.mubr.bf16.gmra.mrb[80].mxu1 %v6715_v13  ;;  %v6725_v13 = vld [vmem:[%s9542_s3 + $0x20c] ss:$16 sps:$4 sm:$0xff]  }
 0x2af   : > { %3052 = vmatprep.mubr.bf16.mxu1 %v6716_v55  ;;  %v6727_v55 = vld [vmem:[%s9542_s3 + $0x208] ss:$16 sps:$4 sm:$0xff]  }
 0x2b6   : > { %3053 = vmatmul.mubr.bf16.gmra.mrb[84].mxu1 %v6718_v42  ;;  %v6728_v42 = vld [vmem:[%s9542_s3 + $0x22c] ss:$16 sps:$4 sm:$0xff]  }
 0x2b7   : > { %3060 = vmatprep.mubr.bf16.mxu1 %v6719_v19  ;;  %v6730_v19 = vld [vmem:[%s9542_s3 + $0x228] ss:$16 sps:$4 sm:$0xff]  }
 0x2be   : > { %3061 = vmatmul.mubr.bf16.gmra.mrb[88].mxu1 %v6721_v16  ;;  %v6731_v16 = vld [vmem:[%s9542_s3 + $0x24c] ss:$16 sps:$4 sm:$0xff]  }
 0x2bf   : > { %3068 = vmatprep.mubr.bf16.mxu1 %v6722_v21  ;;  %v6733_v21 = vld [vmem:[%s9542_s3 + $0x248] ss:$16 sps:$4 sm:$0xff]  }
 0x2c6   : > { %3069 = vmatmul.mubr.bf16.gmra.mrb[92].mxu1 %v6724_v38  ;;  %v6734_v38 = vld [vmem:[%s9542_s3 + $0x26c] ss:$16 sps:$4 sm:$0xff]  }
 0x2c7   : > { %3076 = vmatprep.mubr.bf16.mxu1 %v6725_v13  ;;  %v6736_v13 = vld [vmem:[%s9542_s3 + $0x268] ss:$16 sps:$4 sm:$0xff]  }
 0x2ce   : > { %3077 = vmatmul.mubr.bf16.gmra.mrb[96].mxu1 %v6727_v55  ;;  %v6737_v55 = vld [vmem:[%s9542_s3 + $0x28c] ss:$16 sps:$4 sm:$0xff]  }
 0x2cf   : > { %3084 = vmatprep.mubr.bf16.mxu1 %v6728_v42  ;;  %v6739_v42 = vld [vmem:[%s9542_s3 + $0x288] ss:$16 sps:$4 sm:$0xff]  }
 0x2d6   : > { %3085 = vmatmul.mubr.bf16.gmra.mrb[100].mxu1 %v6730_v19  ;;  %v6740_v19 = vld [vmem:[%s9542_s3 + $0x2ac] ss:$16 sps:$4 sm:$0xff]  }
 0x2d7   : > { %3092 = vmatprep.mubr.bf16.mxu1 %v6731_v16  ;;  %v6742_v16 = vld [vmem:[%s9542_s3 + $0x2a8] ss:$16 sps:$4 sm:$0xff]  }
 0x2de   : > { %3093 = vmatmul.mubr.bf16.gmra.mrb[104].mxu1 %v6733_v21  ;;  %v6743_v21 = vld [vmem:[%s9542_s3 + $0x2cc] ss:$16 sps:$4 sm:$0xff]  }
 0x2df   : > { %3100 = vmatprep.mubr.bf16.mxu1 %v6734_v38  ;;  %v6745_v38 = vld [vmem:[%s9542_s3 + $0x2c8] ss:$16 sps:$4 sm:$0xff]  }
 0x2e6   : > { %3101 = vmatmul.mubr.bf16.gmra.mrb[108].mxu1 %v6736_v13  ;;  %v6746_v13 = vld [vmem:[%s9542_s3 + $0x2ec] ss:$16 sps:$4 sm:$0xff]  }
 0x2e7   : > { %3108 = vmatprep.mubr.bf16.mxu1 %v6737_v55  ;;  %v6748_v55 = vld [vmem:[%s9542_s3 + $0x2e8] ss:$16 sps:$4 sm:$0xff]  }
 0x2ee   : > { %3109 = vmatmul.mubr.bf16.gmra.mrb[112].mxu1 %v6739_v42  ;;  %v6749_v42 = vld [vmem:[%s9542_s3 + $0x30c] ss:$16 sps:$4 sm:$0xff]  }
 0x2ef   : > { %3116 = vmatprep.mubr.bf16.mxu1 %v6740_v19  ;;  %v6751_v19 = vld [vmem:[%s9542_s3 + $0x308] ss:$16 sps:$4 sm:$0xff]  }
 0x2f6   : > { %3117 = vmatmul.mubr.bf16.gmra.mrb[116].mxu1 %v6742_v16  ;;  %v6752_v16 = vld [vmem:[%s9542_s3 + $0x32c] ss:$16 sps:$4 sm:$0xff]  }
 0x2f7   : > { %3124 = vmatprep.mubr.bf16.mxu1 %v6743_v21  ;;  %v6754_v21 = vld [vmem:[%s9542_s3 + $0x328] ss:$16 sps:$4 sm:$0xff]  }
 0x2fe   : > { %3125 = vmatmul.mubr.bf16.gmra.mrb[120].mxu1 %v6745_v38  ;;  %v6755_v38 = vld [vmem:[%s9542_s3 + $0x34c] ss:$16 sps:$4 sm:$0xff]  }
 0x2ff   : > { %3132 = vmatprep.mubr.bf16.mxu1 %v6746_v13  ;;  %v6757_v13 = vld [vmem:[%s9542_s3 + $0x348] ss:$16 sps:$4 sm:$0xff]  }
 0x306   : > { %3133 = vmatmul.mubr.bf16.gmra.mrb[124].mxu1 %v6748_v55  ;;  %v6758_v55 = vld [vmem:[%s9542_s3 + $0x36c] ss:$16 sps:$4 sm:$0xff]  }
 0x307   : > { %3140 = vmatprep.mubr.bf16.mxu1 %v6749_v42 }
 0x30e   : > { %3141 = vmatmul.mubr.bf16.gmra.mrb[128].mxu1 %v6751_v19 }
 0x30f   : > { %3148 = vmatprep.mubr.bf16.mxu1 %v6752_v16 }
 0x316   : > { %3149 = vmatmul.mubr.bf16.gmra.mrb[132].mxu1 %v6754_v21  ;;  %v6775_v21 = vld [vmem:[%s9544_s5 + $0x4] ss:$16 sps:$4 sm:$0xff]  }
 0x317   : > { %3156 = vmatprep.mubr.bf16.mxu1 %v6755_v38  ;;  %4485 = vmatprep.mubr.bf16.mxu0 %v6775_v21 }
 0x31e   : > { %3157 = vmatmul.mubr.bf16.gmra.mrb[136].mxu1 %v6757_v13 }
 0x31f   : > { %3164 = vmatprep.mubr.bf16.mxu1 %v6758_v55 }
 0x321   : > { %v2950_v42 = vpop.f32.mrb[32].mxu1 }
 0x322   : > { %v6122_v19 = vadd.f32 %v2950_v42, %v7852_v9  ;;  %v2952_v16 = vpop.f32.mrb[33].mxu1 }
 0x323   : > { %v2953_v38 = vpop.f32.mrb[34].mxu1 }
 0x324   : > { %v6123_v13 = vadd.f32 %v2953_v38, %v7850_v43  ;;  %v2955_v55 = vpop.f32.mrb[35].mxu1  ;;  %v3205_v57 = vmax.f32 %v6122_v19, 0.0  ;;  %v6764_v43 = vld [vmem:[%s9542_s3 + $0x3ac] ss:$16 sps:$4 sm:$0xff]  }
 0x326   : > { %v3206_v9 = vmax.f32 %v6123_v13, 0.0  ;;  %3165 = vmatmul.mubr.bf16.gmra.mrb[140].mxu1 %v6760_v50  ;;  %v6766_v13 = vld [vmem:[%s9542_s3 + $0x3a8] ss:$16 sps:$4 sm:$0xff]  }
 0x327   : > { %3172 = vmatprep.mubr.bf16.mxu1 %v6761_v28 }
 0x328   : > { %v3397_v42 = vpack.c.bf16 %v3206_v9, %v3205_v57 }
 0x329   : > { %v2958_v16 = vpop.f32.mrb[36].mxu1 }
 0x32a   : > { %v6124_v0 = vadd.f32 %v2958_v16, %v7867_v47  ;;  %v2960_v6 = vpop.f32.mrb[37].mxu1  ;;  %4454 = vmatpush1.bf16.msra.mxu0 %v3397_v42 }
 0x32b   : > { %v2961_v37 = vpop.f32.mrb[38].mxu1  ;;  %4455 = vmatprep.subr.bf16.mxu0 %v9555_v44 }
 0x32c   : > { %v6125_v50 = vadd.f32 %v2961_v37, %v7865_v59  ;;  %v2963_v28 = vpop.f32.mrb[39].mxu1  ;;  %v3207_v57 = vmax.f32 %v6124_v0, 0.0  ;;  %v6767_v59 = vld [vmem:[%s9542_s3 + $0x3cc] ss:$16 sps:$4 sm:$0xff]  }
 0x32e   : > { %v3208_v19 = vmax.f32 %v6125_v50, 0.0  ;;  %3173 = vmatmul.mubr.bf16.gmra.mrb[144].mxu1 %v6763_v15  ;;  %v6769_v50 = vld [vmem:[%s9542_s3 + $0x3c8] ss:$16 sps:$4 sm:$0xff]  }
 0x32f   : > { %3180 = vmatprep.mubr.bf16.mxu1 %v6764_v43 }
 0x330   : > { %v3398_v47 = vpack.c.bf16 %v3208_v19, %v3207_v57 }
 0x331   : > { %v2966_v6 = vpop.f32.mrb[40].mxu1 }
 0x332   : > { %v6126_v21 = vadd.f32 %v2966_v6, %v7886_v18  ;;  %v2968_v38 = vpop.f32.mrb[41].mxu1  ;;  %4456 = vmatpush1.bf16.msra.mxu0 %v3398_v47 }
 0x333   : > { %v2969_v55 = vpop.f32.mrb[42].mxu1  ;;  %4457 = vmatprep.subr.bf16.mxu0 %v9555_v44 }
 0x334   : > { %v6127_v37 = vadd.f32 %v2969_v55, %v7884_v12  ;;  %v2971_v15 = vpop.f32.mrb[43].mxu1  ;;  %v3209_v0 = vmax.f32 %v6126_v21, 0.0  ;;  %v6770_v12 = vld [vmem:[%s9542_s3 + $0x3ec] ss:$16 sps:$4 sm:$0xff]   ;;  %v6772_v55 = vld [vmem:[%s9542_s3 + $0x3e8] ss:$16 sps:$4 sm:$0xff]  }
 0x336   : > { %v3210_v9 = vmax.f32 %v6127_v37, 0.0  ;;  %3181 = vmatmul.mubr.bf16.gmra.mrb[148].mxu1 %v6766_v13 }
 0x337   : > { %3188 = vmatprep.mubr.bf16.mxu1 %v6767_v59 }
 0x338   : > { %v3399_v18 = vpack.c.bf16 %v3210_v9, %v3209_v0 }
 0x339   : > { %v2974_v42 = vpop.f32.mrb[44].mxu1 }
 0x33a   : > { %v6128_v16 = vadd.f32 %v2974_v42, %v7901_v60  ;;  %v2976_v43 = vpop.f32.mrb[45].mxu1  ;;  %4458 = vmatpush1.bf16.msra.mxu0 %v3399_v18 }
 0x33b   : > { %v2977_v28 = vpop.f32.mrb[46].mxu1  ;;  %4459 = vmatprep.subr.bf16.mxu0 %v9555_v44 }
 0x33c   : > { %v6129_v57 = vadd.f32 %v2977_v28, %v7899_v52  ;;  %v2979_v19 = vpop.f32.mrb[47].mxu1  ;;  %v3211_v47 = vmax.f32 %v6128_v16, 0.0 }
 0x33e   : > { %v3212_v6 = vmax.f32 %v6129_v57, 0.0  ;;  %3189 = vmatmul.mubr.bf16.gmra.mrb[152].mxu1 %v6769_v50 }
 0x33f   : > { %3196 = vmatprep.mubr.bf16.mxu1 %v6770_v12 }
 0x340   : > { %v3400_v60 = vpack.c.bf16 %v3212_v6, %v3211_v47 }
 0x341   : > { %v2982_v21 = vpop.f32.mrb[48].mxu1 }
 0x342   : > { %v6130_v38 = vadd.f32 %v2982_v21, %v7920_v26  ;;  %v2984_v13 = vpop.f32.mrb[49].mxu1  ;;  %4460 = vmatpush1.bf16.msra.mxu0 %v3400_v60 }
 0x343   : > { %v2985_v59 = vpop.f32.mrb[50].mxu1  ;;  %4461 = vmatprep.subr.bf16.mxu0 %v9555_v44 }
 0x344   : > { %v6131_v52 = vadd.f32 %v2985_v59, %v7918_v54  ;;  %v2987_v37 = vpop.f32.mrb[51].mxu1  ;;  %v3213_v15 = vmax.f32 %v6130_v38, 0.0 }
 0x346   : > { %v3214_v0 = vmax.f32 %v6131_v52, 0.0  ;;  %3197 = vmatmul.mubr.bf16.gmra.mrb[156].mxu1 %v6772_v55 }
 0x348   : > { %v3401_v9 = vpack.c.bf16 %v3214_v0, %v3213_v15 }
 0x349   : > { %v2990_v18 = vpop.f32.mrb[52].mxu1 }
 0x34a   : > { %v6132_v42 = vadd.f32 %v2990_v18, %v7935_v27  ;;  %v2992_v26 = vpop.f32.mrb[53].mxu1  ;;  %4462 = vmatpush1.bf16.msra.mxu0 %v3401_v9 }
 0x34b   : > { %v2993_v16 = vpop.f32.mrb[54].mxu1  ;;  %4463 = vmatprep.subr.bf16.mxu0 %v9555_v44 }
 0x34c   : > { %v6133_v43 = vadd.f32 %v2993_v16, %v7933_v53  ;;  %v2995_v50 = vpop.f32.mrb[55].mxu1  ;;  %v3215_v28 = vmax.f32 %v6132_v42, 0.0 }
 0x34e   : > { %v3216_v12 = vmax.f32 %v6133_v43, 0.0 }
 0x350   : > { %v3402_v57 = vpack.c.bf16 %v3216_v12, %v3215_v28 }
 0x351   : > { %v2998_v54 = vpop.f32.mrb[56].mxu1 }
 0x352   : > { %v6134_v19 = vadd.f32 %v2998_v54, %v7954_v34  ;;  %v3000_v47 = vpop.f32.mrb[57].mxu1  ;;  %4464 = vmatpush1.bf16.msra.mxu0 %v3402_v57 }
 0x353   : > { %v3001_v6 = vpop.f32.mrb[58].mxu1  ;;  %4465 = vmatprep.subr.bf16.mxu0 %v9555_v44 }
 0x354   : > { %v6135_v27 = vadd.f32 %v3001_v6, %v7952_v30  ;;  %v3003_v60 = vpop.f32.mrb[59].mxu1  ;;  %v3217_v21 = vmax.f32 %v6134_v19, 0.0 }
 0x356   : > { %v3218_v38 = vmax.f32 %v6135_v27, 0.0 }
 0x358   : > { %v3403_v13 = vpack.c.bf16 %v3218_v38, %v3217_v21 }
 0x359   : > { %v3006_v55 = vpop.f32.mrb[60].mxu1 }
 0x35a   : > { %v6136_v53 = vadd.f32 %v3006_v55, %v7969_v2  ;;  %v3008_v59 = vpop.f32.mrb[61].mxu1  ;;  %4466 = vmatpush1.bf16.msra.mxu0 %v3403_v13 }
 0x35b   : > { %v3009_v52 = vpop.f32.mrb[62].mxu1  ;;  %4467 = vmatprep.subr.bf16.mxu0 %v9555_v44 }
 0x35c   : > { %v6137_v34 = vadd.f32 %v3009_v52, %v7967_v14  ;;  %v3011_v37 = vpop.f32.mrb[63].mxu1  ;;  %v3219_v15 = vmax.f32 %v6136_v53, 0.0 }
 0x35e   : > { %v3220_v0 = vmax.f32 %v6137_v34, 0.0 }
 0x360   : > { %v3404_v9 = vpack.c.bf16 %v3220_v0, %v3219_v15 }
 0x361   : > { %v3014_v18 = vpop.f32.mrb[64].mxu1 }
 0x362   : > { %v6138_v30 = vadd.f32 %v3014_v18, %v7980_v49  ;;  %v3016_v42 = vpop.f32.mrb[65].mxu1  ;;  %4468 = vmatpush1.bf16.msra.mxu0 %v3404_v9 }
 0x363   : > { %v3017_v26 = vpop.f32.mrb[66].mxu1  ;;  %4469 = vmatprep.subr.bf16.mxu0 %v9555_v44 }
 0x364   : > { %v6139_v2 = vadd.f32 %v3017_v26, %v7978_v1  ;;  %v3019_v16 = vpop.f32.mrb[67].mxu1  ;;  %v3221_v43 = vmax.f32 %v6138_v30, 0.0 }
 0x366   : > { %v3222_v50 = vmax.f32 %v6139_v2, 0.0 }
 0x368   : > { %v3405_v28 = vpack.c.bf16 %v3222_v50, %v3221_v43 }
 0x369   : > { %v3022_v12 = vpop.f32.mrb[68].mxu1 }
 0x36a   : > { %v6140_v14 = vadd.f32 %v3022_v12, %v7997_v5  ;;  %v3024_v57 = vpop.f32.mrb[69].mxu1  ;;  %4470 = vmatpush1.bf16.msra.mxu0 %v3405_v28 }
 0x36b   : > { %v3025_v54 = vpop.f32.mrb[70].mxu1  ;;  %4471 = vmatprep.subr.bf16.mxu0 %v9555_v44 }
 0x36c   : > { %v6141_v49 = vadd.f32 %v3025_v54, %v7995_v35  ;;  %v3027_v19 = vpop.f32.mrb[71].mxu1  ;;  %v3223_v47 = vmax.f32 %v6140_v14, 0.0 }
 0x36e   : > { %v3224_v6 = vmax.f32 %v6141_v49, 0.0 }
 0x370   : > { %v3406_v27 = vpack.c.bf16 %v3224_v6, %v3223_v47 }
 0x371   : > { %v3030_v60 = vpop.f32.mrb[72].mxu1 }
 0x372   : > { %v6142_v1 = vadd.f32 %v3030_v60, %v8009_v36  ;;  %v3032_v21 = vpop.f32.mrb[73].mxu1  ;;  %4472 = vmatpush1.bf16.msra.mxu0 %v3406_v27 }
 0x373   : > { %v3033_v38 = vpop.f32.mrb[74].mxu1  ;;  %4473 = vmatprep.subr.bf16.mxu0 %v9555_v44 }
 0x374   : > { %v6143_v5 = vadd.f32 %v3033_v38, %v8007_v31  ;;  %v3035_v13 = vpop.f32.mrb[75].mxu1  ;;  %v3225_v55 = vmax.f32 %v6142_v1, 0.0 }
 0x376   : > { %v3226_v53 = vmax.f32 %v6143_v5, 0.0 }
 0x378   : > { %v3407_v59 = vpack.c.bf16 %v3226_v53, %v3225_v55 }
 0x379   : > { %v3038_v52 = vpop.f32.mrb[76].mxu1 }
 0x37a   : > { %v6144_v35 = vadd.f32 %v3038_v52, %v8027_v7  ;;  %v3040_v34 = vpop.f32.mrb[77].mxu1  ;;  %4474 = vmatpush1.bf16.msra.mxu0 %v3407_v59 }
 0x37b   : > { %v3041_v37 = vpop.f32.mrb[78].mxu1  ;;  %4475 = vmatprep.subr.bf16.mxu0 %v9555_v44 }
 0x37c   : > { %v6145_v36 = vadd.f32 %v3041_v37, %v8025_v22  ;;  %v3043_v15 = vpop.f32.mrb[79].mxu1  ;;  %v3227_v0 = vmax.f32 %v6144_v35, 0.0 }
 0x37e   : > { %v3228_v9 = vmax.f32 %v6145_v36, 0.0 }
 0x380   : > { %v3408_v18 = vpack.c.bf16 %v3228_v9, %v3227_v0 }
 0x381   : > { %v3046_v30 = vpop.f32.mrb[80].mxu1 }
 0x382   : > { %v6146_v31 = vadd.f32 %v3046_v30, %v8039_v46  ;;  %v3048_v42 = vpop.f32.mrb[81].mxu1  ;;  %4476 = vmatpush1.bf16.msra.mxu0 %v3408_v18 }
 0x383   : > { %v3049_v26 = vpop.f32.mrb[82].mxu1  ;;  %4477 = vmatprep.subr.bf16.mxu0 %v9555_v44 }
 0x384   : > { %v6147_v7 = vadd.f32 %v3049_v26, %v8037_v23  ;;  %v3051_v2 = vpop.f32.mrb[83].mxu1  ;;  %v3229_v16 = vmax.f32 %v6146_v31, 0.0 }
 0x386   : > { %v3230_v43 = vmax.f32 %v6147_v7, 0.0  ;;  %v6779_v7 = vld [vmem:[%s9544_s5 + $0x44] ss:$16 sps:$4 sm:$0xff]  }
 0x388   : > { %v3409_v50 = vpack.c.bf16 %v3230_v43, %v3229_v16 }
 0x389   : > { %v3054_v28 = vpop.f32.mrb[84].mxu1 }
 0x38a   : > { %v6148_v22 = vadd.f32 %v3054_v28, %v8064_v25  ;;  %v3056_v12 = vpop.f32.mrb[85].mxu1  ;;  %4478 = vmatpush1.bf16.msra.mxu0 %v3409_v50 }
 0x38b   : > { %v3057_v14 = vpop.f32.mrb[86].mxu1  ;;  %4479 = vmatprep.subr.bf16.mxu0 %v9555_v44 }
 0x38c   : > { %v6149_v46 = vadd.f32 %v3057_v14, %v8062_v48  ;;  %v3059_v57 = vpop.f32.mrb[87].mxu1  ;;  %v3231_v54 = vmax.f32 %v6148_v22, 0.0 }
 0x38e   : > { %v3232_v49 = vmax.f32 %v6149_v46, 0.0  ;;  %v6782_v46 = vld [vmem:[%s9544_s5 + $0x64] ss:$16 sps:$4 sm:$0xff]  }
 0x390   : > { %v3410_v19 = vpack.c.bf16 %v3232_v49, %v3231_v54 }
 0x391   : > { %v3062_v47 = vpop.f32.mrb[88].mxu1 }
 0x392   : > { %v6150_v23 = vadd.f32 %v3062_v47, %v8083_v45  ;;  %v3064_v6 = vpop.f32.mrb[89].mxu1  ;;  %4480 = vmatpush1.bf16.msra.mxu0 %v3410_v19 }
 0x393   : > { %v3065_v27 = vpop.f32.mrb[90].mxu1  ;;  %4481 = vmatprep.subr.bf16.mxu0 %v9555_v44 }
 0x394   : > { %v6151_v25 = vadd.f32 %v3065_v27, %v8081_v17  ;;  %v3067_v60 = vpop.f32.mrb[91].mxu1  ;;  %v3233_v1 = vmax.f32 %v6150_v23, 0.0  ;;  %v6773_v17 = vld [vmem:[%s9544_s5] ss:$16 sps:$4 sm:$0xff]  }
 0x396   : > { %v3234_v21 = vmax.f32 %v6151_v25, 0.0  ;;  %v6785_v25 = vld [vmem:[%s9544_s5 + $0x84] ss:$16 sps:$4 sm:$0xff]  }
 0x398   : > { %v3411_v38 = vpack.c.bf16 %v3234_v21, %v3233_v1 }
 0x399   : > { %v3070_v5 = vpop.f32.mrb[92].mxu1 }
 0x39a   : > { %v6152_v48 = vadd.f32 %v3070_v5, %v8102_v3  ;;  %v3072_v13 = vpop.f32.mrb[93].mxu1  ;;  %4482 = vmatpush1.bf16.msra.mxu0 %v3411_v38  ;;  %v6776_v3 = vld [vmem:[%s9544_s5 + $0x24] ss:$16 sps:$4 sm:$0xff]  }
 0x39b   : > { %v3073_v55 = vpop.f32.mrb[94].mxu1  ;;  %4483 = vmatprep.subr.bf16.mxu0 %v9555_v44 }
 0x39c   : > { %v6153_v45 = vadd.f32 %v3073_v55, %v8100_v41  ;;  %v3075_v53 = vpop.f32.mrb[95].mxu1  ;;  %v3235_v59 = vmax.f32 %v6152_v48, 0.0 }
 0x39e   : > { %v3236_v52 = vmax.f32 %v6153_v45, 0.0  ;;  %v6788_v45 = vld [vmem:[%s9544_s5 + $0xa4] ss:$16 sps:$4 sm:$0xff]  }
 0x3a0   : > { %v3412_v35 = vpack.c.bf16 %v3236_v52, %v3235_v59 }
 0x3a1   : > { %v3078_v34 = vpop.f32.mrb[96].mxu1 }
 0x3a2   : > { %v6154_v37 = vadd.f32 %v3078_v34, %v8121_v4  ;;  %v3080_v36 = vpop.f32.mrb[97].mxu1  ;;  %4484 = vmatpush1.bf16.msra.mxu0 %v3412_v35  ;;  %v6778_v4 = vld [vmem:[%s9544_s5 + $0x20] ss:$16 sps:$4 sm:$0xff]  }
 0x3a3   : > { %v3081_v15 = vpop.f32.mrb[98].mxu1  ;;  %4742 = vmatprep.subr.bf16.mxu0 %v9555_v44 }
 0x3a4   : > { %v6155_v41 = vadd.f32 %v3081_v15, %v8119_v51  ;;  %v3083_v0 = vpop.f32.mrb[99].mxu1  ;;  %v3237_v9 = vmax.f32 %v6154_v37, 0.0 }
 0x3a5   : > { %4486 = vmatmul.mubr.bf16.vlgmr.msra.gmra.mrb[32].mxu0 %v6773_v17 }
 0x3a6   : > { %v3238_v18 = vmax.f32 %v6155_v41, 0.0  ;;  %4493 = vmatprep.mubr.bf16.mxu0 %v6776_v3  ;;  %v6791_v3 = vld [vmem:[%s9544_s5 + $0xc4] ss:$16 sps:$4 sm:$0xff]  }
 0x3a8   : > { %v3413_v30 = vpack.c.bf16 %v3238_v18, %v3237_v9 }
 0x3a9   : > { %v3086_v31 = vpop.f32.mrb[100].mxu1 }
 0x3aa   : > { %v6156_v42 = vadd.f32 %v3086_v31, %v8146_v11  ;;  %v3088_v26 = vpop.f32.mrb[101].mxu1  ;;  %4743 = vmatpush1.bf16.msra.mxu0 %v3413_v30  ;;  %v6781_v11 = vld [vmem:[%s9544_s5 + $0x40] ss:$16 sps:$4 sm:$0xff]  }
 0x3ab   : > { %v3089_v51 = vpop.f32.mrb[102].mxu1  ;;  %4744 = vmatprep.subr.bf16.mxu0 %v9555_v44 }
 0x3ac   : > { %v6157_v2 = vadd.f32 %v3089_v51, %v8144_v39  ;;  %v3091_v16 = vpop.f32.mrb[103].mxu1  ;;  %v3239_v43 = vmax.f32 %v6156_v42, 0.0  ;;  %v6794_v42 = vld [vmem:[%s9544_s5 + $0xe4] ss:$16 sps:$4 sm:$0xff]  }
 0x3ad   : > { %4494 = vmatmul.mubr.bf16.gmra.mrb[36].mxu0 %v6778_v4 }
 0x3ae   : > { %v3240_v50 = vmax.f32 %v6157_v2, 0.0  ;;  %4501 = vmatprep.mubr.bf16.mxu0 %v6779_v7 }
 0x3b0   : > { %v3414_v28 = vpack.c.bf16 %v3240_v50, %v3239_v43 }
 0x3b1   : > { %v3094_v22 = vpop.f32.mrb[104].mxu1 }
 0x3b2   : > { %v6158_v12 = vadd.f32 %v3094_v22, %v8165_v33  ;;  %v3096_v14 = vpop.f32.mrb[105].mxu1  ;;  %4745 = vmatpush1.bf16.msra.mxu0 %v3414_v28  ;;  %v6784_v33 = vld [vmem:[%s9544_s5 + $0x60] ss:$16 sps:$4 sm:$0xff]   ;;  %v6797_v22 = vld [vmem:[%s9544_s5 + $0x104] ss:$16 sps:$4 sm:$0xff]  }
 0x3b3   : > { %v3097_v39 = vpop.f32.mrb[106].mxu1  ;;  %4746 = vmatprep.subr.bf16.mxu0 %v9555_v44 }
 0x3b4   : > { %v6159_v57 = vadd.f32 %v3097_v39, %v8163_v58  ;;  %v3099_v54 = vpop.f32.mrb[107].mxu1  ;;  %v3241_v49 = vmax.f32 %v6158_v12, 0.0 }
 0x3b5   : > { %4502 = vmatmul.mubr.bf16.gmra.mrb[40].mxu0 %v6781_v11 }
 0x3b6   : > { %v3242_v19 = vmax.f32 %v6159_v57, 0.0  ;;  %4509 = vmatprep.mubr.bf16.mxu0 %v6782_v46 }
 0x3b8   : > { %v3415_v47 = vpack.c.bf16 %v3242_v19, %v3241_v49  ;;  %v6800_v19 = vld [vmem:[%s9544_s5 + $0x124] ss:$16 sps:$4 sm:$0xff]  }
 0x3b9   : > { %v3102_v23 = vpop.f32.mrb[108].mxu1 }
 0x3ba   : > { %v6160_v6 = vadd.f32 %v3102_v23, %v8184_v20  ;;  %v3104_v27 = vpop.f32.mrb[109].mxu1  ;;  %4747 = vmatpush1.bf16.msra.mxu0 %v3415_v47  ;;  %v6787_v20 = vld [vmem:[%s9544_s5 + $0x80] ss:$16 sps:$4 sm:$0xff]  }
 0x3bb   : > { %v3105_v58 = vpop.f32.mrb[110].mxu1  ;;  %4748 = vmatprep.subr.bf16.mxu0 %v9555_v44  ;;  %v9603_v47 = vld [vmem:[#allocation7_spill] sm:$0xff] }
 0x3bc   : > { %v6161_v60 = vadd.f32 %v3105_v58, %v8182_v40  ;;  %v3107_v1 = vpop.f32.mrb[111].mxu1  ;;  %v3243_v21 = vmax.f32 %v6160_v6, 0.0 }
 0x3bd   : > { %4510 = vmatmul.mubr.bf16.gmra.mrb[44].mxu0 %v6784_v33 }
 0x3be   : > { %v3244_v38 = vmax.f32 %v6161_v60, 0.0  ;;  %4517 = vmatprep.mubr.bf16.mxu0 %v6785_v25  ;;  %v9604_v60 = vld [vmem:[#allocation9_spill] sm:$0xff] }
 0x3c0   : > { %v3416_v5 = vpack.c.bf16 %v3244_v38, %v3243_v21  ;;  %v6803_v38 = vld [vmem:[%s9544_s5 + $0x144] ss:$16 sps:$4 sm:$0xff]  }
 0x3c1   : > { %v3110_v48 = vpop.f32.mrb[112].mxu1 }
 0x3c2   : > { %v6162_v13 = vadd.f32 %v3110_v48, %v8203_v10  ;;  %v3112_v55 = vpop.f32.mrb[113].mxu1  ;;  %4749 = vmatpush1.bf16.msra.mxu0 %v3416_v5  ;;  %v6790_v10 = vld [vmem:[%s9544_s5 + $0xa0] ss:$16 sps:$4 sm:$0xff]  }
 0x3c3   : > { %v3113_v40 = vpop.f32.mrb[114].mxu1  ;;  %4750 = vmatprep.subr.bf16.mxu0 %v9555_v44  ;;  %v9605_v48 = vld [vmem:[#allocation8_spill] sm:$0xff] }
 0x3c4   : > { %v6163_v53 = vadd.f32 %v3113_v40, %v8201_v63  ;;  %v3115_v59 = vpop.f32.mrb[115].mxu1  ;;  %v3245_v52 = vmax.f32 %v6162_v13, 0.0 }
 0x3c5   : > { %4518 = vmatmul.mubr.bf16.gmra.mrb[48].mxu0 %v6787_v20  ;;  %v6805_v59 = vld [vmem:[%s9544_s5 + $0x140] ss:$16 sps:$4 sm:$0xff]  }
 0x3c6   : > { %v3246_v35 = vmax.f32 %v6163_v53, 0.0  ;;  %4525 = vmatprep.mubr.bf16.mxu0 %v6788_v45 }
 0x3c8   : > { %v3417_v34 = vpack.c.bf16 %v3246_v35, %v3245_v52  ;;  %v9606_v52 = vld [vmem:[#allocation11_spill] sm:$0xff] }
 0x3c9   : > { %v3118_v17 = vpop.f32.mrb[116].mxu1 }
 0x3ca   : > { %v6164_v37 = vadd.f32 %v3118_v17, %v8227_v56  ;;  %v3120_v36 = vpop.f32.mrb[117].mxu1  ;;  %4751 = vmatpush1.bf16.msra.mxu0 %v3417_v34  ;;  %v6793_v56 = vld [vmem:[%s9544_s5 + $0xc0] ss:$16 sps:$4 sm:$0xff]   ;;  %v6806_v17 = vld [vmem:[%s9544_s5 + $0x164] ss:$16 sps:$4 sm:$0xff]  }
 0x3cb   : > { %v3121_v63 = vpop.f32.mrb[118].mxu1  ;;  %4752 = vmatprep.subr.bf16.mxu0 %v9555_v44 }
 0x3cc   : > { %v6165_v15 = vadd.f32 %v3121_v63, %v8225_v29  ;;  %v3123_v41 = vpop.f32.mrb[119].mxu1  ;;  %v3247_v0 = vmax.f32 %v6164_v37, 0.0  ;;  %v9607_v37 = vld [vmem:[#allocation10_spill] sm:$0xff] }
 0x3cd   : > { %4526 = vmatmul.mubr.bf16.gmra.mrb[52].mxu0 %v6790_v10 }
 0x3ce   : > { %v3248_v9 = vmax.f32 %v6165_v15, 0.0  ;;  %4533 = vmatprep.mubr.bf16.mxu0 %v6791_v3 }
 0x3d0   : > { %v3418_v18 = vpack.c.bf16 %v3248_v9, %v3247_v0  ;;  %v6808_v9 = vld [vmem:[%s9544_s5 + $0x160] ss:$16 sps:$4 sm:$0xff]  }
 0x3d1   : > { %v3126_v30 = vpop.f32.mrb[120].mxu1 }
 0x3d2   : > { %v6166_v31 = vadd.f32 %v3126_v30, %v8243_v8  ;;  %v3128_v4 = vpop.f32.mrb[121].mxu1  ;;  %4753 = vmatpush1.bf16.msra.mxu0 %v3418_v18  ;;  %v6796_v8 = vld [vmem:[%s9544_s5 + $0xe0] ss:$16 sps:$4 sm:$0xff]  }
 0x3d3   : > { %v3129_v29 = vpop.f32.mrb[122].mxu1  ;;  %4754 = vmatprep.subr.bf16.mxu0 %v9555_v44  ;;  %v9608_v18 = vld [vmem:[#allocation13_spill] sm:$0xff] }
 0x3d4   : > { %v6167_v26 = vadd.f32 %v3129_v29, %v8241_v24  ;;  %v3131_v7 = vpop.f32.mrb[123].mxu1  ;;  %v3249_v51 = vmax.f32 %v6166_v31, 0.0  ;;  %v6809_v31 = vld [vmem:[%s9544_s5 + $0x184] ss:$16 sps:$4 sm:$0xff]  }
 0x3d5   : > { %4534 = vmatmul.mubr.bf16.gmra.mrb[56].mxu0 %v6793_v56 }
 0x3d6   : > { %v3250_v2 = vmax.f32 %v6167_v26, 0.0  ;;  %4541 = vmatprep.mubr.bf16.mxu0 %v6794_v42  ;;  %v9609_v42 = vld [vmem:[#allocation12_spill] sm:$0xff] }
 0x3d8   : > { %v3419_v16 = vpack.c.bf16 %v3250_v2, %v3249_v51 }
 0x3d9   : > { %v3134_v43 = vpop.f32.mrb[124].mxu1 }
 0x3da   : > { %v6168_v50 = vadd.f32 %v3134_v43, %v8259_v32  ;;  %v3136_v28 = vpop.f32.mrb[125].mxu1  ;;  %4755 = vmatpush1.bf16.msra.mxu0 %v3419_v16  ;;  %v6799_v32 = vld [vmem:[%s9544_s5 + $0x100] ss:$16 sps:$4 sm:$0xff]  }
 0x3db   : > { %v3137_v24 = vpop.f32.mrb[126].mxu1  ;;  %4756 = vmatprep.subr.bf16.mxu0 %v9555_v44  ;;  %v6811_v43 = vld [vmem:[%s9544_s5 + $0x180] ss:$16 sps:$4 sm:$0xff]  }
 0x3dc   : > { %v6169_v11 = vadd.f32 %v3137_v24, %v8257_v61  ;;  %v3139_v12 = vpop.f32.mrb[127].mxu1  ;;  %v3251_v14 = vmax.f32 %v6168_v50, 0.0 }
 0x3dd   : > { %4542 = vmatmul.mubr.bf16.gmra.mrb[60].mxu0 %v6796_v8  ;;  %v9610_v8 = vld [vmem:[#allocation15_spill] sm:$0xff] }
 0x3de   : > { %v3252_v46 = vmax.f32 %v6169_v11, 0.0  ;;  %4549 = vmatprep.mubr.bf16.mxu0 %v6797_v22  ;;  %v6812_v22 = vld [vmem:[%s9544_s5 + $0x1a4] ss:$16 sps:$4 sm:$0xff]   ;;  %v9611_v11 = vld [vmem:[#allocation14_spill] sm:$0xff] }
 0x3e0   : > { %v3420_v39 = vpack.c.bf16 %v3252_v46, %v3251_v14 }
 0x3e1   : > { %v3142_v57 = vpop.f32.mrb[128].mxu1 }
 0x3e2   : > { %v6170_v54 = vadd.f32 %v3142_v57, %v8275_v62  ;;  %v3144_v49 = vpop.f32.mrb[129].mxu1  ;;  %4757 = vmatpush1.bf16.msra.mxu0 %v3420_v39  ;;  %v6802_v62 = vld [vmem:[%s9544_s5 + $0x120] ss:$16 sps:$4 sm:$0xff]  }
 0x3e3   : > { %v3145_v61 = vpop.f32.mrb[130].mxu1  ;;  %4758 = vmatprep.subr.bf16.mxu0 %v9555_v44  ;;  %v9612_v49 = vld [vmem:[#allocation17_spill] sm:$0xff] }
 0x3e4   : > { %v6171_v23 = vadd.f32 %v3145_v61, %v9603_v47  ;;  %v3147_v33 = vpop.f32.mrb[131].mxu1  ;;  %v3253_v6 = vmax.f32 %v6170_v54, 0.0  ;;  %v6814_v54 = vld [vmem:[%s9544_s5 + $0x1a0] ss:$16 sps:$4 sm:$0xff]   ;;  %v6815_v47 = vld [vmem:[%s9544_s5 + $0x1c4] ss:$16 sps:$4 sm:$0xff]  }
 0x3e5   : > { %4550 = vmatmul.mubr.bf16.gmra.mrb[64].mxu0 %v6799_v32  ;;  %v9613_v33 = vld [vmem:[#allocation16_spill] sm:$0xff] }
 0x3e6   : > { %v3254_v27 = vmax.f32 %v6171_v23, 0.0  ;;  %4557 = vmatprep.mubr.bf16.mxu0 %v6800_v19 }
 0x3e8   : > { %v3421_v25 = vpack.c.bf16 %v3254_v27, %v3253_v6 }
 0x3e9   : > { %v3150_v58 = vpop.f32.mrb[132].mxu1 }
 0x3ea   : > { %v6172_v1 = vadd.f32 %v3150_v58, %v9604_v60  ;;  %v3152_v21 = vpop.f32.mrb[133].mxu1  ;;  %4759 = vmatpush1.bf16.msra.mxu0 %v3421_v25 }
 0x3eb   : > { %v3153_v5 = vpop.f32.mrb[134].mxu1  ;;  %4760 = vmatprep.subr.bf16.mxu0 %v9555_v44  ;;  %v9614_v21 = vld [vmem:[#allocation19_spill] sm:$0xff] }
 0x3ec   : > { %v6173_v20 = vadd.f32 %v3153_v5, %v9605_v48  ;;  %v3155_v13 = vpop.f32.mrb[135].mxu1  ;;  %v3255_v55 = vmax.f32 %v6172_v1, 0.0  ;;  %v6817_v1 = vld [vmem:[%s9544_s5 + $0x1c0] ss:$16 sps:$4 sm:$0xff]   ;;  %v6818_v48 = vld [vmem:[%s9544_s5 + $0x1e4] ss:$16 sps:$4 sm:$0xff]  }
 0x3ed   : > { %4558 = vmatmul.mubr.bf16.gmra.mrb[68].mxu0 %v6802_v62  ;;  %v9615_v13 = vld [vmem:[#allocation18_spill] sm:$0xff] }
 0x3ee   : > { %v3256_v45 = vmax.f32 %v6173_v20, 0.0  ;;  %4565 = vmatprep.mubr.bf16.mxu0 %v6803_v38 }
 0x3f0   : > { %v3422_v40 = vpack.c.bf16 %v3256_v45, %v3255_v55 }
 0x3f1   : > { %v3158_v53 = vpop.f32.mrb[136].mxu1 }
 0x3f2   : > { %v6174_v35 = vadd.f32 %v3158_v53, %v9606_v52  ;;  %v3160_v34 = vpop.f32.mrb[137].mxu1  ;;  %4761 = vmatpush1.bf16.msra.mxu0 %v3422_v40 }
 0x3f3   : > { %v3161_v10 = vpop.f32.mrb[138].mxu1  ;;  %4762 = vmatprep.subr.bf16.mxu0 %v9555_v44  ;;  %v9616_v34 = vld [vmem:[#allocation21_spill] sm:$0xff] }
 0x3f4   : > { %v6175_v36 = vadd.f32 %v3161_v10, %v9607_v37  ;;  %v3163_v3 = vpop.f32.mrb[139].mxu1  ;;  %v3257_v63 = vmax.f32 %v6174_v35, 0.0  ;;  %v6820_v35 = vld [vmem:[%s9544_s5 + $0x1e0] ss:$16 sps:$4 sm:$0xff]   ;;  %v6821_v37 = vld [vmem:[%s9544_s5 + $0x204] ss:$16 sps:$4 sm:$0xff]  }
 0x3f5   : > { %4566 = vmatmul.mubr.bf16.gmra.mrb[72].mxu0 %v6805_v59  ;;  %v9617_v3 = vld [vmem:[#allocation20_spill] sm:$0xff] }
 0x3f6   : > { %v3258_v15 = vmax.f32 %v6175_v36, 0.0  ;;  %4573 = vmatprep.mubr.bf16.mxu0 %v6806_v17 }
 0x3f8   : > { %v3423_v41 = vpack.c.bf16 %v3258_v15, %v3257_v63 }
 0x3f9   : > { %v3166_v0 = vpop.f32.mrb[140].mxu1 }
 0x3fa   : > { %v6176_v30 = vadd.f32 %v3166_v0, %v9608_v18  ;;  %v3168_v56 = vpop.f32.mrb[141].mxu1  ;;  %4763 = vmatpush1.bf16.msra.mxu0 %v3423_v41  ;;  %v6823_v18 = vld [vmem:[%s9544_s5 + $0x200] ss:$16 sps:$4 sm:$0xff]  }
 0x3fb   : > { %v3169_v4 = vpop.f32.mrb[142].mxu1  ;;  %4764 = vmatprep.subr.bf16.mxu0 %v9555_v44  ;;  %v6827_v56 = vld [vmem:[%s9544_s5 + $0x244] ss:$16 sps:$4 sm:$0xff]  }
 0x3fc   : > { %v6177_v29 = vadd.f32 %v3169_v4, %v9609_v42  ;;  %v3171_v26 = vpop.f32.mrb[143].mxu1  ;;  %v3259_v7 = vmax.f32 %v6176_v30, 0.0  ;;  %v6824_v30 = vld [vmem:[%s9544_s5 + $0x224] ss:$16 sps:$4 sm:$0xff]   ;;  %v6832_v42 = vld [vmem:[%s9544_s5 + $0x260] ss:$16 sps:$4 sm:$0xff]  }
 0x3fd   : > { %4574 = vmatmul.mubr.bf16.gmra.mrb[76].mxu0 %v6808_v9  ;;  %v6830_v4 = vld [vmem:[%s9544_s5 + $0x264] ss:$16 sps:$4 sm:$0xff]   ;;  %v6835_v26 = vld [vmem:[%s9544_s5 + $0x280] ss:$16 sps:$4 sm:$0xff]  }
 0x3fe   : > { %v3260_v51 = vmax.f32 %v6177_v29, 0.0  ;;  %4581 = vmatprep.mubr.bf16.mxu0 %v6809_v31  ;;  %v6829_v31 = vld [vmem:[%s9544_s5 + $0x240] ss:$16 sps:$4 sm:$0xff]   ;;  %v6833_v29 = vld [vmem:[%s9544_s5 + $0x284] ss:$16 sps:$4 sm:$0xff]  }
 0x400   : > { %v3424_v2 = vpack.c.bf16 %v3260_v51, %v3259_v7  ;;  %v6836_v7 = vld [vmem:[%s9544_s5 + $0x2a4] ss:$16 sps:$4 sm:$0xff]   ;;  %v6838_v51 = vld [vmem:[%s9544_s5 + $0x2a0] ss:$16 sps:$4 sm:$0xff]  }
 0x401   : > { %v3174_v16 = vpop.f32.mrb[144].mxu1 }
 0x402   : > { %v6178_v50 = vadd.f32 %v3174_v16, %v9610_v8  ;;  %v3176_v28 = vpop.f32.mrb[145].mxu1  ;;  %4765 = vmatpush1.bf16.msra.mxu0 %v3424_v2  ;;  %v6839_v2 = vld [vmem:[%s9544_s5 + $0x2c4] ss:$16 sps:$4 sm:$0xff]   ;;  %v6841_v16 = vld [vmem:[%s9544_s5 + $0x2c0] ss:$16 sps:$4 sm:$0xff]  }
 0x403   : > { %v3177_v24 = vpop.f32.mrb[146].mxu1  ;;  %4766 = vmatprep.subr.bf16.mxu0 %v9555_v44  ;;  %v6844_v8 = vld [vmem:[%s9544_s5 + $0x2e0] ss:$16 sps:$4 sm:$0xff]  }
 0x404   : > { %v6179_v12 = vadd.f32 %v3177_v24, %v9611_v11  ;;  %v3179_v14 = vpop.f32.mrb[147].mxu1  ;;  %v3261_v46 = vmax.f32 %v6178_v50, 0.0  ;;  %v6845_v50 = vld [vmem:[%s9544_s5 + $0x304] ss:$16 sps:$4 sm:$0xff]   ;;  %v6847_v28 = vld [vmem:[%s9544_s5 + $0x300] ss:$16 sps:$4 sm:$0xff]  }
 0x405   : > { %4582 = vmatmul.mubr.bf16.gmra.mrb[80].mxu0 %v6811_v43  ;;  %v6842_v43 = vld [vmem:[%s9544_s5 + $0x2e4] ss:$16 sps:$4 sm:$0xff]   ;;  %v6850_v24 = vld [vmem:[%s9544_s5 + $0x320] ss:$16 sps:$4 sm:$0xff]  }
 0x406   : > { %v3262_v39 = vmax.f32 %v6179_v12, 0.0  ;;  %4589 = vmatprep.mubr.bf16.mxu0 %v6812_v22  ;;  %v6848_v22 = vld [vmem:[%s9544_s5 + $0x324] ss:$16 sps:$4 sm:$0xff]   ;;  %v6853_v12 = vld [vmem:[%s9544_s5 + $0x340] ss:$16 sps:$4 sm:$0xff]  }
 0x407   : > { %v6851_v11 = vld [vmem:[%s9544_s5 + $0x344] ss:$16 sps:$4 sm:$0xff]  }
 0x408   : > { %v3425_v57 = vpack.c.bf16 %v3262_v39, %v3261_v46  ;;  %v6854_v14 = vld [vmem:[%s9544_s5 + $0x364] ss:$16 sps:$4 sm:$0xff]   ;;  %v6856_v46 = vld [vmem:[%s9544_s5 + $0x360] ss:$16 sps:$4 sm:$0xff]  }
 0x409   : > { %v3182_v32 = vpop.f32.mrb[148].mxu1  ;;  %v6857_v39 = vld [vmem:[%s9544_s5 + $0x384] ss:$16 sps:$4 sm:$0xff]  }
 0x40a   : > { %v6180_v19 = vadd.f32 %v3182_v32, %v9612_v49  ;;  %v3184_v61 = vpop.f32.mrb[149].mxu1  ;;  %4767 = vmatpush1.bf16.msra.mxu0 %v3425_v57  ;;  %v6859_v57 = vld [vmem:[%s9544_s5 + $0x380] ss:$16 sps:$4 sm:$0xff]   ;;  %v6860_v32 = vld [vmem:[%s9544_s5 + $0x3a4] ss:$16 sps:$4 sm:$0xff]  }
 0x40b   : > { %v3185_v23 = vpop.f32.mrb[150].mxu1  ;;  %4768 = vmatprep.subr.bf16.mxu0 %v9555_v44  ;;  %v6863_v49 = vld [vmem:[%s9544_s5 + $0x3c4] ss:$16 sps:$4 sm:$0xff]  }
 0x40c   : > { %v6181_v6 = vadd.f32 %v3185_v23, %v9613_v33  ;;  %v3187_v27 = vpop.f32.mrb[151].mxu1  ;;  %v3263_v25 = vmax.f32 %v6180_v19, 0.0  ;;  %v6865_v19 = vld [vmem:[%s9544_s5 + $0x3c0] ss:$16 sps:$4 sm:$0xff]   ;;  %v6866_v61 = vld [vmem:[%s9544_s5 + $0x3e4] ss:$16 sps:$4 sm:$0xff]  }
 0x40d   : > { %4590 = vmatmul.mubr.bf16.gmra.mrb[84].mxu0 %v6814_v54  ;;  %v6862_v54 = vld [vmem:[%s9544_s5 + $0x3a0] ss:$16 sps:$4 sm:$0xff]   ;;  %v6871_v23 = vld [vmem:[%s9544_s5 + $0xc] ss:$16 sps:$4 sm:$0xff]   ;;  %v6869_v33 = vld [vmem:[%s9544_s5 + $0x8] ss:$16 sps:$4 sm:$0xff]  }
 0x40e   : > { %v3264_v58 = vmax.f32 %v6181_v6, 0.0  ;;  %4597 = vmatprep.mubr.bf16.mxu0 %v6815_v47  ;;  %v6868_v47 = vld [vmem:[%s9544_s5 + $0x3e0] ss:$16 sps:$4 sm:$0xff]   ;;  %v6872_v6 = vld [vmem:[%s9544_s5 + $0x2c] ss:$16 sps:$4 sm:$0xff]  }
 0x40f   : > { %v6874_v27 = vld [vmem:[%s9544_s5 + $0x28] ss:$16 sps:$4 sm:$0xff]  }
 0x410   : > { %v3426_v62 = vpack.c.bf16 %v3264_v58, %v3263_v25  ;;  %v6875_v25 = vld [vmem:[%s9544_s5 + $0x4c] ss:$16 sps:$4 sm:$0xff]   ;;  %v6877_v58 = vld [vmem:[%s9544_s5 + $0x48] ss:$16 sps:$4 sm:$0xff]  }
 0x411   : > { %v3190_v60 = vpop.f32.mrb[152].mxu1 }
 0x412   : > { %v6182_v38 = vadd.f32 %v3190_v60, %v9614_v21  ;;  %v3192_v5 = vpop.f32.mrb[153].mxu1  ;;  %4769 = vmatpush1.bf16.msra.mxu0 %v3426_v62  ;;  %v6878_v62 = vld [vmem:[%s9544_s5 + $0x6c] ss:$16 sps:$4 sm:$0xff]   ;;  %v6880_v60 = vld [vmem:[%s9544_s5 + $0x68] ss:$16 sps:$4 sm:$0xff]  }
 0x413   : > { %v3193_v20 = vpop.f32.mrb[154].mxu1  ;;  %4770 = vmatprep.subr.bf16.mxu0 %v9555_v44  ;;  %v6883_v21 = vld [vmem:[%s9544_s5 + $0x88] ss:$16 sps:$4 sm:$0xff]  }
 0x414   : > { %v6183_v55 = vadd.f32 %v3193_v20, %v9615_v13  ;;  %v3195_v45 = vpop.f32.mrb[155].mxu1  ;;  %v3265_v40 = vmax.f32 %v6182_v38, 0.0  ;;  %v6884_v38 = vld [vmem:[%s9544_s5 + $0xac] ss:$16 sps:$4 sm:$0xff]   ;;  %v6886_v5 = vld [vmem:[%s9544_s5 + $0xa8] ss:$16 sps:$4 sm:$0xff]  }
 0x415   : > { %4598 = vmatmul.mubr.bf16.gmra.mrb[88].mxu0 %v6817_v1  ;;  %v6881_v1 = vld [vmem:[%s9544_s5 + $0x8c] ss:$16 sps:$4 sm:$0xff]   ;;  %v6889_v20 = vld [vmem:[%s9544_s5 + $0xc8] ss:$16 sps:$4 sm:$0xff]  }
 0x416   : > { %v3266_v53 = vmax.f32 %v6183_v55, 0.0  ;;  %4605 = vmatprep.mubr.bf16.mxu0 %v6818_v48  ;;  %v6887_v48 = vld [vmem:[%s9544_s5 + $0xcc] ss:$16 sps:$4 sm:$0xff]   ;;  %v6892_v55 = vld [vmem:[%s9544_s5 + $0xe8] ss:$16 sps:$4 sm:$0xff]  }
 0x417   : > { %v6890_v13 = vld [vmem:[%s9544_s5 + $0xec] ss:$16 sps:$4 sm:$0xff]  }
 0x418   : > { %v3427_v59 = vpack.c.bf16 %v3266_v53, %v3265_v40  ;;  %v6893_v45 = vld [vmem:[%s9544_s5 + $0x10c] ss:$16 sps:$4 sm:$0xff]   ;;  %v6895_v40 = vld [vmem:[%s9544_s5 + $0x108] ss:$16 sps:$4 sm:$0xff]  }
 0x419   : > { %v3198_v52 = vpop.f32.mrb[156].mxu1  ;;  %v6896_v53 = vld [vmem:[%s9544_s5 + $0x12c] ss:$16 sps:$4 sm:$0xff]  }
 0x41a   : > { %v6184_v17 = vadd.f32 %v3198_v52, %v9616_v34  ;;  %v3200_v10 = vpop.f32.mrb[157].mxu1  ;;  %4771 = vmatpush1.bf16.msra.mxu0 %v3427_v59  ;;  %v6898_v59 = vld [vmem:[%s9544_s5 + $0x128] ss:$16 sps:$4 sm:$0xff]   ;;  %v6899_v52 = vld [vmem:[%s9544_s5 + $0x14c] ss:$16 sps:$4 sm:$0xff]  }
 0x41b   : > { %v3201_v36 = vpop.f32.mrb[158].mxu1  ;;  %4772 = vmatprep.subr.bf16.mxu0 %v9555_v44  ;;  %v6826_v44 = vld [vmem:[%s9544_s5 + $0x220] ss:$16 sps:$4 sm:$0xff]   ;;  %v6902_v34 = vld [vmem:[%s9544_s5 + $0x16c] ss:$16 sps:$4 sm:$0xff]  }
 0x41c   : > { %v6185_v63 = vadd.f32 %v3201_v36, %v9617_v3  ;;  %v3203_v15 = vpop.f32.mrb[159].mxu1  ;;  %v3267_v41 = vmax.f32 %v6184_v17, 0.0  ;;  %v6904_v17 = vld [vmem:[%s9544_s5 + $0x168] ss:$16 sps:$4 sm:$0xff]   ;;  %v6905_v10 = vld [vmem:[%s9544_s5 + $0x18c] ss:$16 sps:$4 sm:$0xff]  }
 0x41d   : > { %4606 = vmatmul.mubr.bf16.gmra.mrb[92].mxu0 %v6820_v35  ;;  %v6901_v35 = vld [vmem:[%s9544_s5 + $0x148] ss:$16 sps:$4 sm:$0xff]   ;;  %v6908_v36 = vld [vmem:[%s9544_s5 + $0x1ac] ss:$16 sps:$4 sm:$0xff]  }
 0x41e   : > { %v3268_v0 = vmax.f32 %v6185_v63, 0.0  ;;  %4613 = vmatprep.mubr.bf16.mxu0 %v6821_v37  ;;  %v6907_v37 = vld [vmem:[%s9544_s5 + $0x188] ss:$16 sps:$4 sm:$0xff]   ;;  %v6911_v63 = vld [vmem:[%s9544_s5 + $0x1cc] ss:$16 sps:$4 sm:$0xff]  }
 0x41f   : > { %v6910_v3 = vld [vmem:[%s9544_s5 + $0x1a8] ss:$16 sps:$4 sm:$0xff]  }
 0x420   : > { %v3428_v9 = vpack.c.bf16 %v3268_v0, %v3267_v41  ;;  %v6913_v15 = vld [vmem:[%s9544_s5 + $0x1c8] ss:$16 sps:$4 sm:$0xff]   ;;  %v6914_v41 = vld [vmem:[%s9544_s5 + $0x1ec] ss:$16 sps:$4 sm:$0xff]   ;;  %v9258_v0 = vpop.permute.xlu1 %3650 }
 0x422   : > { %4773 = vmatpush1.bf16.msra.mxu0 %v3428_v9  ;;  %v9260_v9 = vpop.permute.xlu0 %3645 }
 0x425   : > { %4614 = vmatmul.mubr.bf16.gmra.mrb[96].mxu0 %v6823_v18  ;;  %v6916_v18 = vld [vmem:[%s9544_s5 + $0x1e8] ss:$16 sps:$4 sm:$0xff]  }
 0x426   : > { %4621 = vmatprep.mubr.bf16.mxu0 %v6824_v30  ;;  %v6917_v30 = vld [vmem:[%s9544_s5 + $0x20c] ss:$16 sps:$4 sm:$0xff]  }
 0x42d   : > { %4622 = vmatmul.mubr.bf16.gmra.mrb[100].mxu0 %v6826_v44  ;;  %v9268_v44 = vpop.permute.xlu1 %3660 }
 0x42e   : > { %4629 = vmatprep.mubr.bf16.mxu0 %v6827_v56  ;;  %v9270_v56 = vpop.permute.xlu0 %3655 }
 0x435   : > { %4630 = vmatmul.mubr.bf16.gmra.mrb[104].mxu0 %v6829_v31  ;;  %v6919_v31 = vld [vmem:[%s9544_s5 + $0x208] ss:$16 sps:$4 sm:$0xff]  }
 0x436   : > { %4637 = vmatprep.mubr.bf16.mxu0 %v6830_v4  ;;  %v6920_v4 = vld [vmem:[%s9544_s5 + $0x22c] ss:$16 sps:$4 sm:$0xff]  }
 0x43d   : > { %4638 = vmatmul.mubr.bf16.gmra.mrb[108].mxu0 %v6832_v42  ;;  %v9278_v42 = vpop.permute.xlu1 %3670 }
 0x43e   : > { %4645 = vmatprep.mubr.bf16.mxu0 %v6833_v29  ;;  %v9280_v29 = vpop.permute.xlu0 %3665 }
 0x445   : > { %4646 = vmatmul.mubr.bf16.gmra.mrb[112].mxu0 %v6835_v26  ;;  %v9282_v26 = vpop.permute.xlu1 %3680 }
 0x446   : > { %4653 = vmatprep.mubr.bf16.mxu0 %v6836_v7  ;;  %v6922_v7 = vld [vmem:[%s9544_s5 + $0x228] ss:$16 sps:$4 sm:$0xff]  }
 0x44d   : > { %4654 = vmatmul.mubr.bf16.gmra.mrb[116].mxu0 %v6838_v51  ;;  %v9287_v51 = vpop.permute.xlu0 %3675 }
 0x44e   : > { %4661 = vmatprep.mubr.bf16.mxu0 %v6839_v2  ;;  %v6923_v2 = vld [vmem:[%s9544_s5 + $0x24c] ss:$16 sps:$4 sm:$0xff]  }
 0x455   : > { %4662 = vmatmul.mubr.bf16.gmra.mrb[120].mxu0 %v6841_v16  ;;  %v9292_v16 = vpop.permute.xlu1 %3690 }
 0x456   : > { %4669 = vmatprep.mubr.bf16.mxu0 %v6842_v43  ;;  %v9294_v43 = vpop.permute.xlu0 %3685 }
 0x45d   : > { %4670 = vmatmul.mubr.bf16.gmra.mrb[124].mxu0 %v6844_v8  ;;  %v6925_v8 = vld [vmem:[%s9544_s5 + $0x248] ss:$16 sps:$4 sm:$0xff]  }
 0x45e   : > { %4677 = vmatprep.mubr.bf16.mxu0 %v6845_v50  ;;  %v6926_v50 = vld [vmem:[%s9544_s5 + $0x26c] ss:$16 sps:$4 sm:$0xff]  }
 0x465   : > { %4678 = vmatmul.mubr.bf16.gmra.mrb[128].mxu0 %v6847_v28  ;;  %v9302_v28 = vpop.permute.xlu1 %3700 }
 0x466   : > { %4685 = vmatprep.mubr.bf16.mxu0 %v6848_v22  ;;  %v9304_v22 = vpop.permute.xlu0 %3695 }
 0x46d   : > { %4686 = vmatmul.mubr.bf16.gmra.mrb[132].mxu0 %v6850_v24  ;;  %v6928_v24 = vld [vmem:[%s9544_s5 + $0x268] ss:$16 sps:$4 sm:$0xff]  }
 0x46e   : > { %4693 = vmatprep.mubr.bf16.mxu0 %v6851_v11  ;;  %v6929_v11 = vld [vmem:[%s9544_s5 + $0x28c] ss:$16 sps:$4 sm:$0xff]  }
 0x475   : > { %4694 = vmatmul.mubr.bf16.gmra.mrb[136].mxu0 %v6853_v12  ;;  %v9312_v12 = vpop.permute.xlu1 %3710 }
 0x476   : > { %4701 = vmatprep.mubr.bf16.mxu0 %v6854_v14  ;;  %v9314_v14 = vpop.permute.xlu0 %3705 }
 0x47d   : > { %4702 = vmatmul.mubr.bf16.gmra.mrb[140].mxu0 %v6856_v46  ;;  %v9316_v46 = vpop.permute.xlu1 %3720 }
 0x47e   : > { %4709 = vmatprep.mubr.bf16.mxu0 %v6857_v39  ;;  %v6931_v39 = vld [vmem:[%s9544_s5 + $0x288] ss:$16 sps:$4 sm:$0xff]  }
 0x485   : > { %4710 = vmatmul.mubr.bf16.gmra.mrb[144].mxu0 %v6859_v57  ;;  %v9321_v57 = vpop.permute.xlu0 %3715 }
 0x486   : > { %4717 = vmatprep.mubr.bf16.mxu0 %v6860_v32  ;;  %v6932_v32 = vld [vmem:[%s9544_s5 + $0x2ac] ss:$16 sps:$4 sm:$0xff]  }
 0x48d   : > { %4718 = vmatmul.mubr.bf16.gmra.mrb[148].mxu0 %v6862_v54  ;;  %v9326_v54 = vpop.permute.xlu1 %3730 }
 0x48e   : > { %4725 = vmatprep.mubr.bf16.mxu0 %v6863_v49  ;;  %v9328_v49 = vpop.permute.xlu0 %3725 }
 0x495   : > { %4726 = vmatmul.mubr.bf16.gmra.mrb[152].mxu0 %v6865_v19  ;;  %v6934_v19 = vld [vmem:[%s9544_s5 + $0x2a8] ss:$16 sps:$4 sm:$0xff]  }
 0x496   : > { %4733 = vmatprep.mubr.bf16.mxu0 %v6866_v61  ;;  %v6935_v61 = vld [vmem:[%s9544_s5 + $0x2cc] ss:$16 sps:$4 sm:$0xff]  }
 0x49d   : > { %4734 = vmatmul.mubr.bf16.gmra.mrb[156].mxu0 %v6868_v47  ;;  %v9336_v47 = vpop.permute.xlu1 %3740 }
 0x49e   : > { %4774 = vmatprep.mubr.bf16.mxu0 %v6871_v23  ;;  %v9338_v23 = vpop.permute.xlu0 %3735 }
 0x4a5   : > { %4775 = vmatmul.mubr.bf16.vlgmr.msra.gmra.mrb[32].mxu0 %v6869_v33  ;;  %v6937_v33 = vld [vmem:[%s9544_s5 + $0x2c8] ss:$16 sps:$4 sm:$0xff]  }
 0x4a6   : > { %4782 = vmatprep.mubr.bf16.mxu0 %v6872_v6  ;;  %v6938_v6 = vld [vmem:[%s9544_s5 + $0x2ec] ss:$16 sps:$4 sm:$0xff]  }
 0x4ad   : > { %4783 = vmatmul.mubr.bf16.gmra.mrb[36].mxu0 %v6874_v27  ;;  %v9346_v27 = vpop.permute.xlu1 %3750 }
 0x4ae   : > { %4790 = vmatprep.mubr.bf16.mxu0 %v6875_v25  ;;  %v9348_v25 = vpop.permute.xlu0 %3745 }
 0x4b5   : > { %4791 = vmatmul.mubr.bf16.gmra.mrb[40].mxu0 %v6877_v58  ;;  %v9350_v58 = vpop.permute.xlu1 %3760 }
 0x4b6   : > { %4798 = vmatprep.mubr.bf16.mxu0 %v6878_v62  ;;  %v6940_v62 = vld [vmem:[%s9544_s5 + $0x2e8] ss:$16 sps:$4 sm:$0xff]  }
 0x4bd   : > { %4799 = vmatmul.mubr.bf16.gmra.mrb[44].mxu0 %v6880_v60  ;;  %v9355_v60 = vpop.permute.xlu0 %3755 }
 0x4be   : > { %4806 = vmatprep.mubr.bf16.mxu0 %v6881_v1  ;;  %v6941_v1 = vld [vmem:[%s9544_s5 + $0x30c] ss:$16 sps:$4 sm:$0xff]  }
 0x4c5   : > { %4807 = vmatmul.mubr.bf16.gmra.mrb[48].mxu0 %v6883_v21  ;;  %v9360_v21 = vpop.permute.xlu1 %3770 }
 0x4c6   : > { %4814 = vmatprep.mubr.bf16.mxu0 %v6884_v38  ;;  %v9362_v38 = vpop.permute.xlu0 %3765 }
 0x4cd   : > { %4815 = vmatmul.mubr.bf16.gmra.mrb[52].mxu0 %v6886_v5  ;;  %v6943_v5 = vld [vmem:[%s9544_s5 + $0x308] ss:$16 sps:$4 sm:$0xff]  }
 0x4ce   : > { %4822 = vmatprep.mubr.bf16.mxu0 %v6887_v48  ;;  %v6944_v48 = vld [vmem:[%s9544_s5 + $0x32c] ss:$16 sps:$4 sm:$0xff]  }
 0x4d5   : > { %4823 = vmatmul.mubr.bf16.gmra.mrb[56].mxu0 %v6889_v20  ;;  %v9370_v20 = vpop.permute.xlu1 %3780 }
 0x4d6   : > { %4830 = vmatprep.mubr.bf16.mxu0 %v6890_v13  ;;  %v9372_v13 = vpop.permute.xlu0 %3775 }
 0x4dd   : > { %4831 = vmatmul.mubr.bf16.gmra.mrb[60].mxu0 %v6892_v55  ;;  %v6946_v55 = vld [vmem:[%s9544_s5 + $0x328] ss:$16 sps:$4 sm:$0xff]  }
 0x4de   : > { %4838 = vmatprep.mubr.bf16.mxu0 %v6893_v45  ;;  %v6947_v45 = vld [vmem:[%s9544_s5 + $0x34c] ss:$16 sps:$4 sm:$0xff]  }
 0x4e5   : > { %4839 = vmatmul.mubr.bf16.gmra.mrb[64].mxu0 %v6895_v40  ;;  %v9380_v40 = vpop.permute.xlu1 %3790 }
 0x4e6   : > { %4846 = vmatprep.mubr.bf16.mxu0 %v6896_v53  ;;  %v9382_v53 = vpop.permute.xlu0 %3785 }
 0x4ed   : > { %4847 = vmatmul.mubr.bf16.gmra.mrb[68].mxu0 %v6898_v59  ;;  %v9384_v59 = vpop.permute.xlu1 %3800 }
 0x4ee   : > { %4854 = vmatprep.mubr.bf16.mxu0 %v6899_v52  ;;  %v6949_v52 = vld [vmem:[%s9544_s5 + $0x348] ss:$16 sps:$4 sm:$0xff]  }
 0x4f5   : > { %4855 = vmatmul.mubr.bf16.gmra.mrb[72].mxu0 %v6901_v35  ;;  %v9389_v35 = vpop.permute.xlu0 %3795 }
 0x4f6   : > { %4862 = vmatprep.mubr.bf16.mxu0 %v6902_v34  ;;  %v6950_v34 = vld [vmem:[%s9544_s5 + $0x36c] ss:$16 sps:$4 sm:$0xff]  }
 0x4fd   : > { %4863 = vmatmul.mubr.bf16.gmra.mrb[76].mxu0 %v6904_v17  ;;  %v9394_v17 = vpop.permute.xlu1 %3810 }
 0x4fe   : > { %4870 = vmatprep.mubr.bf16.mxu0 %v6905_v10  ;;  %v9396_v10 = vpop.permute.xlu0 %3805 }
 0x505   : > { %4871 = vmatmul.mubr.bf16.gmra.mrb[80].mxu0 %v6907_v37 }
 0x506   : > { %4878 = vmatprep.mubr.bf16.mxu0 %v6908_v36  ;;  %v9618_v36 = vld [vmem:[#allocation23_spill] sm:$0xff] }
 0x50d   : > { %4879 = vmatmul.mubr.bf16.gmra.mrb[84].mxu0 %v6910_v3 }
 0x50e   : > { %4886 = vmatprep.mubr.bf16.mxu0 %v6911_v63 }
 0x515   : > { %4887 = vmatmul.mubr.bf16.gmra.mrb[88].mxu0 %v6913_v15  ;;  %v6952_v15 = vld [vmem:[%s9544_s5 + $0x368] ss:$16 sps:$4 sm:$0xff]  }
 0x516   : > { %4894 = vmatprep.mubr.bf16.mxu0 %v6914_v41 }
 0x51d   : > { %4895 = vmatmul.mubr.bf16.gmra.mrb[92].mxu0 %v6916_v18  ;;  %v6953_v18 = vld [vmem:[%s9544_s5 + $0x38c] ss:$16 sps:$4 sm:$0xff]  }
 0x51e   : > { %4902 = vmatprep.mubr.bf16.mxu0 %v6917_v30 }
 0x525   : > { %4903 = vmatmul.mubr.bf16.gmra.mrb[96].mxu0 %v6919_v31  ;;  %v9619_v31 = vld [vmem:[#allocation22_spill] sm:$0xff] }
 0x526   : > { %4910 = vmatprep.mubr.bf16.mxu0 %v6920_v4 }
 0x52d   : > { %4911 = vmatmul.mubr.bf16.gmra.mrb[100].mxu0 %v6922_v7 }
 0x52e   : > { %4918 = vmatprep.mubr.bf16.mxu0 %v6923_v2 }
 0x535   : > { %4919 = vmatmul.mubr.bf16.gmra.mrb[104].mxu0 %v6925_v8  ;;  %v5167_v8 = vpop.permute.xlu1 %5166 }
 0x536   : > { %4926 = vmatprep.mubr.bf16.mxu0 %v6926_v50  ;;  %v5162_v50 = vpop.permute.xlu0 %5161 }
 0x53d   : > { %4927 = vmatmul.mubr.bf16.gmra.mrb[108].mxu0 %v6928_v24 }
 0x53e   : > { %4934 = vmatprep.mubr.bf16.mxu0 %v6929_v11 }
 0x545   : > { %4935 = vmatmul.mubr.bf16.gmra.mrb[112].mxu0 %v6931_v39 }
 0x546   : > { %4942 = vmatprep.mubr.bf16.mxu0 %v6932_v32 }
 0x54d   : > { %4943 = vmatmul.mubr.bf16.gmra.mrb[116].mxu0 %v6934_v19  ;;  %v9620_v19 = vld [vmem:[#allocation25_spill] sm:$0xff] }
 0x54e   : > { %4950 = vmatprep.mubr.bf16.mxu0 %v6935_v61 }
 0x555   : > { %4951 = vmatmul.mubr.bf16.gmra.mrb[120].mxu0 %v6937_v33 }
 0x556   : > { %4958 = vmatprep.mubr.bf16.mxu0 %v6938_v6  ;;  %v6955_v6 = vld [vmem:[%s9544_s5 + $0x388] ss:$16 sps:$4 sm:$0xff]  }
 0x55d   : > { %4959 = vmatmul.mubr.bf16.gmra.mrb[124].mxu0 %v6940_v62 }
 0x55e   : > { %4966 = vmatprep.mubr.bf16.mxu0 %v6941_v1  ;;  %v6956_v1 = vld [vmem:[%s9544_s5 + $0x3ac] ss:$16 sps:$4 sm:$0xff]  }
 0x565   : > { %4967 = vmatmul.mubr.bf16.gmra.mrb[128].mxu0 %v6943_v5 }
 0x566   : > { %4974 = vmatprep.mubr.bf16.mxu0 %v6944_v48  ;;  %v9621_v48 = vld [vmem:[#allocation24_spill] sm:$0xff] }
 0x56d   : > { %4975 = vmatmul.mubr.bf16.gmra.mrb[132].mxu0 %v6946_v55 }
 0x56e   : > { %4982 = vmatprep.mubr.bf16.mxu0 %v6947_v45 }
 0x575   : > { %4983 = vmatmul.mubr.bf16.gmra.mrb[136].mxu0 %v6949_v52  ;;  %v5172_v52 = vpop.permute.xlu0 %5171 }
 0x576   : > { %4990 = vmatprep.mubr.bf16.mxu0 %v6950_v34 }
 0x578   : > { %v4776_v37 = vpop.f32.mrb[32].mxu0 }
 0x579   : > { %v6186_v3 = vadd.f32 %v4776_v37, %v9618_v36  ;;  %v4778_v63 = vpop.f32.mrb[33].mxu0  ;;  %v5177_v36 = vpop.permute.xlu1 %5176 }
 0x57a   : > { %v4779_v41 = vpop.f32.mrb[34].mxu0 }
 0x57b   : > { %v5031_v30 = vmax.f32 %v6186_v3, 0.0  ;;  %v6187_v4 = vadd.f32 %v4779_v41, %v9619_v31  ;;  %v4781_v7 = vpop.f32.mrb[35].mxu0 }
 0x57d   : > { %v5032_v2 = vmax.f32 %v6187_v4, 0.0  ;;  %4991 = vmatmul.mubr.bf16.gmra.mrb[140].mxu0 %v6952_v15  ;;  %v5479_v24 = vmul.f32 %v5162_v50, %v5031_v30  ;;  %v6958_v4 = vld [vmem:[%s9544_s5 + $0x3a8] ss:$16 sps:$4 sm:$0xff]  }
 0x57e   : > { %4998 = vmatprep.mubr.bf16.mxu0 %v6953_v18  ;;  %v9622_v18 = vld [vmem:[#allocation27_spill] sm:$0xff]  ;;  %v9623_v50 = vld [vmem:[#allocation26_spill] sm:$0xff] }
 0x57f   : > { %v5480_v11 = vmul.f32 %v5167_v8, %v5032_v2  ;;  %v6959_v2 = vld [vmem:[%s9544_s5 + $0x3cc] ss:$16 sps:$4 sm:$0xff]  }
 0x580   : > { %v4784_v39 = vpop.f32.mrb[36].mxu0 }
 0x581   : > { %v5543_v32 = vadd.f32 %v5480_v11, %v5479_v24  ;;  %v6188_v61 = vadd.f32 %v4784_v39, %v9620_v19  ;;  %v4786_v33 = vpop.f32.mrb[37].mxu0  ;;  %v5182_v39 = vpop.permute.xlu0 %5181 }
 0x582   : > { %v4787_v62 = vpop.f32.mrb[38].mxu0 }
 0x583   : > { %v5033_v5 = vmax.f32 %v6188_v61, 0.0  ;;  %v6189_v55 = vadd.f32 %v4787_v62, %v9621_v48  ;;  %v4789_v45 = vpop.f32.mrb[39].mxu0  ;;  %v5187_v61 = vpop.permute.xlu1 %5186 }
 0x584   : > { %v6961_v45 = vld [vmem:[%s9544_s5 + $0x3c8] ss:$16 sps:$4 sm:$0xff]  }
 0x585   : > { %v5481_v34 = vmul.f32 %v5172_v52, %v5033_v5  ;;  %v5034_v37 = vmax.f32 %v6189_v55, 0.0  ;;  %4999 = vmatmul.mubr.bf16.gmra.mrb[144].mxu0 %v6955_v6  ;;  %v9624_v5 = vld [vmem:[#allocation29_spill] sm:$0xff] }
 0x586   : > { %5006 = vmatprep.mubr.bf16.mxu0 %v6956_v1 }
 0x587   : > { %v5544_v3 = vadd.f32 %v5543_v32, %v5481_v34  ;;  %v5482_v63 = vmul.f32 %v5177_v36, %v5034_v37  ;;  %v6962_v34 = vld [vmem:[%s9544_s5 + $0x3ec] ss:$16 sps:$4 sm:$0xff]  }
 0x588   : > { %v4792_v15 = vpop.f32.mrb[40].mxu0  ;;  %v9625_v36 = vld [vmem:[#allocation28_spill] sm:$0xff] }
 0x589   : > { %v5545_v41 = vadd.f32 %v5544_v3, %v5482_v63  ;;  %v6190_v30 = vadd.f32 %v4792_v15, %v9622_v18  ;;  %v4794_v31 = vpop.f32.mrb[41].mxu0  ;;  %v5192_v15 = vpop.permute.xlu0 %5191 }
 0x58a   : > { %v4795_v7 = vpop.f32.mrb[42].mxu0 }
 0x58b   : > { %v5035_v8 = vmax.f32 %v6190_v30, 0.0  ;;  %v6191_v24 = vadd.f32 %v4795_v7, %v9623_v50  ;;  %v4797_v11 = vpop.f32.mrb[43].mxu0  ;;  %v5197_v30 = vpop.permute.xlu1 %5196 }
 0x58c   : > { %v6964_v11 = vld [vmem:[%s9544_s5 + $0x3e8] ss:$16 sps:$4 sm:$0xff]  }
 0x58d   : > { %v5483_v32 = vmul.f32 %v5182_v39, %v5035_v8  ;;  %v5036_v19 = vmax.f32 %v6191_v24, 0.0  ;;  %5007 = vmatmul.mubr.bf16.gmra.mrb[148].mxu0 %v6958_v4  ;;  %v9626_v8 = vld [vmem:[#allocation31_spill] sm:$0xff] }
 0x58e   : > { %5014 = vmatprep.mubr.bf16.mxu0 %v6959_v2 }
 0x58f   : > { %v5546_v33 = vadd.f32 %v5545_v41, %v5483_v32  ;;  %v5484_v6 = vmul.f32 %v5187_v61, %v5036_v19  ;;  %v9627_v19 = vld [vmem:[#allocation30_spill] sm:$0xff] }
 0x590   : > { %v4800_v62 = vpop.f32.mrb[44].mxu0 }
 0x591   : > { %v5547_v1 = vadd.f32 %v5546_v33, %v5484_v6  ;;  %v6192_v48 = vadd.f32 %v4800_v62, %v9624_v5  ;;  %v4802_v55 = vpop.f32.mrb[45].mxu0  ;;  %v5202_v6 = vpop.permute.xlu0 %5201 }
 0x592   : > { %v4803_v52 = vpop.f32.mrb[46].mxu0 }
 0x593   : > { %v5037_v37 = vmax.f32 %v6192_v48, 0.0  ;;  %v6193_v3 = vadd.f32 %v4803_v52, %v9625_v36  ;;  %v4805_v63 = vpop.f32.mrb[47].mxu0 }
 0x595   : > { %v5485_v41 = vmul.f32 %v5192_v15, %v5037_v37  ;;  %v5038_v18 = vmax.f32 %v6193_v3, 0.0  ;;  %5015 = vmatmul.mubr.bf16.gmra.mrb[152].mxu0 %v6961_v45  ;;  %v9629_v15 = vld [vmem:[#allocation32_spill] sm:$0xff] }
 0x596   : > { %5022 = vmatprep.mubr.bf16.mxu0 %v6962_v34  ;;  %v9628_v34 = vld [vmem:[#allocation33_spill] sm:$0xff] }
 0x597   : > { %v5548_v31 = vadd.f32 %v5547_v1, %v5485_v41  ;;  %v5486_v4 = vmul.f32 %v5197_v30, %v5038_v18  ;;  %v5207_v1 = vpop.permute.xlu1 %5206  ;;  %v5212_v30 = vpop.permute.xlu0 %5211 }
 0x598   : > { %v4808_v7 = vpop.f32.mrb[48].mxu0 }
 0x599   : > { %v5549_v2 = vadd.f32 %v5548_v31, %v5486_v4  ;;  %v6194_v50 = vadd.f32 %v4808_v7, %v9626_v8  ;;  %v4810_v24 = vpop.f32.mrb[49].mxu0 }
 0x59a   : > { %v4811_v39 = vpop.f32.mrb[50].mxu0 }
 0x59b   : > { %v5039_v32 = vmax.f32 %v6194_v50, 0.0  ;;  %v6195_v61 = vadd.f32 %v4811_v39, %v9627_v19  ;;  %v4813_v33 = vpop.f32.mrb[51].mxu0  ;;  %v5217_v7 = vpop.permute.xlu1 %5216 }
 0x59c   : > { %v9631_v33 = vld [vmem:[#allocation34_spill] sm:$0xff] }
 0x59d   : > { %v5487_v62 = vmul.f32 %v5202_v6, %v5039_v32  ;;  %v5040_v5 = vmax.f32 %v6195_v61, 0.0  ;;  %5023 = vmatmul.mubr.bf16.gmra.mrb[156].mxu0 %v6964_v11 }
 0x59f   : > { %v5550_v48 = vadd.f32 %v5549_v2, %v5487_v62  ;;  %v5488_v55 = vmul.f32 %v5207_v1, %v5040_v5  ;;  %v9630_v2 = vld [vmem:[#allocation35_spill] sm:$0xff]  ;;  %v5222_v5 = vpop.permute.xlu0 %5221 }
 0x5a0   : > { %v4816_v45 = vpop.f32.mrb[52].mxu0 }
 0x5a1   : > { %v5551_v52 = vadd.f32 %v5550_v48, %v5488_v55  ;;  %v6196_v37 = vadd.f32 %v4816_v45, %v9628_v34  ;;  %v4818_v36 = vpop.f32.mrb[53].mxu0  ;;  %v5227_v55 = vpop.permute.xlu1 %5226 }
 0x5a2   : > { %v4819_v3 = vpop.f32.mrb[54].mxu0 }
 0x5a3   : > { %v5041_v63 = vmax.f32 %v6196_v37, 0.0  ;;  %v6197_v41 = vadd.f32 %v4819_v3, %v9629_v15  ;;  %v4821_v18 = vpop.f32.mrb[55].mxu0 }
 0x5a4   : > { %v9633_v18 = vld [vmem:[#allocation36_spill] sm:$0xff] }
 0x5a5   : > { %v5489_v31 = vmul.f32 %v5212_v30, %v5041_v63  ;;  %v5042_v4 = vmax.f32 %v6197_v41, 0.0 }
 0x5a7   : > { %v5552_v8 = vadd.f32 %v5551_v52, %v5489_v31  ;;  %v5490_v50 = vmul.f32 %v5217_v7, %v5042_v4  ;;  %v9632_v52 = vld [vmem:[#allocation37_spill] sm:$0xff]  ;;  %v5232_v4 = vpop.permute.xlu0 %5231 }
 0x5a8   : > { %v4824_v24 = vpop.f32.mrb[56].mxu0 }
 0x5a9   : > { %v5553_v11 = vadd.f32 %v5552_v8, %v5490_v50  ;;  %v6198_v39 = vadd.f32 %v4824_v24, %v9630_v2  ;;  %v4826_v32 = vpop.f32.mrb[57].mxu0  ;;  %v5237_v50 = vpop.permute.xlu1 %5236 }
 0x5aa   : > { %v4827_v19 = vpop.f32.mrb[58].mxu0 }
 0x5ab   : > { %v5043_v61 = vmax.f32 %v6198_v39, 0.0  ;;  %v6199_v6 = vadd.f32 %v4827_v19, %v9631_v33  ;;  %v4829_v62 = vpop.f32.mrb[59].mxu0 }
 0x5ac   : > { %v9635_v62 = vld [vmem:[#allocation38_spill] sm:$0xff] }
 0x5ad   : > { %v5491_v1 = vmul.f32 %v5222_v5, %v5043_v61  ;;  %v5044_v48 = vmax.f32 %v6199_v6, 0.0 }
 0x5af   : > { %v5554_v45 = vadd.f32 %v5553_v11, %v5491_v1  ;;  %v5492_v34 = vmul.f32 %v5227_v55, %v5044_v48  ;;  %v9634_v11 = vld [vmem:[#allocation39_spill] sm:$0xff]  ;;  %v5242_v48 = vpop.permute.xlu0 %5241 }
 0x5b0   : > { %v4832_v37 = vpop.f32.mrb[60].mxu0 }
 0x5b1   : > { %v5555_v36 = vadd.f32 %v5554_v45, %v5492_v34  ;;  %v6200_v3 = vadd.f32 %v4832_v37, %v9632_v52  ;;  %v4834_v63 = vpop.f32.mrb[61].mxu0  ;;  %v5247_v34 = vpop.permute.xlu1 %5246 }
 0x5b2   : > { %v4835_v15 = vpop.f32.mrb[62].mxu0 }
 0x5b3   : > { %v5045_v41 = vmax.f32 %v6200_v3, 0.0  ;;  %v6201_v30 = vadd.f32 %v4835_v15, %v9633_v18  ;;  %v4837_v31 = vpop.f32.mrb[63].mxu0 }
 0x5b4   : > { %v9637_v31 = vld [vmem:[#allocation40_spill] sm:$0xff] }
 0x5b5   : > { %v5493_v7 = vmul.f32 %v5232_v4, %v5045_v41  ;;  %v5046_v8 = vmax.f32 %v6201_v30, 0.0 }
 0x5b7   : > { %v5556_v24 = vadd.f32 %v5555_v36, %v5493_v7  ;;  %v5494_v2 = vmul.f32 %v5237_v50, %v5046_v8  ;;  %v9636_v36 = vld [vmem:[#allocation41_spill] sm:$0xff]  ;;  %v5252_v8 = vpop.permute.xlu0 %5251 }
 0x5b8   : > { %v4840_v39 = vpop.f32.mrb[64].mxu0 }
 0x5b9   : > { %v5557_v32 = vadd.f32 %v5556_v24, %v5494_v2  ;;  %v6202_v19 = vadd.f32 %v4840_v39, %v9634_v11  ;;  %v4842_v61 = vpop.f32.mrb[65].mxu0  ;;  %v5257_v2 = vpop.permute.xlu1 %5256 }
 0x5ba   : > { %v4843_v33 = vpop.f32.mrb[66].mxu0 }
 0x5bb   : > { %v5047_v6 = vmax.f32 %v6202_v19, 0.0  ;;  %v6203_v5 = vadd.f32 %v4843_v33, %v9635_v62  ;;  %v4845_v1 = vpop.f32.mrb[67].mxu0 }
 0x5bc   : > { %v9639_v1 = vld [vmem:[#allocation42_spill] sm:$0xff] }
 0x5bd   : > { %v5495_v55 = vmul.f32 %v5242_v48, %v5047_v6  ;;  %v5048_v45 = vmax.f32 %v6203_v5, 0.0 }
 0x5bf   : > { %v5558_v37 = vadd.f32 %v5557_v32, %v5495_v55  ;;  %v5496_v52 = vmul.f32 %v5247_v34, %v5048_v45  ;;  %v9638_v32 = vld [vmem:[#allocation43_spill] sm:$0xff]  ;;  %v5262_v45 = vpop.permute.xlu0 %5261 }
 0x5c0   : > { %v4848_v3 = vpop.f32.mrb[68].mxu0 }
 0x5c1   : > { %v5559_v63 = vadd.f32 %v5558_v37, %v5496_v52  ;;  %v6204_v15 = vadd.f32 %v4848_v3, %v9636_v36  ;;  %v4850_v41 = vpop.f32.mrb[69].mxu0  ;;  %v5267_v52 = vpop.permute.xlu1 %5266 }
 0x5c2   : > { %v4851_v18 = vpop.f32.mrb[70].mxu0 }
 0x5c3   : > { %v5049_v30 = vmax.f32 %v6204_v15, 0.0  ;;  %v6205_v4 = vadd.f32 %v4851_v18, %v9637_v31  ;;  %v4853_v7 = vpop.f32.mrb[71].mxu0 }
 0x5c4   : > { %v9641_v7 = vld [vmem:[#allocation44_spill] sm:$0xff] }
 0x5c5   : > { %v5497_v50 = vmul.f32 %v5252_v8, %v5049_v30  ;;  %v5050_v24 = vmax.f32 %v6205_v4, 0.0 }
 0x5c7   : > { %v5560_v39 = vadd.f32 %v5559_v63, %v5497_v50  ;;  %v5498_v11 = vmul.f32 %v5257_v2, %v5050_v24  ;;  %v9640_v63 = vld [vmem:[#allocation45_spill] sm:$0xff]  ;;  %v5272_v24 = vpop.permute.xlu0 %5271 }
 0x5c8   : > { %v4856_v19 = vpop.f32.mrb[72].mxu0 }
 0x5c9   : > { %v5561_v61 = vadd.f32 %v5560_v39, %v5498_v11  ;;  %v6206_v33 = vadd.f32 %v4856_v19, %v9638_v32  ;;  %v4858_v6 = vpop.f32.mrb[73].mxu0  ;;  %v5277_v11 = vpop.permute.xlu1 %5276 }
 0x5ca   : > { %v4859_v62 = vpop.f32.mrb[74].mxu0 }
 0x5cb   : > { %v5051_v5 = vmax.f32 %v6206_v33, 0.0  ;;  %v6207_v48 = vadd.f32 %v4859_v62, %v9639_v1  ;;  %v4861_v55 = vpop.f32.mrb[75].mxu0 }
 0x5cc   : > { %v9643_v55 = vld [vmem:[#allocation46_spill] sm:$0xff] }
 0x5cd   : > { %v5499_v34 = vmul.f32 %v5262_v45, %v5051_v5  ;;  %v5052_v37 = vmax.f32 %v6207_v48, 0.0 }
 0x5cf   : > { %v5562_v3 = vadd.f32 %v5561_v61, %v5499_v34  ;;  %v5500_v36 = vmul.f32 %v5267_v52, %v5052_v37  ;;  %v9642_v61 = vld [vmem:[#allocation47_spill] sm:$0xff]  ;;  %v5282_v37 = vpop.permute.xlu0 %5281 }
 0x5d0   : > { %v4864_v15 = vpop.f32.mrb[76].mxu0 }
 0x5d1   : > { %v5563_v41 = vadd.f32 %v5562_v3, %v5500_v36  ;;  %v6208_v18 = vadd.f32 %v4864_v15, %v9640_v63  ;;  %v4866_v30 = vpop.f32.mrb[77].mxu0  ;;  %v5287_v36 = vpop.permute.xlu1 %5286 }
 0x5d2   : > { %v4867_v31 = vpop.f32.mrb[78].mxu0 }
 0x5d3   : > { %v5053_v4 = vmax.f32 %v6208_v18, 0.0  ;;  %v6209_v8 = vadd.f32 %v4867_v31, %v9641_v7  ;;  %v4869_v50 = vpop.f32.mrb[79].mxu0 }
 0x5d4   : > { %v9645_v50 = vld [vmem:[#allocation48_spill] sm:$0xff] }
 0x5d5   : > { %v5501_v2 = vmul.f32 %v5272_v24, %v5053_v4  ;;  %v5054_v39 = vmax.f32 %v6209_v8, 0.0 }
 0x5d7   : > { %v5564_v19 = vadd.f32 %v5563_v41, %v5501_v2  ;;  %v5502_v32 = vmul.f32 %v5277_v11, %v5054_v39  ;;  %v9644_v41 = vld [vmem:[#allocation49_spill] sm:$0xff]  ;;  %v5292_v39 = vpop.permute.xlu0 %5291 }
 0x5d8   : > { %v4872_v33 = vpop.f32.mrb[80].mxu0 }
 0x5d9   : > { %v5565_v6 = vadd.f32 %v5564_v19, %v5502_v32  ;;  %v6210_v62 = vadd.f32 %v4872_v33, %v9642_v61  ;;  %v4874_v5 = vpop.f32.mrb[81].mxu0  ;;  %v5297_v32 = vpop.permute.xlu1 %5296 }
 0x5da   : > { %v4875_v1 = vpop.f32.mrb[82].mxu0 }
 0x5db   : > { %v5055_v48 = vmax.f32 %v6210_v62, 0.0  ;;  %v6211_v45 = vadd.f32 %v4875_v1, %v9643_v55  ;;  %v4877_v34 = vpop.f32.mrb[83].mxu0 }
 0x5dc   : > { %v9647_v34 = vld [vmem:[#allocation50_spill] sm:$0xff] }
 0x5dd   : > { %v5503_v52 = vmul.f32 %v5282_v37, %v5055_v48  ;;  %v5056_v3 = vmax.f32 %v6211_v45, 0.0 }
 0x5df   : > { %v5566_v15 = vadd.f32 %v5565_v6, %v5503_v52  ;;  %v5504_v63 = vmul.f32 %v5287_v36, %v5056_v3  ;;  %v9646_v6 = vld [vmem:[#allocation51_spill] sm:$0xff]  ;;  %v5302_v3 = vpop.permute.xlu0 %5301 }
 0x5e0   : > { %v4880_v18 = vpop.f32.mrb[84].mxu0 }
 0x5e1   : > { %v5567_v30 = vadd.f32 %v5566_v15, %v5504_v63  ;;  %v6212_v31 = vadd.f32 %v4880_v18, %v9644_v41  ;;  %v4882_v4 = vpop.f32.mrb[85].mxu0  ;;  %v5307_v63 = vpop.permute.xlu1 %5306 }
 0x5e2   : > { %v4883_v7 = vpop.f32.mrb[86].mxu0 }
 0x5e3   : > { %v5057_v8 = vmax.f32 %v6212_v31, 0.0  ;;  %v6213_v24 = vadd.f32 %v4883_v7, %v9645_v50  ;;  %v4885_v2 = vpop.f32.mrb[87].mxu0 }
 0x5e5   : > { %v5505_v11 = vmul.f32 %v5292_v39, %v5057_v8  ;;  %v5058_v19 = vmax.f32 %v6213_v24, 0.0  ;;  %v5312_v39 = vpop.permute.xlu0 %5311 }
 0x5e7   : > { %v5568_v33 = vadd.f32 %v5567_v30, %v5505_v11  ;;  %v5506_v61 = vmul.f32 %v5297_v32, %v5058_v19  ;;  %v5317_v32 = vpop.permute.xlu1 %5316 }
 0x5e8   : > { %v4888_v62 = vpop.f32.mrb[88].mxu0 }
 0x5e9   : > { %v5569_v5 = vadd.f32 %v5568_v33, %v5506_v61  ;;  %v6214_v1 = vadd.f32 %v4888_v62, %v9646_v6  ;;  %v4890_v48 = vpop.f32.mrb[89].mxu0 }
 0x5ea   : > { %v4891_v55 = vpop.f32.mrb[90].mxu0 }
 0x5eb   : > { %v5059_v45 = vmax.f32 %v6214_v1, 0.0  ;;  %v6215_v37 = vadd.f32 %v4891_v55, %v9647_v34  ;;  %v4893_v52 = vpop.f32.mrb[91].mxu0  ;;  %v5322_v34 = vpop.permute.xlu0 %5321 }
 0x5ec   : > { %v5327_v52 = vpop.permute.xlu1 %5326 }
 0x5ed   : > { %v5507_v36 = vmul.f32 %v5302_v3, %v5059_v45  ;;  %v5060_v15 = vmax.f32 %v6215_v37, 0.0 }
 0x5ef   : > { %v5570_v18 = vadd.f32 %v5569_v5, %v5507_v36  ;;  %v5508_v41 = vmul.f32 %v5307_v63, %v5060_v15 }
 0x5f0   : > { %v4896_v31 = vpop.f32.mrb[92].mxu0 }
 0x5f1   : > { %v5571_v4 = vadd.f32 %v5570_v18, %v5508_v41  ;;  %v6216_v30 = vadd.f32 %v4896_v31, %v9260_v9  ;;  %v4898_v7 = vpop.f32.mrb[93].mxu0 }
 0x5f2   : > { %v4899_v8 = vpop.f32.mrb[94].mxu0  ;;  %v5332_v7 = vpop.permute.xlu0 %5331 }
 0x5f3   : > { %v5061_v50 = vmax.f32 %v6216_v30, 0.0  ;;  %v6217_v24 = vadd.f32 %v4899_v8, %v9258_v0  ;;  %v4901_v2 = vpop.f32.mrb[95].mxu0 }
 0x5f5   : > { %v5509_v11 = vmul.f32 %v5312_v39, %v5061_v50  ;;  %v5062_v19 = vmax.f32 %v6217_v24, 0.0  ;;  %v5337_v50 = vpop.permute.xlu1 %5336 }
 0x5f7   : > { %v5572_v33 = vadd.f32 %v5571_v4, %v5509_v11  ;;  %v5510_v61 = vmul.f32 %v5317_v32, %v5062_v19 }
 0x5f8   : > { %v4904_v62 = vpop.f32.mrb[96].mxu0 }
 0x5f9   : > { %v5573_v6 = vadd.f32 %v5572_v33, %v5510_v61  ;;  %v6218_v5 = vadd.f32 %v4904_v62, %v9270_v56  ;;  %v4906_v1 = vpop.f32.mrb[97].mxu0 }
 0x5fa   : > { %v4907_v48 = vpop.f32.mrb[98].mxu0  ;;  %v5347_v1 = vpop.permute.xlu1 %5346 }
 0x5fb   : > { %v5063_v55 = vmax.f32 %v6218_v5, 0.0  ;;  %v6219_v9 = vadd.f32 %v4907_v48, %v9268_v44  ;;  %v4909_v45 = vpop.f32.mrb[99].mxu0 }
 0x5fd   : > { %v5511_v37 = vmul.f32 %v5322_v34, %v5063_v55  ;;  %v5064_v0 = vmax.f32 %v6219_v9, 0.0 }
 0x5ff   : > { %v5574_v3 = vadd.f32 %v5573_v6, %v5511_v37  ;;  %v5512_v36 = vmul.f32 %v5327_v52, %v5064_v0  ;;  %v5342_v6 = vpop.permute.xlu0 %5341 }
 0x600   : > { %v4912_v15 = vpop.f32.mrb[100].mxu0 }
 0x601   : > { %v5575_v63 = vadd.f32 %v5574_v3, %v5512_v36  ;;  %v6220_v18 = vadd.f32 %v4912_v15, %v9280_v29  ;;  %v4914_v41 = vpop.f32.mrb[101].mxu0 }
 0x602   : > { %v4915_v31 = vpop.f32.mrb[102].mxu0 }
 0x603   : > { %v5065_v4 = vmax.f32 %v6220_v18, 0.0  ;;  %v6221_v56 = vadd.f32 %v4915_v31, %v9278_v42  ;;  %v4917_v30 = vpop.f32.mrb[103].mxu0  ;;  %v5352_v36 = vpop.permute.xlu0 %5351 }
 0x605   : > { %v5513_v8 = vmul.f32 %v5332_v7, %v5065_v4  ;;  %v5066_v44 = vmax.f32 %v6221_v56, 0.0 }
 0x607   : > { %v5576_v24 = vadd.f32 %v5575_v63, %v5513_v8  ;;  %v5514_v2 = vmul.f32 %v5337_v50, %v5066_v44  ;;  %v5357_v63 = vpop.permute.xlu1 %5356  ;;  %v5362_v50 = vpop.permute.xlu0 %5361 }
 0x608   : > { %v4920_v39 = vpop.f32.mrb[104].mxu0 }
 0x609   : > { %v5577_v11 = vadd.f32 %v5576_v24, %v5514_v2  ;;  %v6222_v19 = vadd.f32 %v4920_v39, %v9287_v51  ;;  %v4922_v32 = vpop.f32.mrb[105].mxu0 }
 0x60a   : > { %v4923_v33 = vpop.f32.mrb[106].mxu0 }
 0x60b   : > { %v5067_v61 = vmax.f32 %v6222_v19, 0.0  ;;  %v6223_v29 = vadd.f32 %v4923_v33, %v9282_v26  ;;  %v4925_v62 = vpop.f32.mrb[107].mxu0  ;;  %v5367_v2 = vpop.permute.xlu1 %5366 }
 0x60d   : > { %v5515_v5 = vmul.f32 %v5342_v6, %v5067_v61  ;;  %v5068_v42 = vmax.f32 %v6223_v29, 0.0 }
 0x60f   : > { %v5578_v48 = vadd.f32 %v5577_v11, %v5515_v5  ;;  %v5516_v55 = vmul.f32 %v5347_v1, %v5068_v42  ;;  %v5372_v5 = vpop.permute.xlu0 %5371  ;;  %v5377_v1 = vpop.permute.xlu1 %5376 }
 0x610   : > { %v4928_v9 = vpop.f32.mrb[108].mxu0 }
 0x611   : > { %v5579_v45 = vadd.f32 %v5578_v48, %v5516_v55  ;;  %v6224_v34 = vadd.f32 %v4928_v9, %v9294_v43  ;;  %v4930_v37 = vpop.f32.mrb[109].mxu0 }
 0x612   : > { %v4931_v0 = vpop.f32.mrb[110].mxu0 }
 0x613   : > { %v5069_v52 = vmax.f32 %v6224_v34, 0.0  ;;  %v6225_v51 = vadd.f32 %v4931_v0, %v9292_v16  ;;  %v4933_v3 = vpop.f32.mrb[111].mxu0 }
 0x614   : > { %v5382_v3 = vpop.permute.xlu0 %5381 }
 0x615   : > { %v5517_v15 = vmul.f32 %v5352_v36, %v5069_v52  ;;  %v5070_v26 = vmax.f32 %v6225_v51, 0.0 }
 0x617   : > { %v5580_v18 = vadd.f32 %v5579_v45, %v5517_v15  ;;  %v5518_v41 = vmul.f32 %v5357_v63, %v5070_v26  ;;  %v5387_v15 = vpop.permute.xlu1 %5386 }
 0x618   : > { %v4936_v31 = vpop.f32.mrb[112].mxu0 }
 0x619   : > { %v5581_v4 = vadd.f32 %v5580_v18, %v5518_v41  ;;  %v6226_v56 = vadd.f32 %v4936_v31, %v9304_v22  ;;  %v4938_v30 = vpop.f32.mrb[113].mxu0 }
 0x61a   : > { %v4939_v7 = vpop.f32.mrb[114].mxu0 }
 0x61b   : > { %v5071_v8 = vmax.f32 %v6226_v56, 0.0  ;;  %v6227_v43 = vadd.f32 %v4939_v7, %v9302_v28  ;;  %v4941_v44 = vpop.f32.mrb[115].mxu0 }
 0x61c   : > { %v5397_v44 = vpop.permute.xlu1 %5396 }
 0x61d   : > { %v5519_v24 = vmul.f32 %v5362_v50, %v5071_v8  ;;  %v5072_v16 = vmax.f32 %v6227_v43, 0.0  ;;  %v5392_v8 = vpop.permute.xlu0 %5391 }
 0x61f   : > { %v5582_v39 = vadd.f32 %v5581_v4, %v5519_v24  ;;  %v5520_v11 = vmul.f32 %v5367_v2, %v5072_v16 }
 0x620   : > { %v4944_v19 = vpop.f32.mrb[116].mxu0 }
 0x621   : > { %v5583_v32 = vadd.f32 %v5582_v39, %v5520_v11  ;;  %v6228_v33 = vadd.f32 %v4944_v19, %v9314_v14  ;;  %v4946_v61 = vpop.f32.mrb[117].mxu0 }
 0x622   : > { %v4947_v29 = vpop.f32.mrb[118].mxu0  ;;  %v5402_v61 = vpop.permute.xlu0 %5401 }
 0x623   : > { %v5073_v62 = vmax.f32 %v6228_v33, 0.0  ;;  %v6229_v22 = vadd.f32 %v4947_v29, %v9312_v12  ;;  %v4949_v6 = vpop.f32.mrb[119].mxu0 }
 0x625   : > { %v5521_v42 = vmul.f32 %v5372_v5, %v5073_v62  ;;  %v5074_v28 = vmax.f32 %v6229_v22, 0.0  ;;  %v5407_v62 = vpop.permute.xlu1 %5406 }
 0x627   : > { %v5584_v48 = vadd.f32 %v5583_v32, %v5521_v42  ;;  %v5522_v55 = vmul.f32 %v5377_v1, %v5074_v28 }
 0x628   : > { %v4952_v9 = vpop.f32.mrb[120].mxu0 }
 0x629   : > { %v5585_v45 = vadd.f32 %v5584_v48, %v5522_v55  ;;  %v6230_v34 = vadd.f32 %v4952_v9, %v9321_v57  ;;  %v4954_v37 = vpop.f32.mrb[121].mxu0 }
 0x62a   : > { %v4955_v0 = vpop.f32.mrb[122].mxu0  ;;  %v5417_v37 = vpop.permute.xlu1 %5416 }
 0x62b   : > { %v5075_v52 = vmax.f32 %v6230_v34, 0.0  ;;  %v6231_v14 = vadd.f32 %v4955_v0, %v9316_v46  ;;  %v4957_v51 = vpop.f32.mrb[123].mxu0 }
 0x62d   : > { %v5523_v36 = vmul.f32 %v5382_v3, %v5075_v52  ;;  %v5076_v12 = vmax.f32 %v6231_v14, 0.0 }
 0x62f   : > { %v5586_v26 = vadd.f32 %v5585_v45, %v5523_v36  ;;  %v5524_v63 = vmul.f32 %v5387_v15, %v5076_v12  ;;  %v5412_v45 = vpop.permute.xlu0 %5411 }
 0x630   : > { %v4960_v18 = vpop.f32.mrb[124].mxu0 }
 0x631   : > { %v5587_v41 = vadd.f32 %v5586_v26, %v5524_v63  ;;  %v6232_v31 = vadd.f32 %v4960_v18, %v9328_v49  ;;  %v4962_v4 = vpop.f32.mrb[125].mxu0 }
 0x632   : > { %v4963_v56 = vpop.f32.mrb[126].mxu0 }
 0x633   : > { %v5077_v30 = vmax.f32 %v6232_v31, 0.0  ;;  %v6233_v57 = vadd.f32 %v4963_v56, %v9326_v54  ;;  %v4965_v7 = vpop.f32.mrb[127].mxu0  ;;  %v5422_v63 = vpop.permute.xlu0 %5421 }
 0x635   : > { %v5525_v43 = vmul.f32 %v5392_v8, %v5077_v30  ;;  %v5078_v46 = vmax.f32 %v6233_v57, 0.0 }
 0x637   : > { %v5588_v50 = vadd.f32 %v5587_v41, %v5525_v43  ;;  %v5526_v24 = vmul.f32 %v5397_v44, %v5078_v46  ;;  %v5427_v41 = vpop.permute.xlu1 %5426  ;;  %v5432_v44 = vpop.permute.xlu0 %5431 }
 0x638   : > { %v4968_v16 = vpop.f32.mrb[128].mxu0 }
 0x639   : > { %v5589_v2 = vadd.f32 %v5588_v50, %v5526_v24  ;;  %v6234_v39 = vadd.f32 %v4968_v16, %v9338_v23  ;;  %v4970_v11 = vpop.f32.mrb[129].mxu0 }
 0x63a   : > { %v4971_v19 = vpop.f32.mrb[130].mxu0 }
 0x63b   : > { %v5079_v32 = vmax.f32 %v6234_v39, 0.0  ;;  %v6235_v49 = vadd.f32 %v4971_v19, %v9336_v47  ;;  %v4973_v33 = vpop.f32.mrb[131].mxu0  ;;  %v5437_v24 = vpop.permute.xlu1 %5436 }
 0x63d   : > { %v5527_v29 = vmul.f32 %v5402_v61, %v5079_v32  ;;  %v5080_v54 = vmax.f32 %v6235_v49, 0.0 }
 0x63f   : > { %v5590_v22 = vadd.f32 %v5589_v2, %v5527_v29  ;;  %v5528_v6 = vmul.f32 %v5407_v62, %v5080_v54  ;;  %v5442_v29 = vpop.permute.xlu0 %5441  ;;  %v5447_v62 = vpop.permute.xlu1 %5446 }
 0x640   : > { %v4976_v5 = vpop.f32.mrb[132].mxu0 }
 0x641   : > { %v5591_v42 = vadd.f32 %v5590_v22, %v5528_v6  ;;  %v6236_v28 = vadd.f32 %v4976_v5, %v9348_v25  ;;  %v4978_v1 = vpop.f32.mrb[133].mxu0 }
 0x642   : > { %v4979_v48 = vpop.f32.mrb[134].mxu0 }
 0x643   : > { %v5081_v55 = vmax.f32 %v6236_v28, 0.0  ;;  %v6237_v23 = vadd.f32 %v4979_v48, %v9346_v27  ;;  %v4981_v9 = vpop.f32.mrb[135].mxu0 }
 0x644   : > { %v5452_v9 = vpop.permute.xlu0 %5451 }
 0x645   : > { %v5529_v34 = vmul.f32 %v5412_v45, %v5081_v55  ;;  %v5082_v47 = vmax.f32 %v6237_v23, 0.0 }
 0x647   : > { %v5592_v0 = vadd.f32 %v5591_v42, %v5529_v34  ;;  %v5530_v52 = vmul.f32 %v5417_v37, %v5082_v47  ;;  %v5457_v34 = vpop.permute.xlu1 %5456 }
 0x648   : > { %v4984_v14 = vpop.f32.mrb[136].mxu0 }
 0x649   : > { %v5593_v51 = vadd.f32 %v5592_v0, %v5530_v52  ;;  %v6238_v3 = vadd.f32 %v4984_v14, %v9355_v60  ;;  %v4986_v36 = vpop.f32.mrb[137].mxu0 }
 0x64a   : > { %v4987_v12 = vpop.f32.mrb[138].mxu0 }
 0x64b   : > { %v5083_v15 = vmax.f32 %v6238_v3, 0.0  ;;  %v6239_v25 = vadd.f32 %v4987_v12, %v9350_v58  ;;  %v4989_v26 = vpop.f32.mrb[139].mxu0 }
 0x64c   : > { %v5467_v26 = vpop.permute.xlu1 %5466 }
 0x64d   : > { %v5531_v18 = vmul.f32 %v5422_v63, %v5083_v15  ;;  %v5084_v27 = vmax.f32 %v6239_v25, 0.0  ;;  %v5462_v15 = vpop.permute.xlu0 %5461 }
 0x64f   : > { %v5594_v31 = vadd.f32 %v5593_v51, %v5531_v18  ;;  %v5532_v4 = vmul.f32 %v5427_v41, %v5084_v27 }
 0x650   : > { %v4992_v56 = vpop.f32.mrb[140].mxu0 }
 0x651   : > { %v5595_v30 = vadd.f32 %v5594_v31, %v5532_v4  ;;  %v6240_v57 = vadd.f32 %v4992_v56, %v9362_v38  ;;  %v4994_v7 = vpop.f32.mrb[141].mxu0 }
 0x652   : > { %v4995_v8 = vpop.f32.mrb[142].mxu0 }
 0x653   : > { %v5085_v43 = vmax.f32 %v6240_v57, 0.0  ;;  %v6241_v60 = vadd.f32 %v4995_v8, %v9360_v21  ;;  %v4997_v46 = vpop.f32.mrb[143].mxu0 }
 0x655   : > { %v5533_v50 = vmul.f32 %v5432_v44, %v5085_v43  ;;  %v5086_v58 = vmax.f32 %v6241_v60, 0.0  ;;  %v5477_v43 = vpop.permute.xlu1 %5476 }
 0x657   : > { %v5596_v16 = vadd.f32 %v5595_v30, %v5533_v50  ;;  %v5534_v2 = vmul.f32 %v5437_v24, %v5086_v58 }
 0x658   : > { %v5000_v39 = vpop.f32.mrb[144].mxu0 }
 0x659   : > { %v5597_v11 = vadd.f32 %v5596_v16, %v5534_v2  ;;  %v6242_v19 = vadd.f32 %v5000_v39, %v9372_v13  ;;  %v5002_v32 = vpop.f32.mrb[145].mxu0  ;;  %v5613_v2 = vstv %s5612_s27 }
 0x65a   : > { %v5003_v49 = vpop.f32.mrb[146].mxu0 }
 0x65b   : > { %v5087_v33 = vmax.f32 %v6242_v19, 0.0  ;;  %v6243_v38 = vadd.f32 %v5003_v49, %v9370_v20  ;;  %v5005_v61 = vpop.f32.mrb[147].mxu0 }
 0x65d   : > { %v5535_v54 = vmul.f32 %v5442_v29, %v5087_v33  ;;  %v5088_v21 = vmax.f32 %v6243_v38, 0.0 }
 0x65f   : > { %v5598_v22 = vadd.f32 %v5597_v11, %v5535_v54  ;;  %v5536_v6 = vmul.f32 %v5447_v62, %v5088_v21 }
 0x660   : > { %v5008_v5 = vpop.f32.mrb[148].mxu0 }
 0x661   : > { %v5599_v42 = vadd.f32 %v5598_v22, %v5536_v6  ;;  %v6244_v28 = vadd.f32 %v5008_v5, %v9382_v53  ;;  %v5010_v1 = vpop.f32.mrb[149].mxu0 }
 0x662   : > { %v5011_v48 = vpop.f32.mrb[150].mxu0 }
 0x663   : > { %v5089_v55 = vmax.f32 %v6244_v28, 0.0  ;;  %v6245_v13 = vadd.f32 %v5011_v48, %v9380_v40  ;;  %v5013_v23 = vpop.f32.mrb[151].mxu0 }
 0x665   : > { %v5537_v45 = vmul.f32 %v5452_v9, %v5089_v55  ;;  %v5090_v20 = vmax.f32 %v6245_v13, 0.0 }
 0x667   : > { %v5600_v47 = vadd.f32 %v5599_v42, %v5537_v45  ;;  %v5538_v37 = vmul.f32 %v5457_v34, %v5090_v20 }
 0x668   : > { %v5016_v0 = vpop.f32.mrb[152].mxu0 }
 0x669   : > { %v5601_v52 = vadd.f32 %v5600_v47, %v5538_v37  ;;  %v6246_v14 = vadd.f32 %v5016_v0, %v9389_v35  ;;  %v5018_v51 = vpop.f32.mrb[153].mxu0 }
 0x66a   : > { %v5019_v3 = vpop.f32.mrb[154].mxu0 }
 0x66b   : > { %v5091_v36 = vmax.f32 %v6246_v14, 0.0  ;;  %v6247_v53 = vadd.f32 %v5019_v3, %v9384_v59  ;;  %v5021_v12 = vpop.f32.mrb[155].mxu0  ;;  %v5472_v59 = vpop.permute.xlu0 %5471 }
 0x66d   : > { %v5539_v25 = vmul.f32 %v5462_v15, %v5091_v36  ;;  %v5092_v40 = vmax.f32 %v6247_v53, 0.0 }
 0x66f   : > { %v5602_v63 = vadd.f32 %v5601_v52, %v5539_v25  ;;  %v5540_v18 = vmul.f32 %v5467_v26, %v5092_v40 }
 0x670   : > { %v5024_v27 = vpop.f32.mrb[156].mxu0 }
 0x671   : > { %v5603_v41 = vadd.f32 %v5602_v63, %v5540_v18  ;;  %v6248_v31 = vadd.f32 %v5024_v27, %v9396_v10  ;;  %v5026_v4 = vpop.f32.mrb[157].mxu0 }
 0x672   : > { %v5027_v56 = vpop.f32.mrb[158].mxu0 }
 0x673   : > { %v5093_v30 = vmax.f32 %v6248_v31, 0.0  ;;  %v6249_v35 = vadd.f32 %v5027_v56, %v9394_v17  ;;  %v5029_v57 = vpop.f32.mrb[159].mxu0 }
 0x675   : > { %v5541_v7 = vmul.f32 %v5472_v59, %v5093_v30  ;;  %v5094_v8 = vmax.f32 %v6249_v35, 0.0 }
 0x677   : > { %v5604_v60 = vadd.f32 %v5603_v41, %v5541_v7  ;;  %v5542_v46 = vmul.f32 %v5477_v43, %v5094_v8 }
 0x679   : > { %v5605_v44 = vadd.f32 %v5604_v60, %v5542_v46 }
 0x67b   : > { %v5606_v50 = vrot.slane %v5605_v44, 4 }
 0x67d   : > { %v5607_v58 = vadd.f32 %v5606_v50, %v5605_v44 }
 0x67f   : > { %v5608_v10 = vrot.slane %v5607_v58, 2 }
 0x681   : > { %v5609_v24 = vadd.f32 %v5608_v10, %v5607_v58 }
 0x683   : > { %v5610_v16 = vrot.slane %v5609_v24, 1 }
 0x685   : > { %v5611_v17 = vadd.f32 %v5610_v16, %v5609_v24 }
 0x687   : > { %v5614_v39 = vadd.f32 %v5613_v2, %v5611_v17 }
 0x689   : > { %5615 = vst [vmem:[%s375_s29] sm:$0x1] %v5614_v39 }
 0x68a   : > { %6978 = shalt.err (!%p6975_p5)
}
 0x68b   : > { %s6979_s17 = scalar_lea.hbm %s9495_s18, 16  ;;  %s6983_s28 = scalar_lea.hbm %s9548_s9, 32 }
 0x68c   : > { %p6980_p7 = scmp.ne.s32.totalorder %s9495_s18, %s6979_s17  ;;  %p6984_p12 = scmp.lt.u32.totalorder %s9495_s18, %s9548_s9 }
 0x68d   : > { %p6985_p13 = scmp.lt.u32.totalorder %s6983_s28, %s6979_s17  ;;  %p6987_p1 = scmp.lt.u32.totalorder %s6979_s17, %s9495_s18 }
 0x68e   : > { %p6981_p10 = pnand %p6980_p7, %p7122_p6 }
 0x68f   : > { %p6986_p0 = por %p6985_p13, %p6984_p12 }
 0x690   : > { %p6982_p11 = pneg %p6981_p10 }
 0x691   : > { %p6988_p2 = por %p6987_p1, %p6986_p0 }
 0x693   : > { %p6989_p3 = pnand %p6988_p2, %p6982_p11 }
 0x695   : > { %6992 = shalt.err (!%p6989_p3)
}
 0x696   : > { %6506 = dma.vmem_to_hbm [thread:$0]  (%p7122_p6), %s9497_s30, 16, %s9495_s18, %s5617_s22  }
 0x697 PF: > { %s5641_s15 = sand.u32 1, %s7015_s11   ;;  %p6509_p4 = pnand %p5692_p9, %p7126_p8 }
 0x698   : > { %s5642_s23 = scalar_lea.sflag [#allocation5], %s5641_s15 }
 0x699   : > { %7010 = dma.done.wait (!%p6509_p4), %s5642_s23, 16  }
 0x69a   : > { %7012 = vsyncadd (!%p6509_p4), %s5642_s23, 4294967280  ;;  %p20_p5 = scmp.ge.s32.totalorder %s7107_s16, 4   ;;  %s9648_s11 = smov %s7019_s12 }
 0x69b   : > { %s9649_s12 = smov %s7023_s13  ;;  %s9650_s13 = smov %s7120_s19 }
 0x69c   : > { %s9651_s14 = smov %s7107_s16  ;;  %22 = sbr.rel (!%p20_p5) target bundleno = 5 (0x5), region = 137 }
 0x6a3   :  { %5646 = vsyncpa [#allocation5], 1 }
 0x6a4   :  { %5648 = vsyncpa [#allocation5 + $0x1], 1 }

</bundles_post_ra>
